<compile_context>
chip_gen: v6e
topology: v6e:2x2x1
jax: 0.10.0
libtpu: 0.0.40
codegen_flags: <defaults>
</compile_context>

<pallas_src>
import functools

import jax
import jax.numpy as jnp
from jax import lax
from jax.experimental import pallas as pl
from jax.experimental.pallas import tpu as pltpu


def _aspp_kernel(x_hbm, wk_ref, bias_ref, o_ref, xbuf, sem, *,
                 dilations, TH, W, Cin, NP, maxd, n_tiles):
    """One grid step: every ASPP branch for TH output rows of one batch element.

    x_hbm   : (N, H + 2*maxd, W, Cin)    bf16, HBM (memory_space=pl.ANY)
    wk_ref  : (nb, 3, Cin, 3*NP)         bf16  per-(branch, ky) weights, kx taps
                                               stacked along the N (lane) axis
    bias_ref: (1, 1, NP)                 f32   sum of the per-branch biases
    o_ref   : (TH, W, NP)                f32   output row tile (lane-dense)
    xbuf    : (2, TH + 2*maxd, W, Cin)   bf16  double-buffered halo'd row slab
    sem     : (2,)                       DMA semaphores (one per slab buffer)
    """
    n = pl.program_id(0)
    t = pl.program_id(1)
    slab_rows = TH + 2 * maxd
    slot = t & 1                       # which slab buffer holds tile t

    def start_fetch(tile_idx, slot_idx):
        row0 = pl.multiple_of(tile_idx * TH, TH)
        pltpu.make_async_copy(
            x_hbm.at[n, pl.ds(row0, slab_rows), :, :],
            xbuf.at[slot_idx], sem.at[slot_idx]).start()

    # Prime the pipeline at the first row tile of each batch element.  (Priming
    # per-n keeps the prefetch chain inside one batch element, so it stays
    # correct if the "parallel" batch axis is sharded across TensorCores.)
    @pl.when(t == 0)
    def _():
        start_fetch(t, slot)           # t == 0, slot == 0 here

    # Wait for the slab of the current tile (issued here at t == 0, otherwise
    # issued as a prefetch by the previous step and overlapped with its MXU
    # work).
    pltpu.make_async_copy(
        x_hbm.at[n, pl.ds(0, slab_rows), :, :],
        xbuf.at[slot], sem.at[slot]).wait()

    # Prefetch the next tile's slab into the other buffer (same batch element
    # only), hiding its HBM latency behind this tile's compute.
    @pl.when(t + 1 < n_tiles)
    def _():
        start_fetch(t + 1, 1 - slot)

    # Initialize the VMEM-resident output tile with the summed bias, then
    # accumulate every (branch, ky) contribution straight into it.
    o_ref[...] = jnp.broadcast_to(bias_ref[...], (TH, W, NP))

    for i, d in enumerate(dilations):        # static python loops -> unrolled
        off = maxd - d                       # this branch's row-halo offset
        for ky in range(3):
            r0 = off + ky * d
            # H-axis slice only (leading dims): no sublane realignment, no copy
            # of the Cin-wide activations.
            rows = xbuf[slot, r0:r0 + TH, :, :]                    # (TH, W, Cin)
            # One MXU matmul per (branch, ky): K = Cin, N = 3*NP (kx folded).
            z = jnp.dot(rows.reshape(TH * W, Cin), wk_ref[i, ky, :, :],
                        preferred_element_type=jnp.float32)        # (TH*W, 3NP)
            z = z.reshape(TH, W, 3 * NP)

            # kx = 1 (center tap): no shift.
            contrib = z[:, :, NP:2 * NP]
            if d < W:
                # Shift the *small* 128-lane results along W, not the input:
                #   out[h, w] += z_kx[h, w + (kx-1)*d]   (zero outside [0, W)).
                zpad = jnp.zeros((TH, d, NP), jnp.float32)
                contrib = contrib + jnp.concatenate(
                    [zpad, z[:, :W - d, 0:NP]], axis=1)            # kx = 0
                contrib = contrib + jnp.concatenate(
                    [z[:, d:, 2 * NP:3 * NP], zpad], axis=1)       # kx = 2
            # else: off-center columns only ever see zero padding -> contribute 0.

            o_ref[...] += contrib


def classifier_forward(x_nchw, weights, biases, dilation_series, padding_series,
                       *, tile_rows=None):
    """x_nchw: (N, Cin, H, W) f32; weights[i]: (NoLabels, Cin, 3, 3);
    biases[i]: (NoLabels,).  Returns (N, NoLabels, H, W) f32."""
    dilations = tuple(int(d) for d in dilation_series)
    paddings = tuple(int(p) for p in padding_series)
    # TODO(synk): padding != dilation would change a branch's output size and the
    #             branch outputs could no longer be summed; not supported here
    #             (DeepLabv2 always uses padding == dilation).
    assert len(dilations) == len(paddings)
    assert all(d == p for d, p in zip(dilations, paddings))

    N, Cin, H, W = x_nchw.shape
    nb = len(dilations)
    NL = weights[0].shape[0]
    NP = ((NL + 127) // 128) * 128        # lane-dense (padded) output channels
    maxd = max(dilations)

    # Row-tile height (VMEM / read-amplification trade-off): default to the
    # largest divisor of H that is <= 8 so the double-buffered halo slab stays
    # bounded at production sizes; override per chip via tile_rows.
    if tile_rows is not None:
        TH = tile_rows
    else:
        TH = 1
        for cand in (8, 7, 6, 5, 4, 3, 2, 1):
            if H % cand == 0:
                TH = cand
                break
    assert H % TH == 0, "tile_rows must divide H"
    n_tiles = H // TH

    # ---- weight / bias prep: channels-last matmul layout, bf16, NP-padded ----
    wk_branches = []
    bias_sum = jnp.zeros((NL,), jnp.float32)
    for w, b in zip(weights, biases):
        per_ky = []
        for ky in range(3):
            taps = []
            for kx in range(3):
                tap = jnp.transpose(w[:, :, ky, kx])               # (Cin, NL)
                taps.append(jnp.pad(tap, ((0, 0), (0, NP - NL))))  # (Cin, NP)
            per_ky.append(jnp.concatenate(taps, axis=1))           # (Cin, 3*NP)
        wk_branches.append(jnp.stack(per_ky, axis=0))              # (3, Cin, 3NP)
        bias_sum = bias_sum + b.astype(jnp.float32)
    wk = jnp.stack(wk_branches, axis=0).astype(jnp.bfloat16)       # (nb,3,Cin,3NP)
    bias = jnp.pad(bias_sum, (0, NP - NL)).reshape(1, 1, NP)       # f32

    # ---- activation prep: NHWC, bf16, H padded by maxd (no W padding needed) --
    x_nhwc = jnp.transpose(x_nchw, (0, 2, 3, 1)).astype(jnp.bfloat16)
    x_pad = jnp.pad(x_nhwc, ((0, 0), (maxd, maxd), (0, 0), (0, 0)))

    kernel = functools.partial(_aspp_kernel, dilations=dilations, TH=TH, W=W,
                               Cin=Cin, NP=NP, maxd=maxd, n_tiles=n_tiles)

    out_padded = pl.pallas_call(
        kernel,
        out_shape=jax.ShapeDtypeStruct((N, H, W, NP), jnp.float32),
        grid=(N, n_tiles),
        in_specs=[
            pl.BlockSpec(memory_space=pl.ANY),                  # x_pad stays in HBM
            # TODO(synk): at production weight sizes consider
            #             pipeline_mode=pl.Buffered(1) (block index is constant)
            #             to drop the second weight buffer inside v7x's 64 MiB.
            pl.BlockSpec((nb, 3, Cin, 3 * NP), lambda n, t: (0, 0, 0, 0)),
            pl.BlockSpec((1, 1, NP), lambda n, t: (0, 0, 0)),
        ],
        out_specs=pl.BlockSpec((None, TH, W, NP), lambda n, t: (n, t, 0, 0)),
        scratch_shapes=[
            pltpu.VMEM((2, TH + 2 * maxd, W, Cin), jnp.bfloat16),  # 2x halo'd slab
            pltpu.SemaphoreType.DMA((2,)),
        ],
        compiler_params=pltpu.CompilerParams(
            # Batch axis can be sharded across TensorCores; the row-tile axis
            # carries the double-buffer prefetch chain, so it is "arbitrary".
            dimension_semantics=("parallel", "arbitrary"),
            vmem_limit_bytes=32 * 1024 * 1024),
    )(x_pad, wk, bias)

    # Drop lane padding, back to NCHW.
    return jnp.transpose(out_padded[..., :NL], (0, 3, 1, 2))


def classifier_ref(x_nchw, weights, biases, dilation_series, padding_series):
    """Pure-JAX reference (lax dilated convolutions, NCHW, f32 accumulation)."""
    dn = ('NCHW', 'OIHW', 'NCHW')
    out = None
    for w, b, d, p in zip(weights, biases, dilation_series, padding_series):
        y = lax.conv_general_dilated(
            x_nchw, w, window_strides=(1, 1), padding=[(p, p), (p, p)],
            rhs_dilation=(d, d), dimension_numbers=dn,
            precision=lax.Precision.HIGHEST)
        y = y + b.reshape(1, -1, 1, 1)
        out = y if out is None else out + y
    return out


def make_params(key, num_branches, in_channels, no_labels):
    """Deterministic synthetic parameters with PyTorch Conv2d shapes."""
    ws, bs = [], []
    for _ in range(num_branches):
        key, kw, kb = jax.random.split(key, 3)
        ws.append(0.01 * jax.random.normal(
            kw, (no_labels, in_channels, 3, 3), jnp.float32))
        bs.append(0.01 * jax.random.normal(kb, (no_labels,), jnp.float32))
    return ws, bs


if __name__ == "__main__":
    # Small test shapes (the real DeepLabv2 head uses in_channels=2048,
    # NoLabels=21, dilations/paddings (6, 12, 18, 24) on ~65x65 features).
    N, in_channels, H, W = 2, 128, 16, 16
    no_labels = 5
    dilation_series = (2, 4, 6, 8)
    padding_series = (2, 4, 6, 8)

    key = jax.random.PRNGKey(0)
    kdata, kparam = jax.random.split(key)
    x = jax.random.normal(kdata, (N, in_channels, H, W), jnp.float32)
    weights, biases = make_params(kparam, len(dilation_series), in_channels,
                                  no_labels)

    out = jax.block_until_ready(
        classifier_forward(x, weights, biases, dilation_series, padding_series))
    assert out.shape == (N, no_labels, H, W)

    # Reference with the same bf16 rounding of inputs/weights (f32 accumulation)
    # so the comparison isolates kernel correctness from the bf16 cast.
    xq = x.astype(jnp.bfloat16).astype(jnp.float32)
    wq = [w.astype(jnp.bfloat16).astype(jnp.float32) for w in weights]
    ref = jax.block_until_ready(
        classifier_ref(xq, wq, biases, dilation_series, padding_series))

    err = float(jnp.max(jnp.abs(out - ref)))
    assert jnp.allclose(out, ref, atol=1e-4, rtol=1e-4), f"max abs err = {err}"
    print("KERNEL_OK")
</pallas_src>

<mosaic_0001>
module attributes {stable_mosaic.version = 11 : i64} {
  func.func @_aspp_kernel(%arg0: i32, %arg1: i32, %arg2: memref<2x32x16x128xbf16, #tpu.memory_space<any>>, %arg3: memref<4x3x128x384xbf16, #tpu.memory_space<vmem>>, %arg4: memref<1x1x128xf32, #tpu.memory_space<vmem>>, %arg5: memref<1x8x16x128xf32, #tpu.memory_space<vmem>>, %arg6: memref<2x24x16x128xbf16, #tpu.memory_space<vmem>>, %arg7: memref<2x!tpu.dma_semaphore, #tpu.memory_space<semaphore_mem>>) attributes {dimension_semantics = [#tpu.dimension_semantics<parallel>, #tpu.dimension_semantics<arbitrary>], iteration_bounds = array<i64: 2, 2>, scalar_prefetch = 0 : i64, scratch_operands = 2 : i64, tpu.core_type = #tpu.core_type<tc>, window_params = [{}, {pipeline_mode = #tpu.pipeline_mode<synchronous>, transform_indices = @transform_1, window_bounds = array<i64: 4, 3, 128, 384>}, {pipeline_mode = #tpu.pipeline_mode<synchronous>, transform_indices = @transform_2, window_bounds = array<i64: 1, 1, 128>}, {transform_indices = @transform_3, window_bounds = array<i64: 1, 8, 16, 128>}]} {
    %c1_i32 = arith.constant 1 : i32
    %0 = arith.andi %arg1, %c1_i32 : i32
    %c0_i32 = arith.constant 0 : i32
    %1 = arith.cmpi eq, %arg1, %c0_i32 : i32
    %2 = arith.extui %1 : i1 to i32
    %c0_i32_0 = arith.constant 0 : i32
    %3 = arith.cmpi ne, %2, %c0_i32_0 : i32
    scf.if %3 {
      %c8_i32 = arith.constant 8 : i32
      %284 = arith.muli %arg1, %c8_i32 : i32
      %285 = tpu.assume_multiple %284, 8 : i32
      %c0_i32_208 = arith.constant 0 : i32
      %c0_i32_209 = arith.constant 0 : i32
      %286 = tpu.memref_slice %arg2[%arg0, %285, %c0_i32_208, %c0_i32_209] : memref<2x32x16x128xbf16, #tpu.memory_space<any>> -> memref<1x24x16x128xbf16, #tpu.memory_space<any>>
      %287 = tpu.memref_squeeze %286 : memref<1x24x16x128xbf16, #tpu.memory_space<any>> -> memref<24x16x128xbf16, #tpu.memory_space<any>>
      %c0_i32_210 = arith.constant 0 : i32
      %c0_i32_211 = arith.constant 0 : i32
      %c0_i32_212 = arith.constant 0 : i32
      %288 = tpu.memref_slice %arg6[%0, %c0_i32_210, %c0_i32_211, %c0_i32_212] : memref<2x24x16x128xbf16, #tpu.memory_space<vmem>> -> memref<1x24x16x128xbf16, #tpu.memory_space<vmem>>
      %289 = tpu.memref_squeeze %288 : memref<1x24x16x128xbf16, #tpu.memory_space<vmem>> -> memref<24x16x128xbf16, #tpu.memory_space<vmem>>
      %290 = tpu.memref_slice %arg7[%0] : memref<2x!tpu.dma_semaphore, #tpu.memory_space<semaphore_mem>> -> memref<1x!tpu.dma_semaphore, #tpu.memory_space<semaphore_mem>>
      %291 = tpu.memref_squeeze %290 : memref<1x!tpu.dma_semaphore, #tpu.memory_space<semaphore_mem>> -> memref<!tpu.dma_semaphore, #tpu.memory_space<semaphore_mem>>
      tpu.enqueue_dma source(%287 : memref<24x16x128xbf16, #tpu.memory_space<any>>) target(%289 : memref<24x16x128xbf16, #tpu.memory_space<vmem>>) target_semaphore(%291 : memref<!tpu.dma_semaphore, #tpu.memory_space<semaphore_mem>>)
    } else {
    }
    %c0_i32_1 = arith.constant 0 : i32
    %c0_i32_2 = arith.constant 0 : i32
    %c0_i32_3 = arith.constant 0 : i32
    %4 = tpu.memref_slice %arg2[%arg0, %c0_i32_1, %c0_i32_2, %c0_i32_3] : memref<2x32x16x128xbf16, #tpu.memory_space<any>> -> memref<1x24x16x128xbf16, #tpu.memory_space<any>>
    %5 = tpu.memref_squeeze %4 : memref<1x24x16x128xbf16, #tpu.memory_space<any>> -> memref<24x16x128xbf16, #tpu.memory_space<any>>
    %c0_i32_4 = arith.constant 0 : i32
    %c0_i32_5 = arith.constant 0 : i32
    %c0_i32_6 = arith.constant 0 : i32
    %6 = tpu.memref_slice %arg6[%0, %c0_i32_4, %c0_i32_5, %c0_i32_6] : memref<2x24x16x128xbf16, #tpu.memory_space<vmem>> -> memref<1x24x16x128xbf16, #tpu.memory_space<vmem>>
    %7 = tpu.memref_squeeze %6 : memref<1x24x16x128xbf16, #tpu.memory_space<vmem>> -> memref<24x16x128xbf16, #tpu.memory_space<vmem>>
    %8 = tpu.memref_slice %arg7[%0] : memref<2x!tpu.dma_semaphore, #tpu.memory_space<semaphore_mem>> -> memref<1x!tpu.dma_semaphore, #tpu.memory_space<semaphore_mem>>
    %9 = tpu.memref_squeeze %8 : memref<1x!tpu.dma_semaphore, #tpu.memory_space<semaphore_mem>> -> memref<!tpu.dma_semaphore, #tpu.memory_space<semaphore_mem>>
    tpu.wait_dma2 semaphore(%9 : memref<!tpu.dma_semaphore, #tpu.memory_space<semaphore_mem>>) src(%5 : memref<24x16x128xbf16, #tpu.memory_space<any>>) dst(%7 : memref<24x16x128xbf16, #tpu.memory_space<vmem>>)
    %c1_i32_7 = arith.constant 1 : i32
    %10 = arith.addi %arg1, %c1_i32_7 : i32
    %c2_i32 = arith.constant 2 : i32
    %11 = arith.cmpi slt, %10, %c2_i32 : i32
    %12 = arith.extui %11 : i1 to i32
    %c0_i32_8 = arith.constant 0 : i32
    %13 = arith.cmpi ne, %12, %c0_i32_8 : i32
    scf.if %13 {
      %c1_i32_208 = arith.constant 1 : i32
      %284 = arith.addi %arg1, %c1_i32_208 : i32
      %c1_i32_209 = arith.constant 1 : i32
      %285 = arith.subi %c1_i32_209, %0 : i32
      %c8_i32 = arith.constant 8 : i32
      %286 = arith.muli %284, %c8_i32 : i32
      %287 = tpu.assume_multiple %286, 8 : i32
      %c0_i32_210 = arith.constant 0 : i32
      %c0_i32_211 = arith.constant 0 : i32
      %288 = tpu.memref_slice %arg2[%arg0, %287, %c0_i32_210, %c0_i32_211] : memref<2x32x16x128xbf16, #tpu.memory_space<any>> -> memref<1x24x16x128xbf16, #tpu.memory_space<any>>
      %289 = tpu.memref_squeeze %288 : memref<1x24x16x128xbf16, #tpu.memory_space<any>> -> memref<24x16x128xbf16, #tpu.memory_space<any>>
      %c0_i32_212 = arith.constant 0 : i32
      %c0_i32_213 = arith.constant 0 : i32
      %c0_i32_214 = arith.constant 0 : i32
      %290 = tpu.memref_slice %arg6[%285, %c0_i32_212, %c0_i32_213, %c0_i32_214] : memref<2x24x16x128xbf16, #tpu.memory_space<vmem>> -> memref<1x24x16x128xbf16, #tpu.memory_space<vmem>>
      %291 = tpu.memref_squeeze %290 : memref<1x24x16x128xbf16, #tpu.memory_space<vmem>> -> memref<24x16x128xbf16, #tpu.memory_space<vmem>>
      %292 = tpu.memref_slice %arg7[%285] : memref<2x!tpu.dma_semaphore, #tpu.memory_space<semaphore_mem>> -> memref<1x!tpu.dma_semaphore, #tpu.memory_space<semaphore_mem>>
      %293 = tpu.memref_squeeze %292 : memref<1x!tpu.dma_semaphore, #tpu.memory_space<semaphore_mem>> -> memref<!tpu.dma_semaphore, #tpu.memory_space<semaphore_mem>>
      tpu.enqueue_dma source(%289 : memref<24x16x128xbf16, #tpu.memory_space<any>>) target(%291 : memref<24x16x128xbf16, #tpu.memory_space<vmem>>) target_semaphore(%293 : memref<!tpu.dma_semaphore, #tpu.memory_space<semaphore_mem>>)
    } else {
    }
    %c0 = arith.constant 0 : index
    %c0_9 = arith.constant 0 : index
    %c0_10 = arith.constant 0 : index
    %14 = vector.load %arg4[%c0, %c0_9, %c0_10] : memref<1x1x128xf32, #tpu.memory_space<vmem>>, vector<1x1x128xf32>
    %15 = vector.shape_cast %14 : vector<1x1x128xf32> to vector<1x1x128xf32>
    %16 = vector.broadcast %15 : vector<1x1x128xf32> to vector<8x16x128xf32>
    %c0_11 = arith.constant 0 : index
    %c0_12 = arith.constant 0 : index
    %c0_13 = arith.constant 0 : index
    %c0_14 = arith.constant 0 : index
    %17 = vector.load %arg5[%c0_11, %c0_12, %c0_13, %c0_14] : memref<1x8x16x128xf32, #tpu.memory_space<vmem>>, vector<1x8x16x128xf32>
    %18 = vector.shape_cast %17 : vector<1x8x16x128xf32> to vector<8x16x128xf32>
    %19 = vector.shape_cast %16 : vector<8x16x128xf32> to vector<1x8x16x128xf32>
    tpu.vector_store %arg5[%c0_11, %c0_12, %c0_13, %c0_14], %19 {strides = array<i32>} : memref<1x8x16x128xf32, #tpu.memory_space<vmem>>, vector<1x8x16x128xf32>,
    %20 = arith.index_cast %0 : i32 to index
    %c6 = arith.constant 6 : index
    %c0_15 = arith.constant 0 : index
    %c0_16 = arith.constant 0 : index
    %21 = vector.load %arg6[%20, %c6, %c0_15, %c0_16] : memref<2x24x16x128xbf16, #tpu.memory_space<vmem>>, vector<1x8x16x128xbf16>
    %22 = vector.shape_cast %21 : vector<1x8x16x128xbf16> to vector<8x16x128xbf16>
    %23 = vector.shape_cast %22 : vector<8x16x128xbf16> to vector<128x128xbf16>
    %c0_17 = arith.constant 0 : index
    %c0_18 = arith.constant 0 : index
    %c0_19 = arith.constant 0 : index
    %c0_20 = arith.constant 0 : index
    %24 = vector.load %arg3[%c0_17, %c0_18, %c0_19, %c0_20] : memref<4x3x128x384xbf16, #tpu.memory_space<vmem>>, vector<1x1x128x384xbf16>
    %25 = vector.shape_cast %24 : vector<1x1x128x384xbf16> to vector<128x384xbf16>
    %cst = arith.constant dense<0.000000e+00> : vector<128x384xf32>
    %26 = tpu.matmul %23, %25, %cst {dimension_numbers = #tpu.dot_dimension_numbers<[1], [0], [0], [1], [0, 0, 1, 1], [], []>} : vector<128x128xbf16>, vector<128x384xbf16>, vector<128x384xf32> -> vector<128x384xf32>
    %27 = vector.shape_cast %26 : vector<128x384xf32> to vector<8x16x384xf32>
    %28 = vector.extract_strided_slice %27 {offsets = [0, 0, 128], sizes = [8, 16, 128], strides = [1, 1, 1]} : vector<8x16x384xf32> to vector<8x16x128xf32>
    %cst_21 = arith.constant 0.000000e+00 : f32
    %29 = vector.broadcast %cst_21 : f32 to vector<8x2x128xf32>
    %30 = vector.extract_strided_slice %27 {offsets = [0, 0, 0], sizes = [8, 14, 128], strides = [1, 1, 1]} : vector<8x16x384xf32> to vector<8x14x128xf32>
    %31 = tpu.concatenate %29, %30 in 1 : vector<8x2x128xf32>, vector<8x14x128xf32> -> vector<8x16x128xf32>
    %32 = arith.addf %28, %31 : vector<8x16x128xf32>
    %33 = vector.extract_strided_slice %27 {offsets = [0, 2, 256], sizes = [8, 14, 128], strides = [1, 1, 1]} : vector<8x16x384xf32> to vector<8x14x128xf32>
    %34 = tpu.concatenate %33, %29 in 1 : vector<8x14x128xf32>, vector<8x2x128xf32> -> vector<8x16x128xf32>
    %35 = arith.addf %32, %34 : vector<8x16x128xf32>
    %c0_22 = arith.constant 0 : index
    %c0_23 = arith.constant 0 : index
    %c0_24 = arith.constant 0 : index
    %c0_25 = arith.constant 0 : index
    %36 = vector.load %arg5[%c0_22, %c0_23, %c0_24, %c0_25] : memref<1x8x16x128xf32, #tpu.memory_space<vmem>>, vector<1x8x16x128xf32>
    %37 = vector.shape_cast %36 : vector<1x8x16x128xf32> to vector<8x16x128xf32>
    %38 = arith.addf %37, %35 : vector<8x16x128xf32>
    %c0_26 = arith.constant 0 : index
    %c0_27 = arith.constant 0 : index
    %c0_28 = arith.constant 0 : index
    %c0_29 = arith.constant 0 : index
    %39 = vector.load %arg5[%c0_26, %c0_27, %c0_28, %c0_29] : memref<1x8x16x128xf32, #tpu.memory_space<vmem>>, vector<1x8x16x128xf32>
    %40 = vector.shape_cast %39 : vector<1x8x16x128xf32> to vector<8x16x128xf32>
    %41 = vector.shape_cast %38 : vector<8x16x128xf32> to vector<1x8x16x128xf32>
    tpu.vector_store %arg5[%c0_26, %c0_27, %c0_28, %c0_29], %41 {strides = array<i32>} : memref<1x8x16x128xf32, #tpu.memory_space<vmem>>, vector<1x8x16x128xf32>,
    %42 = arith.index_cast %0 : i32 to index
    %c8 = arith.constant 8 : index
    %c0_30 = arith.constant 0 : index
    %c0_31 = arith.constant 0 : index
    %43 = vector.load %arg6[%42, %c8, %c0_30, %c0_31] : memref<2x24x16x128xbf16, #tpu.memory_space<vmem>>, vector<1x8x16x128xbf16>
    %44 = vector.shape_cast %43 : vector<1x8x16x128xbf16> to vector<8x16x128xbf16>
    %45 = vector.shape_cast %44 : vector<8x16x128xbf16> to vector<128x128xbf16>
    %c0_32 = arith.constant 0 : index
    %c1 = arith.constant 1 : index
    %c0_33 = arith.constant 0 : index
    %c0_34 = arith.constant 0 : index
    %46 = vector.load %arg3[%c0_32, %c1, %c0_33, %c0_34] : memref<4x3x128x384xbf16, #tpu.memory_space<vmem>>, vector<1x1x128x384xbf16>
    %47 = vector.shape_cast %46 : vector<1x1x128x384xbf16> to vector<128x384xbf16>
    %cst_35 = arith.constant dense<0.000000e+00> : vector<128x384xf32>
    %48 = tpu.matmul %45, %47, %cst_35 {dimension_numbers = #tpu.dot_dimension_numbers<[1], [0], [0], [1], [0, 0, 1, 1], [], []>} : vector<128x128xbf16>, vector<128x384xbf16>, vector<128x384xf32> -> vector<128x384xf32>
    %49 = vector.shape_cast %48 : vector<128x384xf32> to vector<8x16x384xf32>
    %50 = vector.extract_strided_slice %49 {offsets = [0, 0, 128], sizes = [8, 16, 128], strides = [1, 1, 1]} : vector<8x16x384xf32> to vector<8x16x128xf32>
    %cst_36 = arith.constant 0.000000e+00 : f32
    %51 = vector.broadcast %cst_36 : f32 to vector<8x2x128xf32>
    %52 = vector.extract_strided_slice %49 {offsets = [0, 0, 0], sizes = [8, 14, 128], strides = [1, 1, 1]} : vector<8x16x384xf32> to vector<8x14x128xf32>
    %53 = tpu.concatenate %51, %52 in 1 : vector<8x2x128xf32>, vector<8x14x128xf32> -> vector<8x16x128xf32>
    %54 = arith.addf %50, %53 : vector<8x16x128xf32>
    %55 = vector.extract_strided_slice %49 {offsets = [0, 2, 256], sizes = [8, 14, 128], strides = [1, 1, 1]} : vector<8x16x384xf32> to vector<8x14x128xf32>
    %56 = tpu.concatenate %55, %51 in 1 : vector<8x14x128xf32>, vector<8x2x128xf32> -> vector<8x16x128xf32>
    %57 = arith.addf %54, %56 : vector<8x16x128xf32>
    %c0_37 = arith.constant 0 : index
    %c0_38 = arith.constant 0 : index
    %c0_39 = arith.constant 0 : index
    %c0_40 = arith.constant 0 : index
    %58 = vector.load %arg5[%c0_37, %c0_38, %c0_39, %c0_40] : memref<1x8x16x128xf32, #tpu.memory_space<vmem>>, vector<1x8x16x128xf32>
    %59 = vector.shape_cast %58 : vector<1x8x16x128xf32> to vector<8x16x128xf32>
    %60 = arith.addf %59, %57 : vector<8x16x128xf32>
    %c0_41 = arith.constant 0 : index
    %c0_42 = arith.constant 0 : index
    %c0_43 = arith.constant 0 : index
    %c0_44 = arith.constant 0 : index
    %61 = vector.load %arg5[%c0_41, %c0_42, %c0_43, %c0_44] : memref<1x8x16x128xf32, #tpu.memory_space<vmem>>, vector<1x8x16x128xf32>
    %62 = vector.shape_cast %61 : vector<1x8x16x128xf32> to vector<8x16x128xf32>
    %63 = vector.shape_cast %60 : vector<8x16x128xf32> to vector<1x8x16x128xf32>
    tpu.vector_store %arg5[%c0_41, %c0_42, %c0_43, %c0_44], %63 {strides = array<i32>} : memref<1x8x16x128xf32, #tpu.memory_space<vmem>>, vector<1x8x16x128xf32>,
    %64 = arith.index_cast %0 : i32 to index
    %c10 = arith.constant 10 : index
    %c0_45 = arith.constant 0 : index
    %c0_46 = arith.constant 0 : index
    %65 = vector.load %arg6[%64, %c10, %c0_45, %c0_46] : memref<2x24x16x128xbf16, #tpu.memory_space<vmem>>, vector<1x8x16x128xbf16>
    %66 = vector.shape_cast %65 : vector<1x8x16x128xbf16> to vector<8x16x128xbf16>
    %67 = vector.shape_cast %66 : vector<8x16x128xbf16> to vector<128x128xbf16>
    %c0_47 = arith.constant 0 : index
    %c2 = arith.constant 2 : index
    %c0_48 = arith.constant 0 : index
    %c0_49 = arith.constant 0 : index
    %68 = vector.load %arg3[%c0_47, %c2, %c0_48, %c0_49] : memref<4x3x128x384xbf16, #tpu.memory_space<vmem>>, vector<1x1x128x384xbf16>
    %69 = vector.shape_cast %68 : vector<1x1x128x384xbf16> to vector<128x384xbf16>
    %cst_50 = arith.constant dense<0.000000e+00> : vector<128x384xf32>
    %70 = tpu.matmul %67, %69, %cst_50 {dimension_numbers = #tpu.dot_dimension_numbers<[1], [0], [0], [1], [0, 0, 1, 1], [], []>} : vector<128x128xbf16>, vector<128x384xbf16>, vector<128x384xf32> -> vector<128x384xf32>
    %71 = vector.shape_cast %70 : vector<128x384xf32> to vector<8x16x384xf32>
    %72 = vector.extract_strided_slice %71 {offsets = [0, 0, 128], sizes = [8, 16, 128], strides = [1, 1, 1]} : vector<8x16x384xf32> to vector<8x16x128xf32>
    %cst_51 = arith.constant 0.000000e+00 : f32
    %73 = vector.broadcast %cst_51 : f32 to vector<8x2x128xf32>
    %74 = vector.extract_strided_slice %71 {offsets = [0, 0, 0], sizes = [8, 14, 128], strides = [1, 1, 1]} : vector<8x16x384xf32> to vector<8x14x128xf32>
    %75 = tpu.concatenate %73, %74 in 1 : vector<8x2x128xf32>, vector<8x14x128xf32> -> vector<8x16x128xf32>
    %76 = arith.addf %72, %75 : vector<8x16x128xf32>
    %77 = vector.extract_strided_slice %71 {offsets = [0, 2, 256], sizes = [8, 14, 128], strides = [1, 1, 1]} : vector<8x16x384xf32> to vector<8x14x128xf32>
    %78 = tpu.concatenate %77, %73 in 1 : vector<8x14x128xf32>, vector<8x2x128xf32> -> vector<8x16x128xf32>
    %79 = arith.addf %76, %78 : vector<8x16x128xf32>
    %c0_52 = arith.constant 0 : index
    %c0_53 = arith.constant 0 : index
    %c0_54 = arith.constant 0 : index
    %c0_55 = arith.constant 0 : index
    %80 = vector.load %arg5[%c0_52, %c0_53, %c0_54, %c0_55] : memref<1x8x16x128xf32, #tpu.memory_space<vmem>>, vector<1x8x16x128xf32>
    %81 = vector.shape_cast %80 : vector<1x8x16x128xf32> to vector<8x16x128xf32>
    %82 = arith.addf %81, %79 : vector<8x16x128xf32>
    %c0_56 = arith.constant 0 : index
    %c0_57 = arith.constant 0 : index
    %c0_58 = arith.constant 0 : index
    %c0_59 = arith.constant 0 : index
    %83 = vector.load %arg5[%c0_56, %c0_57, %c0_58, %c0_59] : memref<1x8x16x128xf32, #tpu.memory_space<vmem>>, vector<1x8x16x128xf32>
    %84 = vector.shape_cast %83 : vector<1x8x16x128xf32> to vector<8x16x128xf32>
    %85 = vector.shape_cast %82 : vector<8x16x128xf32> to vector<1x8x16x128xf32>
    tpu.vector_store %arg5[%c0_56, %c0_57, %c0_58, %c0_59], %85 {strides = array<i32>} : memref<1x8x16x128xf32, #tpu.memory_space<vmem>>, vector<1x8x16x128xf32>,
    %86 = arith.index_cast %0 : i32 to index
    %c4 = arith.constant 4 : index
    %c0_60 = arith.constant 0 : index
    %c0_61 = arith.constant 0 : index
    %87 = vector.load %arg6[%86, %c4, %c0_60, %c0_61] : memref<2x24x16x128xbf16, #tpu.memory_space<vmem>>, vector<1x8x16x128xbf16>
    %88 = vector.shape_cast %87 : vector<1x8x16x128xbf16> to vector<8x16x128xbf16>
    %89 = vector.shape_cast %88 : vector<8x16x128xbf16> to vector<128x128xbf16>
    %c1_62 = arith.constant 1 : index
    %c0_63 = arith.constant 0 : index
    %c0_64 = arith.constant 0 : index
    %c0_65 = arith.constant 0 : index
    %90 = vector.load %arg3[%c1_62, %c0_63, %c0_64, %c0_65] : memref<4x3x128x384xbf16, #tpu.memory_space<vmem>>, vector<1x1x128x384xbf16>
    %91 = vector.shape_cast %90 : vector<1x1x128x384xbf16> to vector<128x384xbf16>
    %cst_66 = arith.constant dense<0.000000e+00> : vector<128x384xf32>
    %92 = tpu.matmul %89, %91, %cst_66 {dimension_numbers = #tpu.dot_dimension_numbers<[1], [0], [0], [1], [0, 0, 1, 1], [], []>} : vector<128x128xbf16>, vector<128x384xbf16>, vector<128x384xf32> -> vector<128x384xf32>
    %93 = vector.shape_cast %92 : vector<128x384xf32> to vector<8x16x384xf32>
    %94 = vector.extract_strided_slice %93 {offsets = [0, 0, 128], sizes = [8, 16, 128], strides = [1, 1, 1]} : vector<8x16x384xf32> to vector<8x16x128xf32>
    %cst_67 = arith.constant 0.000000e+00 : f32
    %95 = vector.broadcast %cst_67 : f32 to vector<8x4x128xf32>
    %96 = vector.extract_strided_slice %93 {offsets = [0, 0, 0], sizes = [8, 12, 128], strides = [1, 1, 1]} : vector<8x16x384xf32> to vector<8x12x128xf32>
    %97 = tpu.concatenate %95, %96 in 1 : vector<8x4x128xf32>, vector<8x12x128xf32> -> vector<8x16x128xf32>
    %98 = arith.addf %94, %97 : vector<8x16x128xf32>
    %99 = vector.extract_strided_slice %93 {offsets = [0, 4, 256], sizes = [8, 12, 128], strides = [1, 1, 1]} : vector<8x16x384xf32> to vector<8x12x128xf32>
    %100 = tpu.concatenate %99, %95 in 1 : vector<8x12x128xf32>, vector<8x4x128xf32> -> vector<8x16x128xf32>
    %101 = arith.addf %98, %100 : vector<8x16x128xf32>
    %c0_68 = arith.constant 0 : index
    %c0_69 = arith.constant 0 : index
    %c0_70 = arith.constant 0 : index
    %c0_71 = arith.constant 0 : index
    %102 = vector.load %arg5[%c0_68, %c0_69, %c0_70, %c0_71] : memref<1x8x16x128xf32, #tpu.memory_space<vmem>>, vector<1x8x16x128xf32>
    %103 = vector.shape_cast %102 : vector<1x8x16x128xf32> to vector<8x16x128xf32>
    %104 = arith.addf %103, %101 : vector<8x16x128xf32>
    %c0_72 = arith.constant 0 : index
    %c0_73 = arith.constant 0 : index
    %c0_74 = arith.constant 0 : index
    %c0_75 = arith.constant 0 : index
    %105 = vector.load %arg5[%c0_72, %c0_73, %c0_74, %c0_75] : memref<1x8x16x128xf32, #tpu.memory_space<vmem>>, vector<1x8x16x128xf32>
    %106 = vector.shape_cast %105 : vector<1x8x16x128xf32> to vector<8x16x128xf32>
    %107 = vector.shape_cast %104 : vector<8x16x128xf32> to vector<1x8x16x128xf32>
    tpu.vector_store %arg5[%c0_72, %c0_73, %c0_74, %c0_75], %107 {strides = array<i32>} : memref<1x8x16x128xf32, #tpu.memory_space<vmem>>, vector<1x8x16x128xf32>,
    %108 = arith.index_cast %0 : i32 to index
    %c8_76 = arith.constant 8 : index
    %c0_77 = arith.constant 0 : index
    %c0_78 = arith.constant 0 : index
    %109 = vector.load %arg6[%108, %c8_76, %c0_77, %c0_78] : memref<2x24x16x128xbf16, #tpu.memory_space<vmem>>, vector<1x8x16x128xbf16>
    %110 = vector.shape_cast %109 : vector<1x8x16x128xbf16> to vector<8x16x128xbf16>
    %111 = vector.shape_cast %110 : vector<8x16x128xbf16> to vector<128x128xbf16>
    %c1_79 = arith.constant 1 : index
    %c1_80 = arith.constant 1 : index
    %c0_81 = arith.constant 0 : index
    %c0_82 = arith.constant 0 : index
    %112 = vector.load %arg3[%c1_79, %c1_80, %c0_81, %c0_82] : memref<4x3x128x384xbf16, #tpu.memory_space<vmem>>, vector<1x1x128x384xbf16>
    %113 = vector.shape_cast %112 : vector<1x1x128x384xbf16> to vector<128x384xbf16>
    %cst_83 = arith.constant dense<0.000000e+00> : vector<128x384xf32>
    %114 = tpu.matmul %111, %113, %cst_83 {dimension_numbers = #tpu.dot_dimension_numbers<[1], [0], [0], [1], [0, 0, 1, 1], [], []>} : vector<128x128xbf16>, vector<128x384xbf16>, vector<128x384xf32> -> vector<128x384xf32>
    %115 = vector.shape_cast %114 : vector<128x384xf32> to vector<8x16x384xf32>
    %116 = vector.extract_strided_slice %115 {offsets = [0, 0, 128], sizes = [8, 16, 128], strides = [1, 1, 1]} : vector<8x16x384xf32> to vector<8x16x128xf32>
    %cst_84 = arith.constant 0.000000e+00 : f32
    %117 = vector.broadcast %cst_84 : f32 to vector<8x4x128xf32>
    %118 = vector.extract_strided_slice %115 {offsets = [0, 0, 0], sizes = [8, 12, 128], strides = [1, 1, 1]} : vector<8x16x384xf32> to vector<8x12x128xf32>
    %119 = tpu.concatenate %117, %118 in 1 : vector<8x4x128xf32>, vector<8x12x128xf32> -> vector<8x16x128xf32>
    %120 = arith.addf %116, %119 : vector<8x16x128xf32>
    %121 = vector.extract_strided_slice %115 {offsets = [0, 4, 256], sizes = [8, 12, 128], strides = [1, 1, 1]} : vector<8x16x384xf32> to vector<8x12x128xf32>
    %122 = tpu.concatenate %121, %117 in 1 : vector<8x12x128xf32>, vector<8x4x128xf32> -> vector<8x16x128xf32>
    %123 = arith.addf %120, %122 : vector<8x16x128xf32>
    %c0_85 = arith.constant 0 : index
    %c0_86 = arith.constant 0 : index
    %c0_87 = arith.constant 0 : index
    %c0_88 = arith.constant 0 : index
    %124 = vector.load %arg5[%c0_85, %c0_86, %c0_87, %c0_88] : memref<1x8x16x128xf32, #tpu.memory_space<vmem>>, vector<1x8x16x128xf32>
    %125 = vector.shape_cast %124 : vector<1x8x16x128xf32> to vector<8x16x128xf32>
    %126 = arith.addf %125, %123 : vector<8x16x128xf32>
    %c0_89 = arith.constant 0 : index
    %c0_90 = arith.constant 0 : index
    %c0_91 = arith.constant 0 : index
    %c0_92 = arith.constant 0 : index
    %127 = vector.load %arg5[%c0_89, %c0_90, %c0_91, %c0_92] : memref<1x8x16x128xf32, #tpu.memory_space<vmem>>, vector<1x8x16x128xf32>
    %128 = vector.shape_cast %127 : vector<1x8x16x128xf32> to vector<8x16x128xf32>
    %129 = vector.shape_cast %126 : vector<8x16x128xf32> to vector<1x8x16x128xf32>
    tpu.vector_store %arg5[%c0_89, %c0_90, %c0_91, %c0_92], %129 {strides = array<i32>} : memref<1x8x16x128xf32, #tpu.memory_space<vmem>>, vector<1x8x16x128xf32>,
    %130 = arith.index_cast %0 : i32 to index
    %c12 = arith.constant 12 : index
    %c0_93 = arith.constant 0 : index
    %c0_94 = arith.constant 0 : index
    %131 = vector.load %arg6[%130, %c12, %c0_93, %c0_94] : memref<2x24x16x128xbf16, #tpu.memory_space<vmem>>, vector<1x8x16x128xbf16>
    %132 = vector.shape_cast %131 : vector<1x8x16x128xbf16> to vector<8x16x128xbf16>
    %133 = vector.shape_cast %132 : vector<8x16x128xbf16> to vector<128x128xbf16>
    %c1_95 = arith.constant 1 : index
    %c2_96 = arith.constant 2 : index
    %c0_97 = arith.constant 0 : index
    %c0_98 = arith.constant 0 : index
    %134 = vector.load %arg3[%c1_95, %c2_96, %c0_97, %c0_98] : memref<4x3x128x384xbf16, #tpu.memory_space<vmem>>, vector<1x1x128x384xbf16>
    %135 = vector.shape_cast %134 : vector<1x1x128x384xbf16> to vector<128x384xbf16>
    %cst_99 = arith.constant dense<0.000000e+00> : vector<128x384xf32>
    %136 = tpu.matmul %133, %135, %cst_99 {dimension_numbers = #tpu.dot_dimension_numbers<[1], [0], [0], [1], [0, 0, 1, 1], [], []>} : vector<128x128xbf16>, vector<128x384xbf16>, vector<128x384xf32> -> vector<128x384xf32>
    %137 = vector.shape_cast %136 : vector<128x384xf32> to vector<8x16x384xf32>
    %138 = vector.extract_strided_slice %137 {offsets = [0, 0, 128], sizes = [8, 16, 128], strides = [1, 1, 1]} : vector<8x16x384xf32> to vector<8x16x128xf32>
    %cst_100 = arith.constant 0.000000e+00 : f32
    %139 = vector.broadcast %cst_100 : f32 to vector<8x4x128xf32>
    %140 = vector.extract_strided_slice %137 {offsets = [0, 0, 0], sizes = [8, 12, 128], strides = [1, 1, 1]} : vector<8x16x384xf32> to vector<8x12x128xf32>
    %141 = tpu.concatenate %139, %140 in 1 : vector<8x4x128xf32>, vector<8x12x128xf32> -> vector<8x16x128xf32>
    %142 = arith.addf %138, %141 : vector<8x16x128xf32>
    %143 = vector.extract_strided_slice %137 {offsets = [0, 4, 256], sizes = [8, 12, 128], strides = [1, 1, 1]} : vector<8x16x384xf32> to vector<8x12x128xf32>
    %144 = tpu.concatenate %143, %139 in 1 : vector<8x12x128xf32>, vector<8x4x128xf32> -> vector<8x16x128xf32>
    %145 = arith.addf %142, %144 : vector<8x16x128xf32>
    %c0_101 = arith.constant 0 : index
    %c0_102 = arith.constant 0 : index
    %c0_103 = arith.constant 0 : index
    %c0_104 = arith.constant 0 : index
    %146 = vector.load %arg5[%c0_101, %c0_102, %c0_103, %c0_104] : memref<1x8x16x128xf32, #tpu.memory_space<vmem>>, vector<1x8x16x128xf32>
    %147 = vector.shape_cast %146 : vector<1x8x16x128xf32> to vector<8x16x128xf32>
    %148 = arith.addf %147, %145 : vector<8x16x128xf32>
    %c0_105 = arith.constant 0 : index
    %c0_106 = arith.constant 0 : index
    %c0_107 = arith.constant 0 : index
    %c0_108 = arith.constant 0 : index
    %149 = vector.load %arg5[%c0_105, %c0_106, %c0_107, %c0_108] : memref<1x8x16x128xf32, #tpu.memory_space<vmem>>, vector<1x8x16x128xf32>
    %150 = vector.shape_cast %149 : vector<1x8x16x128xf32> to vector<8x16x128xf32>
    %151 = vector.shape_cast %148 : vector<8x16x128xf32> to vector<1x8x16x128xf32>
    tpu.vector_store %arg5[%c0_105, %c0_106, %c0_107, %c0_108], %151 {strides = array<i32>} : memref<1x8x16x128xf32, #tpu.memory_space<vmem>>, vector<1x8x16x128xf32>,
    %152 = arith.index_cast %0 : i32 to index
    %c2_109 = arith.constant 2 : index
    %c0_110 = arith.constant 0 : index
    %c0_111 = arith.constant 0 : index
    %153 = vector.load %arg6[%152, %c2_109, %c0_110, %c0_111] : memref<2x24x16x128xbf16, #tpu.memory_space<vmem>>, vector<1x8x16x128xbf16>
    %154 = vector.shape_cast %153 : vector<1x8x16x128xbf16> to vector<8x16x128xbf16>
    %155 = vector.shape_cast %154 : vector<8x16x128xbf16> to vector<128x128xbf16>
    %c2_112 = arith.constant 2 : index
    %c0_113 = arith.constant 0 : index
    %c0_114 = arith.constant 0 : index
    %c0_115 = arith.constant 0 : index
    %156 = vector.load %arg3[%c2_112, %c0_113, %c0_114, %c0_115] : memref<4x3x128x384xbf16, #tpu.memory_space<vmem>>, vector<1x1x128x384xbf16>
    %157 = vector.shape_cast %156 : vector<1x1x128x384xbf16> to vector<128x384xbf16>
    %cst_116 = arith.constant dense<0.000000e+00> : vector<128x384xf32>
    %158 = tpu.matmul %155, %157, %cst_116 {dimension_numbers = #tpu.dot_dimension_numbers<[1], [0], [0], [1], [0, 0, 1, 1], [], []>} : vector<128x128xbf16>, vector<128x384xbf16>, vector<128x384xf32> -> vector<128x384xf32>
    %159 = vector.shape_cast %158 : vector<128x384xf32> to vector<8x16x384xf32>
    %160 = vector.extract_strided_slice %159 {offsets = [0, 0, 128], sizes = [8, 16, 128], strides = [1, 1, 1]} : vector<8x16x384xf32> to vector<8x16x128xf32>
    %cst_117 = arith.constant 0.000000e+00 : f32
    %161 = vector.broadcast %cst_117 : f32 to vector<8x6x128xf32>
    %162 = vector.extract_strided_slice %159 {offsets = [0, 0, 0], sizes = [8, 10, 128], strides = [1, 1, 1]} : vector<8x16x384xf32> to vector<8x10x128xf32>
    %163 = tpu.concatenate %161, %162 in 1 : vector<8x6x128xf32>, vector<8x10x128xf32> -> vector<8x16x128xf32>
    %164 = arith.addf %160, %163 : vector<8x16x128xf32>
    %165 = vector.extract_strided_slice %159 {offsets = [0, 6, 256], sizes = [8, 10, 128], strides = [1, 1, 1]} : vector<8x16x384xf32> to vector<8x10x128xf32>
    %166 = tpu.concatenate %165, %161 in 1 : vector<8x10x128xf32>, vector<8x6x128xf32> -> vector<8x16x128xf32>
    %167 = arith.addf %164, %166 : vector<8x16x128xf32>
    %c0_118 = arith.constant 0 : index
    %c0_119 = arith.constant 0 : index
    %c0_120 = arith.constant 0 : index
    %c0_121 = arith.constant 0 : index
    %168 = vector.load %arg5[%c0_118, %c0_119, %c0_120, %c0_121] : memref<1x8x16x128xf32, #tpu.memory_space<vmem>>, vector<1x8x16x128xf32>
    %169 = vector.shape_cast %168 : vector<1x8x16x128xf32> to vector<8x16x128xf32>
    %170 = arith.addf %169, %167 : vector<8x16x128xf32>
    %c0_122 = arith.constant 0 : index
    %c0_123 = arith.constant 0 : index
    %c0_124 = arith.constant 0 : index
    %c0_125 = arith.constant 0 : index
    %171 = vector.load %arg5[%c0_122, %c0_123, %c0_124, %c0_125] : memref<1x8x16x128xf32, #tpu.memory_space<vmem>>, vector<1x8x16x128xf32>
    %172 = vector.shape_cast %171 : vector<1x8x16x128xf32> to vector<8x16x128xf32>
    %173 = vector.shape_cast %170 : vector<8x16x128xf32> to vector<1x8x16x128xf32>
    tpu.vector_store %arg5[%c0_122, %c0_123, %c0_124, %c0_125], %173 {strides = array<i32>} : memref<1x8x16x128xf32, #tpu.memory_space<vmem>>, vector<1x8x16x128xf32>,
    %174 = arith.index_cast %0 : i32 to index
    %c8_126 = arith.constant 8 : index
    %c0_127 = arith.constant 0 : index
    %c0_128 = arith.constant 0 : index
    %175 = vector.load %arg6[%174, %c8_126, %c0_127, %c0_128] : memref<2x24x16x128xbf16, #tpu.memory_space<vmem>>, vector<1x8x16x128xbf16>
    %176 = vector.shape_cast %175 : vector<1x8x16x128xbf16> to vector<8x16x128xbf16>
    %177 = vector.shape_cast %176 : vector<8x16x128xbf16> to vector<128x128xbf16>
    %c2_129 = arith.constant 2 : index
    %c1_130 = arith.constant 1 : index
    %c0_131 = arith.constant 0 : index
    %c0_132 = arith.constant 0 : index
    %178 = vector.load %arg3[%c2_129, %c1_130, %c0_131, %c0_132] : memref<4x3x128x384xbf16, #tpu.memory_space<vmem>>, vector<1x1x128x384xbf16>
    %179 = vector.shape_cast %178 : vector<1x1x128x384xbf16> to vector<128x384xbf16>
    %cst_133 = arith.constant dense<0.000000e+00> : vector<128x384xf32>
    %180 = tpu.matmul %177, %179, %cst_133 {dimension_numbers = #tpu.dot_dimension_numbers<[1], [0], [0], [1], [0, 0, 1, 1], [], []>} : vector<128x128xbf16>, vector<128x384xbf16>, vector<128x384xf32> -> vector<128x384xf32>
    %181 = vector.shape_cast %180 : vector<128x384xf32> to vector<8x16x384xf32>
    %182 = vector.extract_strided_slice %181 {offsets = [0, 0, 128], sizes = [8, 16, 128], strides = [1, 1, 1]} : vector<8x16x384xf32> to vector<8x16x128xf32>
    %cst_134 = arith.constant 0.000000e+00 : f32
    %183 = vector.broadcast %cst_134 : f32 to vector<8x6x128xf32>
    %184 = vector.extract_strided_slice %181 {offsets = [0, 0, 0], sizes = [8, 10, 128], strides = [1, 1, 1]} : vector<8x16x384xf32> to vector<8x10x128xf32>
    %185 = tpu.concatenate %183, %184 in 1 : vector<8x6x128xf32>, vector<8x10x128xf32> -> vector<8x16x128xf32>
    %186 = arith.addf %182, %185 : vector<8x16x128xf32>
    %187 = vector.extract_strided_slice %181 {offsets = [0, 6, 256], sizes = [8, 10, 128], strides = [1, 1, 1]} : vector<8x16x384xf32> to vector<8x10x128xf32>
    %188 = tpu.concatenate %187, %183 in 1 : vector<8x10x128xf32>, vector<8x6x128xf32> -> vector<8x16x128xf32>
    %189 = arith.addf %186, %188 : vector<8x16x128xf32>
    %c0_135 = arith.constant 0 : index
    %c0_136 = arith.constant 0 : index
    %c0_137 = arith.constant 0 : index
    %c0_138 = arith.constant 0 : index
    %190 = vector.load %arg5[%c0_135, %c0_136, %c0_137, %c0_138] : memref<1x8x16x128xf32, #tpu.memory_space<vmem>>, vector<1x8x16x128xf32>
    %191 = vector.shape_cast %190 : vector<1x8x16x128xf32> to vector<8x16x128xf32>
    %192 = arith.addf %191, %189 : vector<8x16x128xf32>
    %c0_139 = arith.constant 0 : index
    %c0_140 = arith.constant 0 : index
    %c0_141 = arith.constant 0 : index
    %c0_142 = arith.constant 0 : index
    %193 = vector.load %arg5[%c0_139, %c0_140, %c0_141, %c0_142] : memref<1x8x16x128xf32, #tpu.memory_space<vmem>>, vector<1x8x16x128xf32>
    %194 = vector.shape_cast %193 : vector<1x8x16x128xf32> to vector<8x16x128xf32>
    %195 = vector.shape_cast %192 : vector<8x16x128xf32> to vector<1x8x16x128xf32>
    tpu.vector_store %arg5[%c0_139, %c0_140, %c0_141, %c0_142], %195 {strides = array<i32>} : memref<1x8x16x128xf32, #tpu.memory_space<vmem>>, vector<1x8x16x128xf32>,
    %196 = arith.index_cast %0 : i32 to index
    %c14 = arith.constant 14 : index
    %c0_143 = arith.constant 0 : index
    %c0_144 = arith.constant 0 : index
    %197 = vector.load %arg6[%196, %c14, %c0_143, %c0_144] : memref<2x24x16x128xbf16, #tpu.memory_space<vmem>>, vector<1x8x16x128xbf16>
    %198 = vector.shape_cast %197 : vector<1x8x16x128xbf16> to vector<8x16x128xbf16>
    %199 = vector.shape_cast %198 : vector<8x16x128xbf16> to vector<128x128xbf16>
    %c2_145 = arith.constant 2 : index
    %c2_146 = arith.constant 2 : index
    %c0_147 = arith.constant 0 : index
    %c0_148 = arith.constant 0 : index
    %200 = vector.load %arg3[%c2_145, %c2_146, %c0_147, %c0_148] : memref<4x3x128x384xbf16, #tpu.memory_space<vmem>>, vector<1x1x128x384xbf16>
    %201 = vector.shape_cast %200 : vector<1x1x128x384xbf16> to vector<128x384xbf16>
    %cst_149 = arith.constant dense<0.000000e+00> : vector<128x384xf32>
    %202 = tpu.matmul %199, %201, %cst_149 {dimension_numbers = #tpu.dot_dimension_numbers<[1], [0], [0], [1], [0, 0, 1, 1], [], []>} : vector<128x128xbf16>, vector<128x384xbf16>, vector<128x384xf32> -> vector<128x384xf32>
    %203 = vector.shape_cast %202 : vector<128x384xf32> to vector<8x16x384xf32>
    %204 = vector.extract_strided_slice %203 {offsets = [0, 0, 128], sizes = [8, 16, 128], strides = [1, 1, 1]} : vector<8x16x384xf32> to vector<8x16x128xf32>
    %cst_150 = arith.constant 0.000000e+00 : f32
    %205 = vector.broadcast %cst_150 : f32 to vector<8x6x128xf32>
    %206 = vector.extract_strided_slice %203 {offsets = [0, 0, 0], sizes = [8, 10, 128], strides = [1, 1, 1]} : vector<8x16x384xf32> to vector<8x10x128xf32>
    %207 = tpu.concatenate %205, %206 in 1 : vector<8x6x128xf32>, vector<8x10x128xf32> -> vector<8x16x128xf32>
    %208 = arith.addf %204, %207 : vector<8x16x128xf32>
    %209 = vector.extract_strided_slice %203 {offsets = [0, 6, 256], sizes = [8, 10, 128], strides = [1, 1, 1]} : vector<8x16x384xf32> to vector<8x10x128xf32>
    %210 = tpu.concatenate %209, %205 in 1 : vector<8x10x128xf32>, vector<8x6x128xf32> -> vector<8x16x128xf32>
    %211 = arith.addf %208, %210 : vector<8x16x128xf32>
    %c0_151 = arith.constant 0 : index
    %c0_152 = arith.constant 0 : index
    %c0_153 = arith.constant 0 : index
    %c0_154 = arith.constant 0 : index
    %212 = vector.load %arg5[%c0_151, %c0_152, %c0_153, %c0_154] : memref<1x8x16x128xf32, #tpu.memory_space<vmem>>, vector<1x8x16x128xf32>
    %213 = vector.shape_cast %212 : vector<1x8x16x128xf32> to vector<8x16x128xf32>
    %214 = arith.addf %213, %211 : vector<8x16x128xf32>
    %c0_155 = arith.constant 0 : index
    %c0_156 = arith.constant 0 : index
    %c0_157 = arith.constant 0 : index
    %c0_158 = arith.constant 0 : index
    %215 = vector.load %arg5[%c0_155, %c0_156, %c0_157, %c0_158] : memref<1x8x16x128xf32, #tpu.memory_space<vmem>>, vector<1x8x16x128xf32>
    %216 = vector.shape_cast %215 : vector<1x8x16x128xf32> to vector<8x16x128xf32>
    %217 = vector.shape_cast %214 : vector<8x16x128xf32> to vector<1x8x16x128xf32>
    tpu.vector_store %arg5[%c0_155, %c0_156, %c0_157, %c0_158], %217 {strides = array<i32>} : memref<1x8x16x128xf32, #tpu.memory_space<vmem>>, vector<1x8x16x128xf32>,
    %218 = arith.index_cast %0 : i32 to index
    %c0_159 = arith.constant 0 : index
    %c0_160 = arith.constant 0 : index
    %c0_161 = arith.constant 0 : index
    %219 = vector.load %arg6[%218, %c0_159, %c0_160, %c0_161] : memref<2x24x16x128xbf16, #tpu.memory_space<vmem>>, vector<1x8x16x128xbf16>
    %220 = vector.shape_cast %219 : vector<1x8x16x128xbf16> to vector<8x16x128xbf16>
    %221 = vector.shape_cast %220 : vector<8x16x128xbf16> to vector<128x128xbf16>
    %c3 = arith.constant 3 : index
    %c0_162 = arith.constant 0 : index
    %c0_163 = arith.constant 0 : index
    %c0_164 = arith.constant 0 : index
    %222 = vector.load %arg3[%c3, %c0_162, %c0_163, %c0_164] : memref<4x3x128x384xbf16, #tpu.memory_space<vmem>>, vector<1x1x128x384xbf16>
    %223 = vector.shape_cast %222 : vector<1x1x128x384xbf16> to vector<128x384xbf16>
    %cst_165 = arith.constant dense<0.000000e+00> : vector<128x384xf32>
    %224 = tpu.matmul %221, %223, %cst_165 {dimension_numbers = #tpu.dot_dimension_numbers<[1], [0], [0], [1], [0, 0, 1, 1], [], []>} : vector<128x128xbf16>, vector<128x384xbf16>, vector<128x384xf32> -> vector<128x384xf32>
    %225 = vector.shape_cast %224 : vector<128x384xf32> to vector<8x16x384xf32>
    %226 = vector.extract_strided_slice %225 {offsets = [0, 0, 128], sizes = [8, 16, 128], strides = [1, 1, 1]} : vector<8x16x384xf32> to vector<8x16x128xf32>
    %cst_166 = arith.constant 0.000000e+00 : f32
    %227 = vector.broadcast %cst_166 : f32 to vector<8x8x128xf32>
    %228 = vector.extract_strided_slice %225 {offsets = [0, 0, 0], sizes = [8, 8, 128], strides = [1, 1, 1]} : vector<8x16x384xf32> to vector<8x8x128xf32>
    %229 = tpu.concatenate %227, %228 in 1 : vector<8x8x128xf32>, vector<8x8x128xf32> -> vector<8x16x128xf32>
    %230 = arith.addf %226, %229 : vector<8x16x128xf32>
    %231 = vector.extract_strided_slice %225 {offsets = [0, 8, 256], sizes = [8, 8, 128], strides = [1, 1, 1]} : vector<8x16x384xf32> to vector<8x8x128xf32>
    %232 = tpu.concatenate %231, %227 in 1 : vector<8x8x128xf32>, vector<8x8x128xf32> -> vector<8x16x128xf32>
    %233 = arith.addf %230, %232 : vector<8x16x128xf32>
    %c0_167 = arith.constant 0 : index
    %c0_168 = arith.constant 0 : index
    %c0_169 = arith.constant 0 : index
    %c0_170 = arith.constant 0 : index
    %234 = vector.load %arg5[%c0_167, %c0_168, %c0_169, %c0_170] : memref<1x8x16x128xf32, #tpu.memory_space<vmem>>, vector<1x8x16x128xf32>
    %235 = vector.shape_cast %234 : vector<1x8x16x128xf32> to vector<8x16x128xf32>
    %236 = arith.addf %235, %233 : vector<8x16x128xf32>
    %c0_171 = arith.constant 0 : index
    %c0_172 = arith.constant 0 : index
    %c0_173 = arith.constant 0 : index
    %c0_174 = arith.constant 0 : index
    %237 = vector.load %arg5[%c0_171, %c0_172, %c0_173, %c0_174] : memref<1x8x16x128xf32, #tpu.memory_space<vmem>>, vector<1x8x16x128xf32>
    %238 = vector.shape_cast %237 : vector<1x8x16x128xf32> to vector<8x16x128xf32>
    %239 = vector.shape_cast %236 : vector<8x16x128xf32> to vector<1x8x16x128xf32>
    tpu.vector_store %arg5[%c0_171, %c0_172, %c0_173, %c0_174], %239 {strides = array<i32>} : memref<1x8x16x128xf32, #tpu.memory_space<vmem>>, vector<1x8x16x128xf32>,
    %240 = arith.index_cast %0 : i32 to index
    %c8_175 = arith.constant 8 : index
    %c0_176 = arith.constant 0 : index
    %c0_177 = arith.constant 0 : index
    %241 = vector.load %arg6[%240, %c8_175, %c0_176, %c0_177] : memref<2x24x16x128xbf16, #tpu.memory_space<vmem>>, vector<1x8x16x128xbf16>
    %242 = vector.shape_cast %241 : vector<1x8x16x128xbf16> to vector<8x16x128xbf16>
    %243 = vector.shape_cast %242 : vector<8x16x128xbf16> to vector<128x128xbf16>
    %c3_178 = arith.constant 3 : index
    %c1_179 = arith.constant 1 : index
    %c0_180 = arith.constant 0 : index
    %c0_181 = arith.constant 0 : index
    %244 = vector.load %arg3[%c3_178, %c1_179, %c0_180, %c0_181] : memref<4x3x128x384xbf16, #tpu.memory_space<vmem>>, vector<1x1x128x384xbf16>
    %245 = vector.shape_cast %244 : vector<1x1x128x384xbf16> to vector<128x384xbf16>
    %cst_182 = arith.constant dense<0.000000e+00> : vector<128x384xf32>
    %246 = tpu.matmul %243, %245, %cst_182 {dimension_numbers = #tpu.dot_dimension_numbers<[1], [0], [0], [1], [0, 0, 1, 1], [], []>} : vector<128x128xbf16>, vector<128x384xbf16>, vector<128x384xf32> -> vector<128x384xf32>
    %247 = vector.shape_cast %246 : vector<128x384xf32> to vector<8x16x384xf32>
    %248 = vector.extract_strided_slice %247 {offsets = [0, 0, 128], sizes = [8, 16, 128], strides = [1, 1, 1]} : vector<8x16x384xf32> to vector<8x16x128xf32>
    %cst_183 = arith.constant 0.000000e+00 : f32
    %249 = vector.broadcast %cst_183 : f32 to vector<8x8x128xf32>
    %250 = vector.extract_strided_slice %247 {offsets = [0, 0, 0], sizes = [8, 8, 128], strides = [1, 1, 1]} : vector<8x16x384xf32> to vector<8x8x128xf32>
    %251 = tpu.concatenate %249, %250 in 1 : vector<8x8x128xf32>, vector<8x8x128xf32> -> vector<8x16x128xf32>
    %252 = arith.addf %248, %251 : vector<8x16x128xf32>
    %253 = vector.extract_strided_slice %247 {offsets = [0, 8, 256], sizes = [8, 8, 128], strides = [1, 1, 1]} : vector<8x16x384xf32> to vector<8x8x128xf32>
    %254 = tpu.concatenate %253, %249 in 1 : vector<8x8x128xf32>, vector<8x8x128xf32> -> vector<8x16x128xf32>
    %255 = arith.addf %252, %254 : vector<8x16x128xf32>
    %c0_184 = arith.constant 0 : index
    %c0_185 = arith.constant 0 : index
    %c0_186 = arith.constant 0 : index
    %c0_187 = arith.constant 0 : index
    %256 = vector.load %arg5[%c0_184, %c0_185, %c0_186, %c0_187] : memref<1x8x16x128xf32, #tpu.memory_space<vmem>>, vector<1x8x16x128xf32>
    %257 = vector.shape_cast %256 : vector<1x8x16x128xf32> to vector<8x16x128xf32>
    %258 = arith.addf %257, %255 : vector<8x16x128xf32>
    %c0_188 = arith.constant 0 : index
    %c0_189 = arith.constant 0 : index
    %c0_190 = arith.constant 0 : index
    %c0_191 = arith.constant 0 : index
    %259 = vector.load %arg5[%c0_188, %c0_189, %c0_190, %c0_191] : memref<1x8x16x128xf32, #tpu.memory_space<vmem>>, vector<1x8x16x128xf32>
    %260 = vector.shape_cast %259 : vector<1x8x16x128xf32> to vector<8x16x128xf32>
    %261 = vector.shape_cast %258 : vector<8x16x128xf32> to vector<1x8x16x128xf32>
    tpu.vector_store %arg5[%c0_188, %c0_189, %c0_190, %c0_191], %261 {strides = array<i32>} : memref<1x8x16x128xf32, #tpu.memory_space<vmem>>, vector<1x8x16x128xf32>,
    %262 = arith.index_cast %0 : i32 to index
    %c16 = arith.constant 16 : index
    %c0_192 = arith.constant 0 : index
    %c0_193 = arith.constant 0 : index
    %263 = vector.load %arg6[%262, %c16, %c0_192, %c0_193] : memref<2x24x16x128xbf16, #tpu.memory_space<vmem>>, vector<1x8x16x128xbf16>
    %264 = vector.shape_cast %263 : vector<1x8x16x128xbf16> to vector<8x16x128xbf16>
    %265 = vector.shape_cast %264 : vector<8x16x128xbf16> to vector<128x128xbf16>
    %c3_194 = arith.constant 3 : index
    %c2_195 = arith.constant 2 : index
    %c0_196 = arith.constant 0 : index
    %c0_197 = arith.constant 0 : index
    %266 = vector.load %arg3[%c3_194, %c2_195, %c0_196, %c0_197] : memref<4x3x128x384xbf16, #tpu.memory_space<vmem>>, vector<1x1x128x384xbf16>
    %267 = vector.shape_cast %266 : vector<1x1x128x384xbf16> to vector<128x384xbf16>
    %cst_198 = arith.constant dense<0.000000e+00> : vector<128x384xf32>
    %268 = tpu.matmul %265, %267, %cst_198 {dimension_numbers = #tpu.dot_dimension_numbers<[1], [0], [0], [1], [0, 0, 1, 1], [], []>} : vector<128x128xbf16>, vector<128x384xbf16>, vector<128x384xf32> -> vector<128x384xf32>
    %269 = vector.shape_cast %268 : vector<128x384xf32> to vector<8x16x384xf32>
    %270 = vector.extract_strided_slice %269 {offsets = [0, 0, 128], sizes = [8, 16, 128], strides = [1, 1, 1]} : vector<8x16x384xf32> to vector<8x16x128xf32>
    %cst_199 = arith.constant 0.000000e+00 : f32
    %271 = vector.broadcast %cst_199 : f32 to vector<8x8x128xf32>
    %272 = vector.extract_strided_slice %269 {offsets = [0, 0, 0], sizes = [8, 8, 128], strides = [1, 1, 1]} : vector<8x16x384xf32> to vector<8x8x128xf32>
    %273 = tpu.concatenate %271, %272 in 1 : vector<8x8x128xf32>, vector<8x8x128xf32> -> vector<8x16x128xf32>
    %274 = arith.addf %270, %273 : vector<8x16x128xf32>
    %275 = vector.extract_strided_slice %269 {offsets = [0, 8, 256], sizes = [8, 8, 128], strides = [1, 1, 1]} : vector<8x16x384xf32> to vector<8x8x128xf32>
    %276 = tpu.concatenate %275, %271 in 1 : vector<8x8x128xf32>, vector<8x8x128xf32> -> vector<8x16x128xf32>
    %277 = arith.addf %274, %276 : vector<8x16x128xf32>
    %c0_200 = arith.constant 0 : index
    %c0_201 = arith.constant 0 : index
    %c0_202 = arith.constant 0 : index
    %c0_203 = arith.constant 0 : index
    %278 = vector.load %arg5[%c0_200, %c0_201, %c0_202, %c0_203] : memref<1x8x16x128xf32, #tpu.memory_space<vmem>>, vector<1x8x16x128xf32>
    %279 = vector.shape_cast %278 : vector<1x8x16x128xf32> to vector<8x16x128xf32>
    %280 = arith.addf %279, %277 : vector<8x16x128xf32>
    %c0_204 = arith.constant 0 : index
    %c0_205 = arith.constant 0 : index
    %c0_206 = arith.constant 0 : index
    %c0_207 = arith.constant 0 : index
    %281 = vector.load %arg5[%c0_204, %c0_205, %c0_206, %c0_207] : memref<1x8x16x128xf32, #tpu.memory_space<vmem>>, vector<1x8x16x128xf32>
    %282 = vector.shape_cast %281 : vector<1x8x16x128xf32> to vector<8x16x128xf32>
    %283 = vector.shape_cast %280 : vector<8x16x128xf32> to vector<1x8x16x128xf32>
    tpu.vector_store %arg5[%c0_204, %c0_205, %c0_206, %c0_207], %283 {strides = array<i32>} : memref<1x8x16x128xf32, #tpu.memory_space<vmem>>, vector<1x8x16x128xf32>,
    return
  }
  func.func @transform_1(%arg0: i32, %arg1: i32) -> (i32, i32, i32, i32) {
    %c0_i32 = arith.constant 0 : i32
    %c0_i32_0 = arith.constant 0 : i32
    %c0_i32_1 = arith.constant 0 : i32
    %c0_i32_2 = arith.constant 0 : i32
    %c0_i32_3 = arith.constant 0 : i32
    return %c0_i32, %c0_i32_0, %c0_i32_1, %c0_i32_2 : i32, i32, i32, i32
  }
  func.func @transform_2(%arg0: i32, %arg1: i32) -> (i32, i32, i32) {
    %c0_i32 = arith.constant 0 : i32
    %c0_i32_0 = arith.constant 0 : i32
    %c0_i32_1 = arith.constant 0 : i32
    %c0_i32_2 = arith.constant 0 : i32
    return %c0_i32, %c0_i32_0, %c0_i32_1 : i32, i32, i32
  }
  func.func @transform_3(%arg0: i32, %arg1: i32) -> (i32, i32, i32, i32) {
    %c0_i32 = arith.constant 0 : i32
    %c0_i32_0 = arith.constant 0 : i32
    %c0_i32_1 = arith.constant 0 : i32
    return %arg0, %arg1, %c0_i32, %c0_i32_0 : i32, i32, i32, i32
  }
}

</mosaic_0001>

<bundles_post_ra>
// kernel: tpu_custom_call.1
= control target key start
LH: loop header
LB: loop body
LE: loop exit
PB: predicated region body
PF: predicated region fallthrough
CT: control target
= control target key end

     0   :  { %s11618_s0 = inlined_call_operand.hbm [shape: bf16[2,32,16,128], index: 0, kind: input, shape index: {}]   ;;  %s11619_s1 = inlined_call_operand.hbm [shape: bf16[4,3,128,384], index: 1, kind: input, shape index: {}]   ;;  %s11620_s2 = inlined_call_operand.hbm [shape: f32[1,1,128], index: 2, kind: input, shape index: {}]   ;;  %s11621_s3 = inlined_call_operand.hbm [shape: f32[2,16,16,128], index: 3, kind: output, shape index: {}]  }
   0x1   :  { %11627 = sst [smem:[#allocation21_spill]] %s11619_s1 }
   0x2   :  { %11628 = sst [smem:[#allocation22_spill]] %s11620_s2 }
   0x3   :  { %8 = vsyncpa [#allocation5], 0 }
   0x4   :  { %9 = vsyncpa [#allocation8], 0 }
   0x5   :  { %10 = vsyncpa [#allocation6], 0 }
   0x6   :  { %12 = vsyncpa [#allocation6 + $0x1], 0  ;;  %s9730_s12 = smov 0   ;;  %s9732_s13 = smov 0  }
   0x7   :  { %s9734_s14 = smov 0   ;;  %s9736_s15 = smov 0  }
   0x8   :  { %s9738_s16 = smov 0   ;;  %s9740_s17 = smov 0  }
   0x9   :  { %s9742_s18 = smov 0   ;;  %s9744_s19 = smov 0  }
   0xa LB: > { %s7730_s20 = sadd.s32 4294967295, %s9699_s19   ;;  %s7731_s21 = sadd.s32 4294967294, %s9699_s19   ;;  %s9699_s19 = sphi %s9744_s19, %s18_s19   ;;  %s9695_s18 = sphi %s9742_s18, %s11650_s18   ;;  %s9691_s17 = sphi %s9740_s17, %s11649_s17   ;;  %s9687_s16 = sphi %s9738_s16, %s11648_s16   ;;  %s9683_s15 = sphi %s9736_s15, %s11647_s15   ;;  %s9679_s14 = sphi %s9734_s14, %s11646_s14   ;;  %s9675_s13 = sphi %s9732_s13, %s11645_s13   ;;  %s9671_s12 = sphi %s9730_s12, %s11644_s12  }
   0xb   : > { %s27_s22 = sadd.s32 1, %s9691_s17  ;;  %s30_s23 = sadd.s32 1, %s9695_s18 }
   0xc   : > { %p28_p0 = scmp.ge.s32.totalorder %s27_s22, 2  ;;  %s81_s24 = sadd.s32 1, %s9679_s14 }
   0xd   : > { %p91_p1 = scmp.ne.s32.totalorder %s9679_s14, %s9675_s13  ;;  %p92_p2 = scmp.eq.s32.totalorder %s7730_s20, 3 }
   0xe   : > { %s11652_s22 = smov (%p28_p0, %s27_s22), 0  ;;  %s11654_s23 = smov (!%p28_p0, %s30_s23), %s9695_s18 }
   0xf   : > { %s77_s25 = ssub.s32 %s9691_s17, %s11652_s22  ;;  %p9782_p3 = por %p92_p2, %p91_p1 }
  0x10   : > { %p32_p4 = scmp.ge.s32.totalorder %s11654_s23, 2  ;;  %p97_p5 = scmp.ne.s32.totalorder %s9675_s13, %s9671_s12 }
  0x11   : > { %p98_p6 = scmp.eq.s32.totalorder %s7731_s21, 3  ;;  %p7732_p7 = scmp.ge.s32.totalorder %s9699_s19, 1 }
  0x12   : > { %s11656_s23 = smov (%p32_p4, %s11654_s23), 0  ;;  %p105_p9 = scmp.lt.s32.totalorder %s9699_s19, 5 }
  0x13   : > { %11630 = sst [smem:[#allocation20_spill]] %s11656_s23  ;;  %p9791_p8 = por %p98_p6, %p97_p5 }
  0x14   : > { %s76_s28 = ssub.s32 %s9695_s18, %s11656_s23  ;;  %p9798_p10 = pnand %p7732_p7, %p105_p9 }
  0x15   : > { %s11631_s27 = scalar_select %p9791_p8, 1, 0 }
  0x16   : > { %s78_s29 = sor.u32 %s77_s25, %s76_s28  ;;  %p9802_p12 = scmp.eq.s32.totalorder %s7730_s20, 0 }
  0x17   : > { %p79_p11 = scmp.eq.s32.totalorder %s78_s29, 0  ;;  %p8924_p13 = pneg %p9798_p10 }
  0x18   : > { %s9701_s6 = smov [#allocation4]  }
  0x19   : > { %s9809_s5 = scalar_select %p79_p11, %s9679_s14, %s81_s24  }
  0x1a   : > { %s117_s7 = sshll.u32 %s9701_s6, 4  ;;  %p9813_p0 = pnand %p9802_p12, %p8924_p13  ;;  %s118_s7 = int_to_ptr.vmem [resolvable:$true] %s117_s7 }
  0x1b   : > { %s9503_s9 = scalar_lea.vmem %s118_s7, 36864  ;;  %p9511_p6 = scmp.lt.s32.totalorder %s118_s7, %s118_s7 }
  0x1c   : > { %p9494_p1 = pneg %p9813_p0  ;;  %p9504_p2 = scmp.ne.s32.totalorder %s118_s7, %s9503_s9 }
  0x1d   : > { %p9512_p7 = scmp.lt.s32.totalorder %s9503_s9, %s9503_s9 }
  0x1e   : > { %p9506_p4 = pnand %p9504_p2, %p9494_p1 }
  0x1f   : > { %p9513_p9 = por %p9512_p7, %p9511_p6 }
  0x20   : > { %p9507_p5 = pneg %p9506_p4 }
  0x22   : > { %p9514_p11 = pnand %p9513_p9, %p9507_p5 }
  0x24   : > { %9517 = shalt.err (!%p9514_p11)
}
  0x25   : > { %s9702_s10 = smov 192   ;;  %s9703_s11 = smov 12  }
  0x26   : > { %s11635_s1 = sld [smem:[#allocation21_spill]]  ;;  %s9704_s24 = smov [#allocation7]  }
  0x27   : > { %s131_s25 = sshll.u32 %s9704_s24, 4  ;;  %s132_s25 = int_to_ptr.vmem [resolvable:$true] %s131_s25 }
  0x28   : > { %s9529_s28 = scalar_lea.vmem %s132_s25, 16  ;;  %s9536_s29 = scalar_lea.vmem %s132_s25, 32 }
  0x29   : > { %p9530_p13 = scmp.ne.s32.totalorder %s132_s25, %s9529_s28  ;;  %p9537_p5 = scmp.lt.s32.totalorder %s132_s25, %s132_s25 }
  0x2a   : > { %p9538_p6 = scmp.lt.s32.totalorder %s9536_s29, %s9529_s28 }
  0x2b   : > { %p9532_p2 = pnand %p9530_p13, %p9494_p1 }
  0x2c   : > { %8927 = dma.hbm_to_vmem [thread:$0]  (!%p9813_p0), %s11635_s1, 36864, %s118_s7, [#allocation5], %s9702_s10, %s9702_s10, %s9703_s11  }
  0x2d   : > { %p9533_p4 = pneg %p9532_p2  ;;  %p9539_p7 = por %p9538_p6, %p9537_p5 }
  0x2f   : > { %p9540_p9 = pnand %p9539_p7, %p9533_p4 }
  0x31   : > { %9543 = shalt.err (!%p9540_p9)
}
  0x32   : > { %s11636_s2 = sld [smem:[#allocation22_spill]] }
  0x34   : > { %144 = sbr.rel (%p9798_p10) target bundleno = 930 (0x3a2), region = 28 }
  0x38   : > { %8930 = dma.hbm_to_vmem [thread:$0]  (!%p9813_p0), %s11636_s2, 16, %s132_s25, [#allocation8]  }
  0x39   : > { %9656 = dma.done.wait (%p9802_p12), [#allocation5], 36864  }
  0x3a   : > { %9658 = vsyncadd (%p9802_p12), [#allocation5], 4294930432 }
  0x3b   : > { %9660 = dma.done.wait (%p9802_p12), [#allocation8], 16  }
  0x3c   : > { %9662 = vsyncadd (%p9802_p12), [#allocation8], 4294967280  ;;  %s11622_s30 = sand.u32 1, %s9675_s13   ;;  %s9847_s7 = sand.u32 1, %s9683_s15 }
  0x3d   : > { %s9851_s8 = sshll.u32 %s11622_s30, 7  ;;  %p8939_p10 = scmp.eq.s32.totalorder %s9683_s15, 0 }
  0x3e   : > { %s11623_s10 = sshll.u32 %s9683_s15, 4  ;;  %s7742_s4 = sshll.u32 %s9687_s16, 6 }
  0x3f   : > { %s175_s11 = sadd.s32 %s11623_s10, %s7742_s4  ;;  %s8330_s20 = smul.u32 192, %s9847_s7 }
  0x40   : > { %s7743_s21 = sshll.u32 %s175_s11, 6  ;;  %s181_s9 = scalar_lea.sflag [#allocation3], %s9847_s7 }
  0x41   : > { %s9862_s28 = scalar_lea.hbm %s11618_s0, %s7743_s21  ;;  %s9864_s29 = scalar_lea.vmem [#allocation2], %s8330_s20 }
  0x42   : > { %s189_s6 = sshll.u32 %s9864_s29, 4  ;;  %s9544_s30 = scalar_lea.hbm %s9862_s28, 3072  ;;  %s190_s6 = int_to_ptr.vmem [resolvable:$true] %s189_s6 }
  0x43   : > { %p9545_p12 = scmp.ne.s32.totalorder %s9862_s28, %s9544_s30  ;;  %s11625_s24 = scalar_lea.hbm %s11618_s0, 8192 }
  0x44   : > { %p9549_p11 = scmp.lt.s32.totalorder %s9862_s28, %s11618_s0  ;;  %p9550_p13 = scmp.lt.s32.totalorder %s11625_s24, %s9544_s30 }
  0x45   : > { %p9546_p0 = pnand %p9545_p12, %p8939_p10 }
  0x46   : > { %p9551_p2 = por %p9550_p13, %p9549_p11 }
  0x47   : > { %p9547_p1 = pneg %p9546_p0 }
  0x49   : > { %p9552_p4 = pnand %p9551_p2, %p9547_p1 }
  0x4b   : > { %9555 = shalt.err (!%p9552_p4)  }
  0x4c   : > { %s9556_s1 = scalar_lea.vmem %s190_s6, 3072  ;;  %s9705_s4 = smov [#allocation2]  }
  0x4d   : > { %p9557_p5 = scmp.ne.s32.totalorder %s190_s6, %s9556_s1  ;;  %s9560_s11 = sshll.u32 %s9705_s4, 4  ;;  %s9885_s11 = int_to_ptr.vmem [resolvable:$false] %s9560_s11 }
  0x4e   : > { %s11624_s21 = scalar_lea.vmem %s9885_s11, 6144  ;;  %p9563_p9 = scmp.lt.s32.totalorder %s190_s6, %s9885_s11 }
  0x4f   : > { %p9558_p6 = pnand %p9557_p5, %p8939_p10  ;;  %p9564_p12 = scmp.lt.s32.totalorder %s11624_s21, %s9556_s1 }
  0x51   : > { %p9559_p7 = pneg %p9558_p6  ;;  %p9565_p0 = por %p9564_p12, %p9563_p9 }
  0x53   : > { %p9566_p1 = pnand %p9565_p0, %p9559_p7 }
  0x55   : > { %9569 = shalt.err (!%p9566_p1)  }
  0x56   : > { %8919 = dma.hbm_to_vmem [thread:$0]  (%p8939_p10), %s9862_s28, 3072, %s190_s6, %s181_s9 }
  0x57   : > { %s9895_s30 = scalar_lea.vmem [#allocation9], %s9851_s8 }
  0x58   : > { %9663 = dma.done.wait %s181_s9, 3072 }
  0x59   : > { %9664 = vsyncadd %s181_s9, 4294964224  ;;  %s199_s10 = sadd.s32 1, %s9683_s15  ;;  %s204_s25 = ssub.s32 1, %s9847_s7  ;;  %v9706_v0 = vmov 0   ;;  %v9013_v1 = vld [vmem:[#allocation4 + $0xac] ss:$12 sps:$4 sm:$0xff]  }
  0x5a   : > { %509 = vmatprep.mubr.bf16.mxu0 %v9706_v0  ;;  %s8331_s1 = smul.u32 192, %s204_s25  ;;  %p9900_p11 = scmp.lt.s32.totalorder %s199_s10, 2 }
  0x5b   : > { %s7637_s6 = scalar_lea.hbm %s9862_s28, 1024  ;;  %s214_s9 = scalar_lea.sflag [#allocation3], %s204_s25 }
  0x5c   : > { %s213_s8 = scalar_lea.vmem [#allocation2], %s8331_s1  ;;  %s9596_s21 = scalar_lea.hbm %s9862_s28, 4096 }
  0x5d   : > { %s222_s4 = sshll.u32 %s213_s8, 4  ;;  %p9571_p10 = scmp.ne.s32.totalorder %s7637_s6, %s9596_s21  ;;  %s223_s4 = int_to_ptr.vmem [resolvable:$true] %s222_s4 }
  0x5e   : > { %p9575_p4 = scmp.lt.s32.totalorder %s7637_s6, %s11618_s0  ;;  %s11638_s23 = scalar_lea.hbm %s11618_s0, 8192 }
  0x5f   : > { %p9572_p13 = pnand %p9571_p10, %p9900_p11  ;;  %p9576_p5 = scmp.lt.s32.totalorder %s11638_s23, %s9596_s21 }
  0x61   : > { %p9573_p2 = pneg %p9572_p13  ;;  %p9577_p6 = por %p9576_p5, %p9575_p4 }
  0x63   : > { %p9578_p7 = pnand %p9577_p6, %p9573_p2 }
  0x65   : > { %9581 = shalt.err (!%p9578_p7)  }
  0x66   : > { %s9582_s1 = scalar_lea.vmem %s223_s4, 3072  ;;  %p9589_p1 = scmp.lt.s32.totalorder %s223_s4, %s9885_s11 }
  0x67   : > { %p9583_p9 = scmp.ne.s32.totalorder %s223_s4, %s9582_s1  ;;  %s11639_s28 = scalar_lea.vmem %s9885_s11, 6144 }
  0x68   : > { %p9590_p10 = scmp.lt.s32.totalorder %s11639_s28, %s9582_s1 }
  0x69   : > { %p9584_p12 = pnand %p9583_p9, %p9900_p11 }
  0x6a   : > { %p9591_p13 = por %p9590_p10, %p9589_p1 }
  0x6b   : > { %p9585_p0 = pneg %p9584_p12 }
  0x6d   : > { %p9592_p8 = pnand %p9591_p13, %p9585_p0 }
  0x6f   : > { %9595 = shalt.err (!%p9592_p8)  }
  0x70   : > { %8921 = dma.hbm_to_vmem [thread:$0]  (%p9900_p11), %s7637_s6, 3072, %s223_s4, %s214_s9  ;;  %v9015_v2 = vld [vmem:[#allocation4 + $0xb0] ss:$12 sps:$4 sm:$0xff]   ;;  %477 = vmatprep.subr.bf16.mxu0 %v9013_v1  ;;  %v9016_v3 = vld [vmem:[#allocation4 + $0xa8] ss:$12 sps:$4 sm:$0xff]   ;;  %vm703_vm0 = vcmask 1041408  }
  0x71   : > { %8526 = vmatprep.subr.bf16.mxu1 %v9015_v2  ;;  %v9017_v4 = vld [vmem:[#allocation4 + $0x94] ss:$12 sps:$4 sm:$0xff]   ;;  %478 = vmatpush1.bf16.msra.mxu0 %v9016_v3  ;;  %v9019_v5 = vld [vmem:[#allocation4 + $0x98] ss:$12 sps:$4 sm:$0xff]   ;;  %v9020_v6 = vld [vmem:[#allocation4 + $0x90] ss:$12 sps:$4 sm:$0xff]  }
  0x72   : > { %8527 = vmatpush3.bf16.msra.mxu1 %v9015_v2  ;;  %479 = vmatprep.subr.bf16.mxu0 %v9017_v4  ;;  %v9021_v7 = vld [vmem:[#allocation4 + $0x7c] ss:$12 sps:$4 sm:$0xff]   ;;  %v9023_v8 = vld [vmem:[#allocation4 + $0x80] ss:$12 sps:$4 sm:$0xff]   ;;  %v9024_v9 = vld [vmem:[#allocation4 + $0x78] ss:$12 sps:$4 sm:$0xff]  }
  0x73   : > { %8528 = vmatprep.subr.bf16.mxu1 %v9019_v5  ;;  %v9025_v10 = vld [vmem:[#allocation4 + $0x64] ss:$12 sps:$4 sm:$0xff]   ;;  %v9027_v11 = vld [vmem:[#allocation4 + $0x68] ss:$12 sps:$4 sm:$0xff]   ;;  %v9028_v12 = vld [vmem:[#allocation4 + $0x60] ss:$12 sps:$4 sm:$0xff]  }
  0x74   : > { %v9029_v13 = vld [vmem:[#allocation4 + $0x4c] ss:$12 sps:$4 sm:$0xff]   ;;  %v9031_v14 = vld [vmem:[#allocation4 + $0x50] ss:$12 sps:$4 sm:$0xff]   ;;  %v9032_v15 = vld [vmem:[#allocation4 + $0x48] ss:$12 sps:$4 sm:$0xff]  }
  0x75   : > { %480 = vmatpush1.bf16.msra.mxu0 %v9020_v6  ;;  %v277_v16 = vld [vmem:[#allocation4 + $0x30] sm:$0xff]  ;;  %v279_v17 = vld [vmem:[#allocation4 + $0x3c] sm:$0xff]  ;;  %v9035_v19 = vld [vmem:[#allocation4 + $0x38] ss:$12 sps:$4 sm:$0xff]   ;;  %vm784_vm1 = vcmask 1045504   ;;  %vm2643_vm2 = vcmask 1043456  }
  0x76   : > { %8529 = vmatpush3.bf16.msra.mxu1 %v9019_v5  ;;  %481 = vmatprep.subr.bf16.mxu0 %v9021_v7  ;;  %v9033_v18 = vld [vmem:[#allocation4 + $0x34] ss:$12 sps:$4 sm:$0xff]   ;;  %v7782_v21 = vcombine.low %v277_v16, %v279_v17  ;;  %v9036_v22 = vld [vmem:[#allocation4 + $0x1c] ss:$12 sps:$4 sm:$0xff]   ;;  %v9039_v24 = vld [vmem:[#allocation4 + $0x18] ss:$12 sps:$4 sm:$0xff]  }
  0x77   : > { %8530 = vmatprep.subr.bf16.mxu1 %v9023_v8  ;;  %v9044_v20 = vld [vmem:[%s9864_s29 + $0x30] sm:$0xff]   ;;  %v9038_v23 = vld [vmem:[#allocation4 + $0x20] ss:$12 sps:$4 sm:$0xff]   ;;  %v9045_v30 = vld [vmem:[%s9864_s29 + $0x38] sm:$0xff]   ;;  %s8323_s2 = sshll.u32 %s9687_s16, 5  ;;  %s11640_s23 = sshll.u32 %s9683_s15, 4 }
  0x78   : > { %8542 = vmatprep.mubr.bf16.mxu1 %v9044_v20  ;;  %v9040_v25 = vld [vmem:[#allocation4 + $0x4] ss:$12 sps:$4 sm:$0xff]   ;;  %v9042_v26 = vld [vmem:[#allocation4 + $0x8] ss:$12 sps:$4 sm:$0xff]   ;;  %v9043_v27 = vld [vmem:[#allocation4] ss:$12 sps:$4 sm:$0xff]  }
  0x79   : > { %482 = vmatpush1.bf16.msra.mxu0 %v9024_v9  ;;  %v9048_v28 = vld [vmem:[#allocation4 + $0x16c] ss:$12 sps:$4 sm:$0xff]   ;;  %v9049_v29 = vld [vmem:[#allocation4 + $0x170] ss:$12 sps:$4 sm:$0xff]   ;;  %v9046_v31 = vld [vmem:[#allocation4 + $0x168] ss:$12 sps:$4 sm:$0xff]  }
  0x7a   : > { %8531 = vmatpush3.bf16.msra.mxu1 %v9023_v8  ;;  %483 = vmatprep.subr.bf16.mxu0 %v9025_v10  ;;  %v9052_v32 = vld [vmem:[#allocation4 + $0x154] ss:$12 sps:$4 sm:$0xff]   ;;  %v9058_v34 = vld [vmem:[#allocation4 + $0x158] ss:$12 sps:$4 sm:$0xff]   ;;  %v9050_v35 = vld [vmem:[#allocation4 + $0x150] ss:$12 sps:$4 sm:$0xff]  }
  0x7b   : > { %8532 = vmatprep.subr.bf16.mxu1 %v9027_v11  ;;  %v9053_v33 = vld [vmem:[%s9864_s29 + $0x40] sm:$0xff]   ;;  %v9057_v36 = vld [vmem:[#allocation4 + $0x13c] ss:$12 sps:$4 sm:$0xff]   ;;  %v9062_v41 = vld [vmem:[%s9864_s29 + $0x50] sm:$0xff]   ;;  %s7579_s24 = sshll.u32 %s9895_s30, 4  ;;  %s11641_s25 = sand.u32 1, %s9675_s13   ;;  %s11560_s24 = int_to_ptr.vmem [resolvable:$true] %s7579_s24 }
  0x7c   : > { %v9067_v37 = vld [vmem:[#allocation4 + $0x140] ss:$12 sps:$4 sm:$0xff]   ;;  %v9055_v39 = vld [vmem:[#allocation4 + $0x138] ss:$12 sps:$4 sm:$0xff]   ;;  %v9076_v42 = vld [vmem:[#allocation4 + $0x128] ss:$12 sps:$4 sm:$0xff]  }
  0x7d   : > { %484 = vmatpush1.bf16.msra.mxu0 %v9028_v12  ;;  %v9054_v38 = vld [vmem:[%s9864_s29 + $0x48] sm:$0xff]   ;;  %v9061_v40 = vld [vmem:[#allocation4 + $0x124] ss:$12 sps:$4 sm:$0xff]   ;;  %v9063_v45 = vld [vmem:[%s9864_s29 + $0x58] sm:$0xff]   ;;  %s11567_s20 = scalar_lea.sflag [#allocation6], %s11641_s25  ;;  %s9597_s6 = scalar_lea.vmem %s11560_s24, 2048 }
  0x7e   : > { %8533 = vmatpush3.bf16.msra.mxu1 %v9027_v11  ;;  %485 = vmatprep.subr.bf16.mxu0 %v9029_v13  ;;  %v9059_v43 = vld [vmem:[#allocation4 + $0x120] ss:$12 sps:$4 sm:$0xff]   ;;  %v9064_v46 = vld [vmem:[#allocation4 + $0x108] ss:$12 sps:$4 sm:$0xff]   ;;  %v9081_v49 = vld [vmem:[#allocation4 + $0x110] ss:$12 sps:$4 sm:$0xff]   ;;  %p9598_p8 = scmp.ne.s32.totalorder %s11560_s24, %s9597_s6 }
  0x7f   : > { %8534 = vmatprep.subr.bf16.mxu1 %v9031_v14  ;;  %v9066_v44 = vld [vmem:[#allocation4 + $0x10c] ss:$12 sps:$4 sm:$0xff]   ;;  %v9070_v47 = vld [vmem:[#allocation4 + $0xf4] ss:$12 sps:$4 sm:$0xff]   ;;  %v9068_v50 = vld [vmem:[#allocation4 + $0xf0] ss:$12 sps:$4 sm:$0xff]  }
  0x80   : > { %v9071_v48 = vld [vmem:[%s9864_s29 + $0x60] sm:$0xff]   ;;  %v9075_v52 = vld [vmem:[#allocation4 + $0xdc] ss:$12 sps:$4 sm:$0xff]   ;;  %v9095_v62 = vld [vmem:[#allocation4 + $0x22c] ss:$12 sps:$4 sm:$0xff]   ;;  %p9599_p11 = pnand %p9598_p8, %p9782_p3  ;;  %s9707_s8 = smov [#allocation9]  }
  0x81   : > { %486 = vmatpush1.bf16.msra.mxu0 %v9032_v15  ;;  %v9084_v51 = vld [vmem:[#allocation4 + $0xf8] ss:$12 sps:$4 sm:$0xff]   ;;  %v9072_v53 = vld [vmem:[%s9864_s29 + $0x68] sm:$0xff]   ;;  %v9082_v58 = vld [vmem:[#allocation4 + $0x230] ss:$12 sps:$4 sm:$0xff]   ;;  %s9601_s4 = sshll.u32 %s9707_s8, 4  ;;  %s9602_s4 = int_to_ptr.vmem [resolvable:$false] %s9601_s4 }
  0x82   : > { %8535 = vmatpush3.bf16.msra.mxu1 %v9031_v14  ;;  %487 = vmatprep.subr.bf16.mxu0 %v9033_v18  ;;  %v9073_v54 = vld [vmem:[#allocation4 + $0xd8] ss:$12 sps:$4 sm:$0xff]   ;;  %v9087_v56 = vld [vmem:[#allocation4 + $0xe0] ss:$12 sps:$4 sm:$0xff]   ;;  %v9090_v61 = vld [vmem:[#allocation4 + $0xc8] ss:$12 sps:$4 sm:$0xff]   ;;  %p9600_p2 = pneg %p9599_p11  ;;  %p9604_p4 = scmp.lt.s32.totalorder %s11560_s24, %s9602_s4 }
  0x83   : > { %8536 = vmatprep.subr.bf16.mxu1 %v9035_v19  ;;  %v9079_v55 = vld [vmem:[#allocation4 + $0xc4] ss:$12 sps:$4 sm:$0xff]   ;;  %v9077_v57 = vld [vmem:[#allocation4 + $0xc0] ss:$12 sps:$4 sm:$0xff]   ;;  %v9091_v2 = vld [vmem:[#allocation4 + $0x1e8] ss:$12 sps:$4 sm:$0xff]  }
  0x84   : > { %v9080_v59 = vld [vmem:[%s9864_s29 + $0x40] sm:$0xff]   ;;  %v9083_v1 = vld [vmem:[%s9864_s29 + $0x48] sm:$0xff]   ;;  %v9096_v3 = vld [vmem:[#allocation4 + $0x1d0] ss:$12 sps:$4 sm:$0xff]   ;;  %s9603_s9 = scalar_lea.vmem %s9602_s4, 4096 }
  0x85   : > { %488 = vmatpush1.bf16.msra.mxu0 %v7782_v21  ;;  %v9085_v60 = vld [vmem:[#allocation4 + $0x218] ss:$12 sps:$4 sm:$0xff]   ;;  %v9088_v63 = vld [vmem:[#allocation4 + $0x200] ss:$12 sps:$4 sm:$0xff]   ;;  %v9086_v4 = vld [vmem:[%s9864_s29 + $0x50] sm:$0xff]   ;;  %p9605_p5 = scmp.lt.s32.totalorder %s9603_s9, %s9597_s6 }
  0x86   : > { %8537 = vmatpush3.bf16.msra.mxu1 %v9035_v19  ;;  %489 = vmatprep.subr.bf16.mxu0 %v9036_v22  ;;  %v9104_v5 = vld [vmem:[#allocation4 + $0x1b8] ss:$12 sps:$4 sm:$0xff]   ;;  %v9112_v6 = vld [vmem:[#allocation4 + $0x1a0] ss:$12 sps:$4 sm:$0xff]   ;;  %v9120_v8 = vld [vmem:[#allocation4 + $0x188] ss:$12 sps:$4 sm:$0xff]  }
  0x87   : > { %8538 = vmatprep.subr.bf16.mxu1 %v9038_v23  ;;  %v9089_v7 = vld [vmem:[%s9864_s29 + $0x58] sm:$0xff]   ;;  %v9092_v10 = vld [vmem:[%s9864_s29 + $0x60] sm:$0xff]   ;;  %v9093_v11 = vld [vmem:[#allocation4 + $0x228] ss:$12 sps:$4 sm:$0xff]   ;;  %p9606_p6 = por %p9605_p5, %p9604_p4 }
  0x88   : > { %v9128_v9 = vld [vmem:[#allocation4 + $0x2ec] ss:$12 sps:$4 sm:$0xff]   ;;  %v9099_v12 = vld [vmem:[#allocation4 + $0x214] ss:$12 sps:$4 sm:$0xff]   ;;  %v9097_v13 = vld [vmem:[#allocation4 + $0x210] ss:$12 sps:$4 sm:$0xff]  }
  0x89   : > { %490 = vmatpush1.bf16.msra.mxu0 %v9039_v24  ;;  %v9103_v14 = vld [vmem:[#allocation4 + $0x1fc] ss:$12 sps:$4 sm:$0xff]   ;;  %v9101_v16 = vld [vmem:[#allocation4 + $0x1f8] ss:$12 sps:$4 sm:$0xff]   ;;  %v9105_v18 = vld [vmem:[#allocation4 + $0x1e0] ss:$12 sps:$4 sm:$0xff]   ;;  %p9607_p7 = pnand %p9606_p6, %p9600_p2 }
  0x8a   : > { %8539 = vmatpush3.bf16.msra.mxu1 %v9038_v23  ;;  %491 = vmatprep.subr.bf16.mxu0 %v9040_v25  ;;  %v9100_v15 = vld [vmem:[%s9864_s29 + $0x68] sm:$0xff]   ;;  %v9107_v17 = vld [vmem:[#allocation4 + $0x1e4] ss:$12 sps:$4 sm:$0xff]   ;;  %v9115_v22 = vld [vmem:[#allocation4 + $0x1b4] ss:$12 sps:$4 sm:$0xff]  }
  0x8b   : > { %8540 = vmatprep.subr.bf16.mxu1 %v9042_v26  ;;  %v9111_v19 = vld [vmem:[#allocation4 + $0x1cc] ss:$12 sps:$4 sm:$0xff]   ;;  %v9109_v21 = vld [vmem:[#allocation4 + $0x1c8] ss:$12 sps:$4 sm:$0xff]   ;;  %v9113_v23 = vld [vmem:[#allocation4 + $0x1b0] ss:$12 sps:$4 sm:$0xff]  }
  0x8c   : > { %v9119_v24 = vld [vmem:[#allocation4 + $0x19c] ss:$12 sps:$4 sm:$0xff]  }
  0x8d   : > { %492 = vmatpush1.bf16.msra.mxu0 %v9043_v27  ;;  %v9116_v25 = vld [vmem:[%s9864_s29 + $0x78] sm:$0xff]   ;;  %v9123_v27 = vld [vmem:[#allocation4 + $0x184] ss:$12 sps:$4 sm:$0xff]  }
  0x8e   : > { %8541 = vmatpush3.bf16.msra.mxu1 %v9042_v26  ;;  %8558 = vmatprep.subr.bf16.mxu0 %v9049_v29  ;;  %v9117_v26 = vld [vmem:[#allocation4 + $0x198] ss:$12 sps:$4 sm:$0xff]  }
  0x8f   : > { %1125 = vmatprep.subr.bf16.mxu1 %v9048_v28  ;;  %v9124_v28 = vld [vmem:[%s9864_s29 + $0x50] sm:$0xff]  }
  0x90   : > { %510 = vmatmul.mubr.bf16.vlgmr.msra.gmra.mxu0 %v9044_v20  ;;  %v9108_v20 = vld [vmem:[%s9864_s29 + $0x70] sm:$0xff]  }
  0x91   : > { %8543 = vmatmul.mubr.bf16.vlgmr.msra.gmra.mxu1 %v9045_v30  ;;  %8559 = vmatpush3.bf16.msra.mxu0 %v9049_v29  ;;  %v9121_v29 = vld [vmem:[#allocation4 + $0x180] ss:$12 sps:$4 sm:$0xff]  }
  0x92   : > { %1126 = vmatpush1.bf16.msra.mxu1 %v9046_v31  ;;  %519 = vmatprep.mubr.bf16.mxu0 %v9706_v0  ;;  %v9125_v31 = vld [vmem:[%s9864_s29 + $0x58] sm:$0xff]  }
  0x93   : > { %1127 = vmatprep.subr.bf16.mxu1 %v9052_v32  ;;  %8546 = vmatprep.mubr.bf16.mxu1 %v9053_v33  ;;  %v9126_v32 = vld [vmem:[#allocation4 + $0x2e8] ss:$12 sps:$4 sm:$0xff]  }
  0x94   : > { %8560 = vmatprep.subr.bf16.mxu0 %v9058_v34 }
  0x95   : > { %8561 = vmatpush3.bf16.msra.mxu0 %v9058_v34  ;;  %v9133_v34 = vld [vmem:[%s9864_s29 + $0x60] sm:$0xff]  }
  0x96   : > { %1128 = vmatpush1.bf16.msra.mxu1 %v9050_v35  ;;  %8562 = vmatprep.subr.bf16.mxu0 %v9067_v37  ;;  %v9138_v35 = vld [vmem:[#allocation4 + $0x2d8] ss:$12 sps:$4 sm:$0xff]  }
  0x97   : > { %1129 = vmatprep.subr.bf16.mxu1 %v9057_v36  ;;  %v9130_v36 = vld [vmem:[#allocation4 + $0x2d0] ss:$12 sps:$4 sm:$0xff]  }
  0x98   : > { %520 = vmatmul.mubr.bf16.gmra.mxu0 %v9045_v30  ;;  %v9129_v30 = vld [vmem:[#allocation4 + $0x2f0] ss:$12 sps:$4 sm:$0xff]  }
  0x99   : > { %8547 = vmatmul.mubr.bf16.gmra.mxu1 %v9054_v38  ;;  %529 = vmatprep.mubr.bf16.mxu0 %v9706_v0 }
  0x9a   : > { %1130 = vmatpush1.bf16.msra.mxu1 %v9055_v39  ;;  %8550 = vmatprep.mubr.bf16.mxu1 %v9062_v41  ;;  %v9134_v39 = vld [vmem:[%s9864_s29 + $0x68] sm:$0xff]  }
  0x9b   : > { %1131 = vmatprep.subr.bf16.mxu1 %v9061_v40  ;;  %8563 = vmatpush3.bf16.msra.mxu0 %v9067_v37  ;;  %v9137_v37 = vld [vmem:[#allocation4 + $0x2bc] ss:$12 sps:$4 sm:$0xff]   ;;  %v9135_v40 = vld [vmem:[#allocation4 + $0x2b8] ss:$12 sps:$4 sm:$0xff]  }
  0x9c   : > { %8564 = vmatprep.subr.bf16.mxu0 %v9076_v42 }
  0x9e   : > { %1132 = vmatpush1.bf16.msra.mxu1 %v9059_v43  ;;  %v9156_v43 = vld [vmem:[#allocation4 + $0x2a8] ss:$12 sps:$4 sm:$0xff]  }
  0x9f   : > { %1133 = vmatprep.subr.bf16.mxu1 %v9066_v44  ;;  %8565 = vmatpush3.bf16.msra.mxu0 %v9076_v42  ;;  %v9142_v42 = vld [vmem:[%s9864_s29 + $0x70] sm:$0xff]   ;;  %v9139_v44 = vld [vmem:[#allocation4 + $0x2a0] ss:$12 sps:$4 sm:$0xff]  }
  0xa0   : > { %530 = vmatmul.mubr.bf16.gmra.mxu0 %v9053_v33  ;;  %8566 = vmatprep.subr.bf16.mxu0 %v9081_v49  ;;  %v9132_v33 = vld [vmem:[#allocation4 + $0x2d4] ss:$12 sps:$4 sm:$0xff]  }
  0xa1   : > { %8551 = vmatmul.mubr.bf16.gmra.mxu1 %v9063_v45  ;;  %539 = vmatprep.mubr.bf16.mxu0 %v9706_v0 }
  0xa2   : > { %1134 = vmatpush1.bf16.msra.mxu1 %v9064_v46  ;;  %8554 = vmatprep.mubr.bf16.mxu1 %v9071_v48  ;;  %v9143_v46 = vld [vmem:[%s9864_s29 + $0x78] sm:$0xff]  }
  0xa3   : > { %1135 = vmatprep.subr.bf16.mxu1 %v9070_v47  ;;  %8567 = vmatpush3.bf16.msra.mxu0 %v9081_v49  ;;  %v9144_v47 = vld [vmem:[#allocation4 + $0x288] ss:$12 sps:$4 sm:$0xff]   ;;  %v9151_v49 = vld [vmem:[%s9864_s29 + $0x80] sm:$0xff]  }
  0xa4   : > { %8568 = vmatprep.subr.bf16.mxu0 %v9084_v51 }
  0xa6   : > { %1136 = vmatpush1.bf16.msra.mxu1 %v9068_v50  ;;  %v9161_v50 = vld [vmem:[#allocation4 + $0x290] ss:$12 sps:$4 sm:$0xff]  }
  0xa7   : > { %1137 = vmatprep.subr.bf16.mxu1 %v9075_v52  ;;  %8569 = vmatpush3.bf16.msra.mxu0 %v9084_v51  ;;  %v9148_v51 = vld [vmem:[#allocation4 + $0x270] ss:$12 sps:$4 sm:$0xff]   ;;  %v9164_v52 = vld [vmem:[#allocation4 + $0x278] ss:$12 sps:$4 sm:$0xff]  }
  0xa8   : > { %540 = vmatmul.mubr.bf16.gmra.mxu0 %v9054_v38  ;;  %8570 = vmatprep.subr.bf16.mxu0 %v9087_v56  ;;  %v9147_v38 = vld [vmem:[#allocation4 + $0x2c0] ss:$12 sps:$4 sm:$0xff]  }
  0xa9   : > { %8555 = vmatmul.mubr.bf16.gmra.mxu1 %v9072_v53  ;;  %549 = vmatprep.mubr.bf16.mxu0 %v9706_v0 }
  0xaa   : > { %1138 = vmatpush1.bf16.msra.mxu1 %v9073_v54  ;;  %1157 = vmatprep.mubr.bf16.mxu1 %v9706_v0  ;;  %v9152_v54 = vld [vmem:[%s9864_s29 + $0x88] sm:$0xff]  }
  0xab   : > { %1139 = vmatprep.subr.bf16.mxu1 %v9079_v55  ;;  %8571 = vmatpush3.bf16.msra.mxu0 %v9087_v56  ;;  %v9153_v55 = vld [vmem:[#allocation4 + $0x258] ss:$12 sps:$4 sm:$0xff]  }
  0xac   : > { %8572 = vmatprep.subr.bf16.mxu0 %v9090_v61  ;;  %v9159_v56 = vld [vmem:[#allocation4 + $0x244] ss:$12 sps:$4 sm:$0xff]  }
  0xae   : > { %1140 = vmatpush1.bf16.msra.mxu1 %v9077_v57  ;;  %v9167_v57 = vld [vmem:[#allocation4 + $0x260] ss:$12 sps:$4 sm:$0xff]  }
  0xaf   : > { %8590 = vmatprep.subr.bf16.mxu1 %v9082_v58  ;;  %8573 = vmatpush3.bf16.msra.mxu0 %v9090_v61  ;;  %v9165_v61 = vld [vmem:[#allocation4 + $0x398] ss:$12 sps:$4 sm:$0xff]  }
  0xb0   : > { %550 = vmatmul.mubr.bf16.gmra.mxu0 %v9062_v41  ;;  %1771 = vmatprep.subr.bf16.mxu0 %v9095_v62  ;;  %v9141_v41 = vld [vmem:[#allocation4 + $0x2a4] ss:$12 sps:$4 sm:$0xff]   ;;  %v9170_v62 = vld [vmem:[#allocation4 + $0x248] ss:$12 sps:$4 sm:$0xff]  }
  0xb1   : > { %1158 = vmatmul.mubr.bf16.vlgmr.msra.gmra.mxu1 %v9080_v59  ;;  %559 = vmatprep.mubr.bf16.mxu0 %v9706_v0 }
  0xb2   : > { %8591 = vmatpush3.bf16.msra.mxu1 %v9082_v58  ;;  %1167 = vmatprep.mubr.bf16.mxu1 %v9706_v0  ;;  %v9157_v58 = vld [vmem:[#allocation4 + $0x240] ss:$12 sps:$4 sm:$0xff]  }
  0xb3   : > { %8592 = vmatprep.subr.bf16.mxu1 %v9085_v60 }
  0xb6   : > { %8593 = vmatpush3.bf16.msra.mxu1 %v9085_v60  ;;  %v9160_v60 = vld [vmem:[%s9864_s29 + $0x20] sm:$0xff]  }
  0xb7   : > { %8594 = vmatprep.subr.bf16.mxu1 %v9088_v63 }
  0xb8   : > { %560 = vmatmul.mubr.bf16.gmra.mxu0 %v9063_v45  ;;  %v9146_v45 = vld [vmem:[#allocation4 + $0x28c] ss:$12 sps:$4 sm:$0xff]  }
  0xb9   : > { %1168 = vmatmul.mubr.bf16.gmra.mxu1 %v9083_v1  ;;  %569 = vmatprep.mubr.bf16.mxu0 %v9706_v0 }
  0xba   : > { %1177 = vmatprep.mubr.bf16.mxu1 %v9706_v0  ;;  %8595 = vmatpush3.bf16.msra.mxu1 %v9088_v63  ;;  %v9175_v63 = vld [vmem:[#allocation4 + $0x3ac] ss:$12 sps:$4 sm:$0xff]  }
  0xbb   : > { %8596 = vmatprep.subr.bf16.mxu1 %v9091_v2 }
  0xbe   : > { %8597 = vmatpush3.bf16.msra.mxu1 %v9091_v2  ;;  %v9163_v2 = vld [vmem:[%s9864_s29 + $0x28] sm:$0xff]  }
  0xbf   : > { %8598 = vmatprep.subr.bf16.mxu1 %v9096_v3 }
  0xc0   : > { %570 = vmatmul.mubr.bf16.gmra.mxu0 %v9071_v48  ;;  %v9150_v48 = vld [vmem:[#allocation4 + $0x274] ss:$12 sps:$4 sm:$0xff]  }
  0xc1   : > { %1178 = vmatmul.mubr.bf16.gmra.mxu1 %v9086_v4  ;;  %579 = vmatprep.mubr.bf16.mxu0 %v9706_v0 }
  0xc2   : > { %1187 = vmatprep.mubr.bf16.mxu1 %v9706_v0  ;;  %8599 = vmatpush3.bf16.msra.mxu1 %v9096_v3  ;;  %v9171_v3 = vld [vmem:[#allocation4 + $0x368] ss:$12 sps:$4 sm:$0xff]  }
  0xc3   : > { %8600 = vmatprep.subr.bf16.mxu1 %v9104_v5 }
  0xc6   : > { %8601 = vmatpush3.bf16.msra.mxu1 %v9104_v5  ;;  %v9166_v5 = vld [vmem:[%s9864_s29 + $0x30] sm:$0xff]  }
  0xc7   : > { %8602 = vmatprep.subr.bf16.mxu1 %v9112_v6 }
  0xc8   : > { %580 = vmatmul.mubr.bf16.gmra.mxu0 %v9072_v53  ;;  %v9155_v53 = vld [vmem:[#allocation4 + $0x25c] ss:$12 sps:$4 sm:$0xff]  }
  0xc9   : > { %1188 = vmatmul.mubr.bf16.gmra.mxu1 %v9089_v7  ;;  %8574 = vmatprep.mubr.bf16.mxu0 %v9080_v59  ;;  %v9162_v59 = vld [vmem:[#allocation4 + $0x3b0] ss:$12 sps:$4 sm:$0xff]  }
  0xca   : > { %1197 = vmatprep.mubr.bf16.mxu1 %v9706_v0  ;;  %8603 = vmatpush3.bf16.msra.mxu1 %v9112_v6  ;;  %v9184_v6 = vld [vmem:[#allocation4 + $0x338] ss:$12 sps:$4 sm:$0xff]  }
  0xcb   : > { %8604 = vmatprep.subr.bf16.mxu1 %v9120_v8 }
  0xce   : > { %8605 = vmatpush3.bf16.msra.mxu1 %v9120_v8  ;;  %v9169_v8 = vld [vmem:[%s9864_s29 + $0x38] sm:$0xff]  }
  0xcf   : > { %2417 = vmatprep.subr.bf16.mxu1 %v9128_v9  ;;  %v9200_v9 = vld [vmem:[#allocation4 + $0x308] ss:$12 sps:$4 sm:$0xff]  }
  0xd0   : > { %8575 = vmatmul.mubr.bf16.vlgmr.msra.gmra.mxu0 %v9083_v1  ;;  %v9168_v1 = vld [vmem:[#allocation4 + $0x380] ss:$12 sps:$4 sm:$0xff]  }
  0xd1   : > { %1198 = vmatmul.mubr.bf16.gmra.mxu1 %v9092_v10  ;;  %1772 = vmatpush1.bf16.msra.mxu0 %v9093_v11  ;;  %v9208_v11 = vld [vmem:[#allocation4 + $0x46c] ss:$12 sps:$4 sm:$0xff]  }
  0xd2   : > { %1207 = vmatprep.mubr.bf16.mxu1 %v9706_v0  ;;  %1773 = vmatprep.subr.bf16.mxu0 %v9099_v12  ;;  %v9173_v12 = vld [vmem:[#allocation4 + $0x3a8] ss:$12 sps:$4 sm:$0xff]  }
  0xd3   : > { %8578 = vmatprep.mubr.bf16.mxu0 %v9086_v4  ;;  %v9176_v4 = vld [vmem:[#allocation4 + $0x350] ss:$12 sps:$4 sm:$0xff]  }
  0xd5   : > { %1774 = vmatpush1.bf16.msra.mxu0 %v9097_v13  ;;  %v9179_v13 = vld [vmem:[#allocation4 + $0x394] ss:$12 sps:$4 sm:$0xff]  }
  0xd6   : > { %1775 = vmatprep.subr.bf16.mxu0 %v9103_v14  ;;  %v9177_v14 = vld [vmem:[#allocation4 + $0x390] ss:$12 sps:$4 sm:$0xff]  }
  0xd8   : > { %8579 = vmatmul.mubr.bf16.gmra.mxu0 %v9089_v7  ;;  %v9192_v7 = vld [vmem:[#allocation4 + $0x320] ss:$12 sps:$4 sm:$0xff]  }
  0xd9   : > { %1208 = vmatmul.mubr.bf16.gmra.mxu1 %v9100_v15  ;;  %1776 = vmatpush1.bf16.msra.mxu0 %v9101_v16  ;;  %v9180_v16 = vld [vmem:[%s9864_s29 + $0x48] sm:$0xff]  }
  0xda   : > { %1217 = vmatprep.mubr.bf16.mxu1 %v9706_v0  ;;  %1777 = vmatprep.subr.bf16.mxu0 %v9107_v17  ;;  %v9181_v17 = vld [vmem:[#allocation4 + $0x378] ss:$12 sps:$4 sm:$0xff]  }
  0xdb   : > { %8582 = vmatprep.mubr.bf16.mxu0 %v9092_v10  ;;  %v9172_v10 = vld [vmem:[%s9864_s29 + $0x40] sm:$0xff]  }
  0xdd   : > { %1778 = vmatpush1.bf16.msra.mxu0 %v9105_v18  ;;  %v9187_v18 = vld [vmem:[#allocation4 + $0x364] ss:$12 sps:$4 sm:$0xff]  }
  0xde   : > { %1779 = vmatprep.subr.bf16.mxu0 %v9111_v19  ;;  %v9185_v19 = vld [vmem:[#allocation4 + $0x360] ss:$12 sps:$4 sm:$0xff]  }
  0xe0   : > { %8583 = vmatmul.mubr.bf16.gmra.mxu0 %v9100_v15  ;;  %v9183_v15 = vld [vmem:[#allocation4 + $0x37c] ss:$12 sps:$4 sm:$0xff]  }
  0xe1   : > { %1218 = vmatmul.mubr.bf16.gmra.mxu1 %v9108_v20  ;;  %1780 = vmatpush1.bf16.msra.mxu0 %v9109_v21  ;;  %v9188_v21 = vld [vmem:[%s9864_s29 + $0x50] sm:$0xff]  }
  0xe2   : > { %1227 = vmatprep.mubr.bf16.mxu1 %v9706_v0  ;;  %1781 = vmatprep.subr.bf16.mxu0 %v9115_v22  ;;  %v9189_v22 = vld [vmem:[#allocation4 + $0x348] ss:$12 sps:$4 sm:$0xff]  }
  0xe3   : > { %8586 = vmatprep.mubr.bf16.mxu0 %v9108_v20  ;;  %v9191_v20 = vld [vmem:[#allocation4 + $0x34c] ss:$12 sps:$4 sm:$0xff]  }
  0xe5   : > { %1782 = vmatpush1.bf16.msra.mxu0 %v9113_v23  ;;  %v9195_v23 = vld [vmem:[#allocation4 + $0x334] ss:$12 sps:$4 sm:$0xff]  }
  0xe6   : > { %1783 = vmatprep.subr.bf16.mxu0 %v9119_v24  ;;  %v9193_v24 = vld [vmem:[#allocation4 + $0x330] ss:$12 sps:$4 sm:$0xff]  }
  0xe8   : > { %8587 = vmatmul.mubr.bf16.gmra.mxu0 %v9116_v25 }
  0xe9   : > { %1228 = vmatmul.mubr.bf16.gmra.mxu1 %v9116_v25  ;;  %1784 = vmatpush1.bf16.msra.mxu0 %v9117_v26  ;;  %v9199_v25 = vld [vmem:[#allocation4 + $0x31c] ss:$12 sps:$4 sm:$0xff]  }
  0xea   : > { %1803 = vmatprep.mubr.bf16.mxu0 %v9706_v0  ;;  %1785 = vmatprep.subr.bf16.mxu0 %v9123_v27  ;;  %v9196_v26 = vld [vmem:[%s9864_s29 + $0x58] sm:$0xff]  }
  0xeb   : > { %8606 = vmatprep.mubr.bf16.mxu1 %v9124_v28  ;;  %v9197_v27 = vld [vmem:[#allocation4 + $0x318] ss:$12 sps:$4 sm:$0xff]  }
  0xed   : > { %1786 = vmatpush1.bf16.msra.mxu0 %v9121_v29  ;;  %v9204_v29 = vld [vmem:[%s9864_s29 + $0x40] sm:$0xff]  }
  0xee   : > { %8622 = vmatprep.subr.bf16.mxu0 %v9129_v30 }
  0xf0   : > { %1804 = vmatmul.mubr.bf16.vlgmr.msra.gmra.mxu0 %v9124_v28  ;;  %v9203_v28 = vld [vmem:[#allocation4 + $0x304] ss:$12 sps:$4 sm:$0xff]  }
  0xf1   : > { %8607 = vmatmul.mubr.bf16.vlgmr.msra.gmra.mxu1 %v9125_v31  ;;  %8623 = vmatpush3.bf16.msra.mxu0 %v9129_v30  ;;  %v9201_v30 = vld [vmem:[#allocation4 + $0x300] ss:$12 sps:$4 sm:$0xff]  }
  0xf2   : > { %2418 = vmatpush1.bf16.msra.mxu1 %v9126_v32  ;;  %1813 = vmatprep.mubr.bf16.mxu0 %v9706_v0  ;;  %v9209_v32 = vld [vmem:[#allocation4 + $0x470] ss:$12 sps:$4 sm:$0xff]  }
  0xf3   : > { %2419 = vmatprep.subr.bf16.mxu1 %v9132_v33  ;;  %8610 = vmatprep.mubr.bf16.mxu1 %v9133_v34  ;;  %v9206_v33 = vld [vmem:[#allocation4 + $0x468] ss:$12 sps:$4 sm:$0xff]  }
  0xf4   : > { %8624 = vmatprep.subr.bf16.mxu0 %v9138_v35 }
  0xf5   : > { %8625 = vmatpush3.bf16.msra.mxu0 %v9138_v35  ;;  %v9989_v35 = vld [vmem:[%s9864_s29 + $0x50] sm:$0xff]  }
  0xf6   : > { %2420 = vmatpush1.bf16.msra.mxu1 %v9130_v36  ;;  %8626 = vmatprep.subr.bf16.mxu0 %v9147_v38  ;;  %v9218_v36 = vld [vmem:[#allocation4 + $0x458] ss:$12 sps:$4 sm:$0xff]  }
  0xf7   : > { %2421 = vmatprep.subr.bf16.mxu1 %v9137_v37  ;;  %v9210_v37 = vld [vmem:[#allocation4 + $0x450] ss:$12 sps:$4 sm:$0xff]  }
  0xf8   : > { %1814 = vmatmul.mubr.bf16.gmra.mxu0 %v9125_v31  ;;  %v9205_v31 = vld [vmem:[%s9864_s29 + $0x48] sm:$0xff]  }
  0xf9   : > { %8611 = vmatmul.mubr.bf16.gmra.mxu1 %v9134_v39  ;;  %1823 = vmatprep.mubr.bf16.mxu0 %v9706_v0 }
  0xfa   : > { %2422 = vmatpush1.bf16.msra.mxu1 %v9135_v40  ;;  %8614 = vmatprep.mubr.bf16.mxu1 %v9142_v42  ;;  %v9217_v40 = vld [vmem:[#allocation4 + $0x43c] ss:$12 sps:$4 sm:$0xff]  }
  0xfb   : > { %2423 = vmatprep.subr.bf16.mxu1 %v9141_v41  ;;  %8627 = vmatpush3.bf16.msra.mxu0 %v9147_v38  ;;  %v9227_v41 = vld [vmem:[#allocation4 + $0x440] ss:$12 sps:$4 sm:$0xff]  }
  0xfc   : > { %8628 = vmatprep.subr.bf16.mxu0 %v9156_v43 }
  0xfe   : > { %2424 = vmatpush1.bf16.msra.mxu1 %v9139_v44 }
  0xff   : > { %2425 = vmatprep.subr.bf16.mxu1 %v9146_v45  ;;  %8629 = vmatpush3.bf16.msra.mxu0 %v9156_v43  ;;  %v9993_v45 = vld [vmem:[%s9864_s29 + $0x58] sm:$0xff]  }
 0x100   : > { %1824 = vmatmul.mubr.bf16.gmra.mxu0 %v9133_v34  ;;  %8630 = vmatprep.subr.bf16.mxu0 %v9161_v50  ;;  %v9212_v34 = vld [vmem:[#allocation4 + $0x454] ss:$12 sps:$4 sm:$0xff]  }
 0x101   : > { %8615 = vmatmul.mubr.bf16.gmra.mxu1 %v9143_v46  ;;  %1833 = vmatprep.mubr.bf16.mxu0 %v9706_v0 }
 0x102   : > { %2426 = vmatpush1.bf16.msra.mxu1 %v9144_v47  ;;  %8618 = vmatprep.mubr.bf16.mxu1 %v9151_v49  ;;  %v9215_v47 = vld [vmem:[#allocation4 + $0x438] ss:$12 sps:$4 sm:$0xff]  }
 0x103   : > { %2427 = vmatprep.subr.bf16.mxu1 %v9150_v48  ;;  %8631 = vmatpush3.bf16.msra.mxu0 %v9161_v50 }
 0x104   : > { %8632 = vmatprep.subr.bf16.mxu0 %v9164_v52 }
 0x106   : > { %2428 = vmatpush1.bf16.msra.mxu1 %v9148_v51 }
 0x107   : > { %2429 = vmatprep.subr.bf16.mxu1 %v9155_v53  ;;  %8633 = vmatpush3.bf16.msra.mxu0 %v9164_v52  ;;  %v9221_v52 = vld [vmem:[#allocation4 + $0x424] ss:$12 sps:$4 sm:$0xff]  }
 0x108   : > { %1834 = vmatmul.mubr.bf16.gmra.mxu0 %v9134_v39  ;;  %8634 = vmatprep.subr.bf16.mxu0 %v9167_v57  ;;  %v10000_v53 = vld [vmem:[%s9864_s29 + $0x60] sm:$0xff]  }
 0x109   : > { %8619 = vmatmul.mubr.bf16.gmra.mxu1 %v9152_v54  ;;  %1843 = vmatprep.mubr.bf16.mxu0 %v9706_v0 }
 0x10a   : > { %2430 = vmatpush1.bf16.msra.mxu1 %v9153_v55  ;;  %2449 = vmatprep.mubr.bf16.mxu1 %v9706_v0 }
 0x10b   : > { %2431 = vmatprep.subr.bf16.mxu1 %v9159_v56  ;;  %8635 = vmatpush3.bf16.msra.mxu0 %v9167_v57 }
 0x10c   : > { %8636 = vmatprep.subr.bf16.mxu0 %v9170_v62 }
 0x10e   : > { %2432 = vmatpush1.bf16.msra.mxu1 %v9157_v58  ;;  %v9236_v58 = vld [vmem:[#allocation4 + $0x428] ss:$12 sps:$4 sm:$0xff]  }
 0x10f   : > { %8654 = vmatprep.subr.bf16.mxu1 %v9162_v59  ;;  %8637 = vmatpush3.bf16.msra.mxu0 %v9170_v62 }
 0x110   : > { %1844 = vmatmul.mubr.bf16.gmra.mxu0 %v9142_v42  ;;  %3061 = vmatprep.subr.bf16.mxu0 %v9175_v63  ;;  %v9219_v63 = vld [vmem:[#allocation4 + $0x420] ss:$12 sps:$4 sm:$0xff]  }
 0x111   : > { %2450 = vmatmul.mubr.bf16.vlgmr.msra.gmra.mxu1 %v9160_v60  ;;  %1853 = vmatprep.mubr.bf16.mxu0 %v9706_v0 }
 0x112   : > { %8655 = vmatpush3.bf16.msra.mxu1 %v9162_v59  ;;  %2459 = vmatprep.mubr.bf16.mxu1 %v9706_v0 }
 0x113   : > { %8656 = vmatprep.subr.bf16.mxu1 %v9165_v61 }
 0x116   : > { %8657 = vmatpush3.bf16.msra.mxu1 %v9165_v61 }
 0x117   : > { %8658 = vmatprep.subr.bf16.mxu1 %v9168_v1 }
 0x118   : > { %1854 = vmatmul.mubr.bf16.gmra.mxu0 %v9143_v46 }
 0x119   : > { %2460 = vmatmul.mubr.bf16.gmra.mxu1 %v9163_v2  ;;  %1863 = vmatprep.mubr.bf16.mxu0 %v9706_v0 }
 0x11a   : > { %2469 = vmatprep.mubr.bf16.mxu1 %v9706_v0  ;;  %8659 = vmatpush3.bf16.msra.mxu1 %v9168_v1 }
 0x11b   : > { %8660 = vmatprep.subr.bf16.mxu1 %v9171_v3 }
 0x11e   : > { %8661 = vmatpush3.bf16.msra.mxu1 %v9171_v3 }
 0x11f   : > { %8662 = vmatprep.subr.bf16.mxu1 %v9176_v4 }
 0x120   : > { %1864 = vmatmul.mubr.bf16.gmra.mxu0 %v9151_v49 }
 0x121   : > { %2470 = vmatmul.mubr.bf16.gmra.mxu1 %v9166_v5  ;;  %1873 = vmatprep.mubr.bf16.mxu0 %v9706_v0 }
 0x122   : > { %2479 = vmatprep.mubr.bf16.mxu1 %v9706_v0  ;;  %8663 = vmatpush3.bf16.msra.mxu1 %v9176_v4  ;;  %v9226_v4 = vld [vmem:[#allocation4 + $0x40c] ss:$12 sps:$4 sm:$0xff]  }
 0x123   : > { %8664 = vmatprep.subr.bf16.mxu1 %v9184_v6 }
 0x126   : > { %8665 = vmatpush3.bf16.msra.mxu1 %v9184_v6 }
 0x127   : > { %8666 = vmatprep.subr.bf16.mxu1 %v9192_v7 }
 0x128   : > { %1874 = vmatmul.mubr.bf16.gmra.mxu0 %v9152_v54 }
 0x129   : > { %2480 = vmatmul.mubr.bf16.gmra.mxu1 %v9169_v8  ;;  %8638 = vmatprep.mubr.bf16.mxu0 %v9160_v60 }
 0x12a   : > { %2489 = vmatprep.mubr.bf16.mxu1 %v9706_v0  ;;  %8667 = vmatpush3.bf16.msra.mxu1 %v9192_v7 }
 0x12b   : > { %8668 = vmatprep.subr.bf16.mxu1 %v9200_v9 }
 0x12e   : > { %8669 = vmatpush3.bf16.msra.mxu1 %v9200_v9 }
 0x12f   : > { %3707 = vmatprep.subr.bf16.mxu1 %v9208_v11 }
 0x130   : > { %8639 = vmatmul.mubr.bf16.vlgmr.msra.gmra.mxu0 %v9163_v2 }
 0x131   : > { %2490 = vmatmul.mubr.bf16.gmra.mxu1 %v9172_v10  ;;  %3062 = vmatpush1.bf16.msra.mxu0 %v9173_v12 }
 0x132   : > { %2499 = vmatprep.mubr.bf16.mxu1 %v9706_v0  ;;  %3063 = vmatprep.subr.bf16.mxu0 %v9179_v13  ;;  %v10016_v13 = vld [vmem:[%s9864_s29 + $0x68] sm:$0xff]  }
 0x133   : > { %8642 = vmatprep.mubr.bf16.mxu0 %v9166_v5 }
 0x135   : > { %3064 = vmatpush1.bf16.msra.mxu0 %v9177_v14  ;;  %v9224_v14 = vld [vmem:[#allocation4 + $0x408] ss:$12 sps:$4 sm:$0xff]  }
 0x136   : > { %3065 = vmatprep.subr.bf16.mxu0 %v9183_v15 }
 0x138   : > { %8643 = vmatmul.mubr.bf16.gmra.mxu0 %v9169_v8 }
 0x139   : > { %2500 = vmatmul.mubr.bf16.gmra.mxu1 %v9180_v16  ;;  %3066 = vmatpush1.bf16.msra.mxu0 %v9181_v17 }
 0x13a   : > { %2509 = vmatprep.mubr.bf16.mxu1 %v9706_v0  ;;  %3067 = vmatprep.subr.bf16.mxu0 %v9187_v18 }
 0x13b   : > { %8646 = vmatprep.mubr.bf16.mxu0 %v9172_v10 }
 0x13d   : > { %3068 = vmatpush1.bf16.msra.mxu0 %v9185_v19  ;;  %v9230_v19 = vld [vmem:[#allocation4 + $0x3f4] ss:$12 sps:$4 sm:$0xff]  }
 0x13e   : > { %3069 = vmatprep.subr.bf16.mxu0 %v9191_v20  ;;  %v10021_v20 = vld [vmem:[%s9864_s29 + $0x70] sm:$0xff]  }
 0x140   : > { %8647 = vmatmul.mubr.bf16.gmra.mxu0 %v9180_v16 }
 0x141   : > { %2510 = vmatmul.mubr.bf16.gmra.mxu1 %v9188_v21  ;;  %3070 = vmatpush1.bf16.msra.mxu0 %v9189_v22 }
 0x142   : > { %2519 = vmatprep.mubr.bf16.mxu1 %v9706_v0  ;;  %3071 = vmatprep.subr.bf16.mxu0 %v9195_v23 }
 0x143   : > { %8650 = vmatprep.mubr.bf16.mxu0 %v9188_v21 }
 0x145   : > { %3072 = vmatpush1.bf16.msra.mxu0 %v9193_v24 }
 0x146   : > { %3073 = vmatprep.subr.bf16.mxu0 %v9199_v25 }
 0x148   : > { %8651 = vmatmul.mubr.bf16.gmra.mxu0 %v9196_v26 }
 0x149   : > { %2520 = vmatmul.mubr.bf16.gmra.mxu1 %v9196_v26  ;;  %3074 = vmatpush1.bf16.msra.mxu0 %v9197_v27  ;;  %v9241_v26 = vld [vmem:[#allocation4 + $0x410] ss:$12 sps:$4 sm:$0xff]  }
 0x14a   : > { %3093 = vmatprep.mubr.bf16.mxu0 %v9706_v0  ;;  %3075 = vmatprep.subr.bf16.mxu0 %v9203_v28 }
 0x14b   : > { %8670 = vmatprep.mubr.bf16.mxu1 %v9204_v29 }
 0x14d   : > { %3076 = vmatpush1.bf16.msra.mxu0 %v9201_v30  ;;  %v9228_v30 = vld [vmem:[#allocation4 + $0x3f0] ss:$12 sps:$4 sm:$0xff]  }
 0x14e   : > { %8686 = vmatprep.subr.bf16.mxu0 %v9209_v32 }
 0x150   : > { %v511_v38 = vpop.f32.mrf.mxu0  ;;  %3094 = vmatmul.mubr.bf16.vlgmr.msra.gmra.mxu0 %v9204_v29 }
 0x151   : > { %v8544_v39 = vpop.f32.mrf.mxu1  ;;  %8671 = vmatmul.mubr.bf16.vlgmr.msra.gmra.mxu1 %v9205_v31  ;;  %v704_v42 = vrot.slane %v511_v38, 6  ;;  %8687 = vmatpush3.bf16.msra.mxu0 %v9209_v32  ;;  %v9244_v32 = vld [vmem:[#allocation4 + $0x3f8] ss:$12 sps:$4 sm:$0xff]  }
 0x152   : > { %3708 = vmatpush1.bf16.msra.mxu1 %v9206_v33  ;;  %v513_v43 = vpop.f32.mrf.mxu0  ;;  %3103 = vmatprep.mubr.bf16.mxu0 %v9706_v0  ;;  %v788_v48 = vrot.slane %v8544_v39, 2 }
 0x153   : > { %v624_v44 = vpop.f32.mrf.mxu1  ;;  %3709 = vmatprep.subr.bf16.mxu1 %v9212_v34  ;;  %v744_v46 = vsel %vm703_vm0, 0.0, %v704_v42  ;;  %8674 = vmatprep.mubr.bf16.mxu1 %v9989_v35 }
 0x154   : > { %8688 = vmatprep.subr.bf16.mxu0 %v9218_v36  ;;  %v752_v49 = vadd.f32 %v744_v46, %v513_v43  ;;  %v515_v50 = vpop.f32.mrf.mxu0  ;;  %v785_v59 = vrot.slane %v624_v44, 2  ;;  %v9233_v44 = vld [vmem:[#allocation4 + $0x3d8] ss:$12 sps:$4 sm:$0xff]  }
 0x155   : > { %v9997_v51 = vpop.f32.mrf.mxu1  ;;  %v705_v54 = vrot.slane %v515_v50, 6  ;;  %8689 = vmatpush3.bf16.msra.mxu0 %v9218_v36  ;;  %v10044_v50 = vld [vmem:[%s9864_s29 + $0x78] sm:$0xff]  }
 0x156   : > { %v789_v55 = vrot.slane %v9997_v51, 2  ;;  %3710 = vmatpush1.bf16.msra.mxu1 %v9210_v37  ;;  %v517_v56 = vpop.f32.mrf.mxu0  ;;  %8690 = vmatprep.subr.bf16.mxu0 %v9227_v41  ;;  %v9235_v37 = vld [vmem:[#allocation4 + $0x3dc] ss:$12 sps:$4 sm:$0xff]   ;;  %v9239_v51 = vld [vmem:[#allocation4 + $0x3c4] ss:$12 sps:$4 sm:$0xff]  }
 0x157   : > { %v627_v57 = vpop.f32.mrf.mxu1  ;;  %3711 = vmatprep.subr.bf16.mxu1 %v9217_v40  ;;  %v706_v60 = vsel %vm703_vm0, %v704_v42, %v705_v54 }
 0x158   : > { %v786_v61 = vrot.slane %v627_v57, 2  ;;  %v790_v62 = vsel %vm784_vm1, %v788_v48, %v789_v55  ;;  %v753_v1 = vadd.f32 %v706_v60, %v517_v56  ;;  %v521_v2 = vpop.f32.mrf.mxu0  ;;  %3104 = vmatmul.mubr.bf16.gmra.mxu0 %v9205_v31  ;;  %v826_v38 = vsel %vm784_vm1, %v789_v55, 0.0 }
 0x159   : > { %v8548_v3 = vpop.f32.mrf.mxu1  ;;  %8675 = vmatmul.mubr.bf16.gmra.mxu1 %v9993_v45  ;;  %v707_v7 = vrot.slane %v521_v2, 6  ;;  %3113 = vmatprep.mubr.bf16.mxu0 %v9706_v0 }
 0x15a   : > { %v787_v5 = vsel %vm784_vm1, %v785_v59, %v786_v61  ;;  %v825_v6 = vsel %vm784_vm1, %v786_v61, 0.0  ;;  %3712 = vmatpush1.bf16.msra.mxu1 %v9215_v47  ;;  %v523_v10 = vpop.f32.mrf.mxu0  ;;  %8678 = vmatprep.mubr.bf16.mxu1 %v10000_v53  ;;  %v794_v15 = vrot.slane %v8548_v3, 2 }
 0x15b   : > { %v10009_v8 = vadd.f32 %v787_v5, %v752_v49  ;;  %v10011_v9 = vadd.f32 %v825_v6, %v753_v1  ;;  %v640_v11 = vpop.f32.mrf.mxu1  ;;  %3713 = vmatprep.subr.bf16.mxu1 %v9221_v52  ;;  %v745_v12 = vsel %vm703_vm0, 0.0, %v707_v7  ;;  %8691 = vmatpush3.bf16.msra.mxu0 %v9227_v41 }
 0x15c   : > { %v754_v16 = vadd.f32 %v745_v12, %v523_v10  ;;  %v525_v17 = vpop.f32.mrf.mxu0  ;;  %8692 = vmatprep.subr.bf16.mxu0 %v9236_v58  ;;  %v791_v27 = vrot.slane %v640_v11, 2 }
 0x15d   : > { %v10018_v18 = vpop.f32.mrf.mxu1  ;;  %v708_v21 = vrot.slane %v525_v17, 6 }
 0x15e   : > { %v795_v22 = vrot.slane %v10018_v18, 2  ;;  %3714 = vmatpush1.bf16.msra.mxu1 %v9219_v63  ;;  %v10024_v23 = vadd.f32 %v790_v62, %v754_v16  ;;  %v527_v24 = vpop.f32.mrf.mxu0  ;;  %v9237_v62 = vld [vmem:[#allocation4 + $0x3c0] ss:$12 sps:$4 sm:$0xff]  }
 0x15f   : > { %v643_v25 = vpop.f32.mrf.mxu1  ;;  %3715 = vmatprep.subr.bf16.mxu1 %v9226_v4  ;;  %v709_v28 = vsel %vm703_vm0, %v707_v7, %v708_v21  ;;  %8693 = vmatpush3.bf16.msra.mxu0 %v9236_v58  ;;  %v9247_v58 = vld [vmem:[#allocation4 + $0x3e0] ss:$12 sps:$4 sm:$0xff]  }
 0x160   : > { %v792_v29 = vrot.slane %v643_v25, 2  ;;  %v10030_v31 = vsel %vm784_vm1, %v794_v15, %v795_v22  ;;  %v755_v33 = vadd.f32 %v709_v28, %v527_v24  ;;  %v531_v34 = vpop.f32.mrf.mxu0  ;;  %3114 = vmatmul.mubr.bf16.gmra.mxu0 %v9989_v35  ;;  %8694 = vmatprep.subr.bf16.mxu0 %v9241_v26  ;;  %v9245_v28 = vld [vmem:[#allocation4 + $0x518] ss:$12 sps:$4 sm:$0xff]   ;;  %v9248_v18 = vld [vmem:[#allocation4 + $0x500] ss:$12 sps:$4 sm:$0xff]  }
 0x161   : > { %v8552_v36 = vpop.f32.mrf.mxu1  ;;  %8679 = vmatmul.mubr.bf16.gmra.mxu1 %v10016_v13  ;;  %v710_v39 = vrot.slane %v531_v34, 6  ;;  %3123 = vmatprep.mubr.bf16.mxu0 %v9706_v0 }
 0x162   : > { %3716 = vmatpush1.bf16.msra.mxu1 %v9224_v14  ;;  %v793_v40 = vsel %vm784_vm1, %v791_v27, %v792_v29  ;;  %v10037_v41 = vadd.f32 %v826_v38, %v755_v33  ;;  %v533_v42 = vpop.f32.mrf.mxu0  ;;  %8682 = vmatprep.mubr.bf16.mxu1 %v10021_v20  ;;  %v800_v46 = vrot.slane %v8552_v36, 2  ;;  %v827_v4 = vsel %vm784_vm1, %v792_v29, 0.0  ;;  %v9250_v29 = vld [vmem:[#allocation4 + $0x3c8] ss:$12 sps:$4 sm:$0xff]   ;;  %v9255_v36 = vld [vmem:[#allocation4 + $0x52c] ss:$12 sps:$4 sm:$0xff]  }
 0x163   : > { %v656_v43 = vpop.f32.mrf.mxu1  ;;  %3717 = vmatprep.subr.bf16.mxu1 %v9230_v19  ;;  %v746_v35 = vsel %vm703_vm0, 0.0, %v710_v39  ;;  %8695 = vmatpush3.bf16.msra.mxu0 %v9241_v26  ;;  %v10072_v19 = vld [vmem:[%s9864_s29 + $0x60] sm:$0xff]  }
 0x164   : > { %v756_v47 = vadd.f32 %v746_v35, %v533_v42  ;;  %v535_v48 = vpop.f32.mrf.mxu0  ;;  %8696 = vmatprep.subr.bf16.mxu0 %v9244_v32  ;;  %v797_v59 = vrot.slane %v656_v43, 2 }
 0x165   : > { %v10041_v49 = vpop.f32.mrf.mxu1  ;;  %v711_v52 = vrot.slane %v535_v48, 6 }
 0x166   : > { %v801_v54 = vrot.slane %v10041_v49, 2  ;;  %3718 = vmatpush1.bf16.msra.mxu1 %v9228_v30  ;;  %v10047_v55 = vadd.f32 %v793_v40, %v756_v47  ;;  %v537_v56 = vpop.f32.mrf.mxu0 }
 0x167   : > { %v10049_v57 = vpop.f32.mrf.mxu1  ;;  %3719 = vmatprep.subr.bf16.mxu1 %v9235_v37  ;;  %v712_v60 = vsel %vm703_vm0, %v710_v39, %v711_v52  ;;  %8697 = vmatpush3.bf16.msra.mxu0 %v9244_v32  ;;  %v828_v39 = vsel %vm784_vm1, %v795_v22, 0.0 }
 0x168   : > { %v798_v61 = vrot.slane %v10049_v57, 2  ;;  %v10056_v63 = vsel %vm784_vm1, %v800_v46, %v801_v54  ;;  %v757_v1 = vadd.f32 %v712_v60, %v537_v56  ;;  %v541_v2 = vpop.f32.mrf.mxu0  ;;  %3124 = vmatmul.mubr.bf16.gmra.mxu0 %v9993_v45  ;;  %v9242_v45 = vld [vmem:[#allocation4 + $0x530] ss:$12 sps:$4 sm:$0xff]   ;;  %8698 = vmatprep.subr.bf16.mxu0 %v9247_v58  ;;  %v10106_v56 = vld [vmem:[%s9864_s29 + $0x68] sm:$0xff]  }
 0x169   : > { %v8556_v3 = vpop.f32.mrf.mxu1  ;;  %8683 = vmatmul.mubr.bf16.gmra.mxu1 %v10044_v50  ;;  %v713_v5 = vrot.slane %v541_v2, 6  ;;  %3133 = vmatprep.mubr.bf16.mxu0 %v9706_v0 }
 0x16a   : > { %3720 = vmatpush1.bf16.msra.mxu1 %v9233_v44  ;;  %v799_v6 = vsel %vm784_vm1, %v797_v59, %v798_v61  ;;  %v10065_v7 = vadd.f32 %v827_v4, %v757_v1  ;;  %v543_v10 = vpop.f32.mrf.mxu0  ;;  %3739 = vmatprep.mubr.bf16.mxu1 %v9706_v0  ;;  %v806_v14 = vrot.slane %v8556_v3, 2  ;;  %v829_v2 = vsel %vm784_vm1, %v798_v61, 0.0 }
 0x16b   : > { %v672_v11 = vpop.f32.mrf.mxu1  ;;  %3721 = vmatprep.subr.bf16.mxu1 %v9239_v51  ;;  %v747_v12 = vsel %vm703_vm0, 0.0, %v713_v5  ;;  %8699 = vmatpush3.bf16.msra.mxu0 %v9247_v58 }
 0x16c   : > { %v758_v15 = vadd.f32 %v747_v12, %v543_v10  ;;  %v545_v16 = vpop.f32.mrf.mxu0  ;;  %v803_v30 = vrot.slane %v672_v11, 2  ;;  %8700 = vmatprep.subr.bf16.mxu0 %v9250_v29 }
 0x16d   : > { %v10069_v17 = vpop.f32.mrf.mxu1  ;;  %v714_v21 = vrot.slane %v545_v16, 6 }
 0x16e   : > { %v807_v24 = vrot.slane %v10069_v17, 2  ;;  %3722 = vmatpush1.bf16.msra.mxu1 %v9237_v62  ;;  %v10076_v25 = vadd.f32 %v10030_v31, %v758_v15  ;;  %v547_v26 = vpop.f32.mrf.mxu0 }
 0x16f   : > { %v10078_v27 = vpop.f32.mrf.mxu1  ;;  %8718 = vmatprep.subr.bf16.mxu1 %v9242_v45  ;;  %v715_v32 = vsel %vm703_vm0, %v713_v5, %v714_v21  ;;  %8701 = vmatpush3.bf16.msra.mxu0 %v9250_v29  ;;  %v9251_v5 = vld [vmem:[#allocation4 + $0x4e8] ss:$12 sps:$4 sm:$0xff]  }
 0x170   : > { %v804_v33 = vrot.slane %v10078_v27, 2  ;;  %v10085_v34 = vsel %vm784_vm1, %v806_v14, %v807_v24  ;;  %v759_v31 = vadd.f32 %v715_v32, %v547_v26  ;;  %v551_v37 = vpop.f32.mrf.mxu0  ;;  %3134 = vmatmul.mubr.bf16.gmra.mxu0 %v10000_v53  ;;  %4353 = vmatprep.subr.bf16.mxu0 %v9255_v36  ;;  %v10128_v32 = vld [vmem:[%s9864_s29 + $0x70] sm:$0xff]  }
 0x171   : > { %v1159_v38 = vpop.f32.mrf.mxu1  ;;  %3740 = vmatmul.mubr.bf16.vlgmr.msra.gmra.mxu1 %v10072_v19  ;;  %v716_v40 = vrot.slane %v551_v37, 6  ;;  %3143 = vmatprep.mubr.bf16.mxu0 %v9706_v0 }
 0x172   : > { %v1351_v42 = vrot.slane %v1159_v38, 6  ;;  %8719 = vmatpush3.bf16.msra.mxu1 %v9242_v45  ;;  %v10096_v43 = vsel %vm784_vm1, %v803_v30, %v804_v33  ;;  %v10098_v35 = vadd.f32 %v828_v39, %v759_v31  ;;  %v553_v53 = vpop.f32.mrf.mxu0  ;;  %3749 = vmatprep.mubr.bf16.mxu1 %v9706_v0 }
 0x173   : > { %v1161_v44 = vpop.f32.mrf.mxu1  ;;  %8720 = vmatprep.subr.bf16.mxu1 %v9245_v28  ;;  %v748_v22 = vsel %vm703_vm0, 0.0, %v716_v40 }
 0x174   : > { %v1391_v46 = vsel %vm703_vm0, 0.0, %v1351_v42  ;;  %v760_v47 = vadd.f32 %v748_v22, %v553_v53  ;;  %v555_v51 = vpop.f32.mrf.mxu0  ;;  %v9264_v53 = vld [vmem:[#allocation4 + $0x4b8] ss:$12 sps:$4 sm:$0xff]  }
 0x175   : > { %v10103_v48 = vadd.f32 %v1391_v46, %v1161_v44  ;;  %v1163_v52 = vpop.f32.mrf.mxu1  ;;  %v717_v58 = vrot.slane %v555_v51, 6  ;;  %v830_v44 = vsel %vm784_vm1, %v801_v54, 0.0 }
 0x176   : > { %v1352_v59 = vrot.slane %v1163_v52, 6  ;;  %8721 = vmatpush3.bf16.msra.mxu1 %v9245_v28  ;;  %v10108_v60 = vadd.f32 %v799_v6, %v760_v47  ;;  %v557_v62 = vpop.f32.mrf.mxu0 }
 0x177   : > { %v1165_v1 = vpop.f32.mrf.mxu1  ;;  %8722 = vmatprep.subr.bf16.mxu1 %v9248_v18  ;;  %v718_v3 = vsel %vm703_vm0, %v716_v40, %v717_v58 }
 0x178   : > { %v1353_v4 = vsel %vm703_vm0, %v1351_v42, %v1352_v59  ;;  %v761_v10 = vadd.f32 %v718_v3, %v557_v62  ;;  %v561_v45 = vpop.f32.mrf.mxu0  ;;  %3144 = vmatmul.mubr.bf16.gmra.mxu0 %v10016_v13  ;;  %v9256_v13 = vld [vmem:[#allocation4 + $0x4d0] ss:$12 sps:$4 sm:$0xff]  }
 0x179   : > { %v10115_v11 = vadd.f32 %v1353_v4, %v1165_v1  ;;  %v1169_v12 = vpop.f32.mrf.mxu1  ;;  %3750 = vmatmul.mubr.bf16.gmra.mxu1 %v10106_v56  ;;  %v719_v6 = vrot.slane %v561_v45, 6  ;;  %3153 = vmatprep.mubr.bf16.mxu0 %v9706_v0  ;;  %v10151_v4 = vld [vmem:[%s9864_s29 + $0x78] sm:$0xff]  }
 0x17a   : > { %v1354_v14 = vrot.slane %v1169_v12, 6  ;;  %3759 = vmatprep.mubr.bf16.mxu1 %v9706_v0  ;;  %v10121_v57 = vadd.f32 %v829_v2, %v761_v10  ;;  %v563_v61 = vpop.f32.mrf.mxu0  ;;  %8723 = vmatpush3.bf16.msra.mxu1 %v9248_v18 }
 0x17b   : > { %v1171_v15 = vpop.f32.mrf.mxu1  ;;  %v749_v16 = vsel %vm703_vm0, 0.0, %v719_v6  ;;  %8724 = vmatprep.subr.bf16.mxu1 %v9251_v5 }
 0x17c   : > { %v1392_v21 = vsel %vm703_vm0, 0.0, %v1354_v14  ;;  %v762_v26 = vadd.f32 %v749_v16, %v563_v61  ;;  %v565_v29 = vpop.f32.mrf.mxu0  ;;  %v831_v61 = vsel %vm784_vm1, %v804_v33, 0.0 }
 0x17d   : > { %v10125_v28 = vadd.f32 %v1392_v21, %v1171_v15  ;;  %v1173_v30 = vpop.f32.mrf.mxu1  ;;  %v720_v36 = vrot.slane %v565_v29, 6 }
 0x17e   : > { %v1355_v31 = vrot.slane %v1173_v30, 6  ;;  %v10131_v37 = vadd.f32 %v10056_v63, %v762_v26  ;;  %v567_v38 = vpop.f32.mrf.mxu0  ;;  %8725 = vmatpush3.bf16.msra.mxu1 %v9251_v5 }
 0x17f   : > { %v1175_v39 = vpop.f32.mrf.mxu1  ;;  %v721_v40 = vsel %vm703_vm0, %v719_v6, %v720_v36  ;;  %8726 = vmatprep.subr.bf16.mxu1 %v9256_v13 }
 0x180   : > { %v1356_v42 = vsel %vm703_vm0, %v1354_v14, %v1355_v31  ;;  %v763_v18 = vadd.f32 %v721_v40, %v567_v38  ;;  %v571_v46 = vpop.f32.mrf.mxu0  ;;  %3154 = vmatmul.mubr.bf16.gmra.mxu0 %v10021_v20  ;;  %v9272_v20 = vld [vmem:[#allocation4 + $0x4a0] ss:$12 sps:$4 sm:$0xff]   ;;  %v9280_v14 = vld [vmem:[#allocation4 + $0x488] ss:$12 sps:$4 sm:$0xff]  }
 0x181   : > { %v10138_v22 = vadd.f32 %v1356_v42, %v1175_v39  ;;  %v1179_v47 = vpop.f32.mrf.mxu1  ;;  %3760 = vmatmul.mubr.bf16.gmra.mxu1 %v10128_v32  ;;  %v722_v63 = vrot.slane %v571_v46, 6  ;;  %3163 = vmatprep.mubr.bf16.mxu0 %v9706_v0  ;;  %v10170_v31 = vld [vmem:[%s9864_s29 + $0x80] sm:$0xff]   ;;  %v9253_v46 = vld [vmem:[#allocation4 + $0x528] ss:$12 sps:$4 sm:$0xff]  }
 0x182   : > { %v1357_v51 = vrot.slane %v1179_v47, 6  ;;  %3769 = vmatprep.mubr.bf16.mxu1 %v9706_v0  ;;  %v10144_v52 = vadd.f32 %v830_v44, %v763_v18  ;;  %v573_v49 = vpop.f32.mrf.mxu0  ;;  %8727 = vmatpush3.bf16.msra.mxu1 %v9256_v13 }
 0x183   : > { %v1181_v54 = vpop.f32.mrf.mxu1  ;;  %v750_v58 = vsel %vm703_vm0, 0.0, %v722_v63  ;;  %8728 = vmatprep.subr.bf16.mxu1 %v9264_v53 }
 0x184   : > { %v1393_v59 = vsel %vm703_vm0, 0.0, %v1357_v51  ;;  %v764_v62 = vadd.f32 %v750_v58, %v573_v49  ;;  %v575_v2 = vpop.f32.mrf.mxu0  ;;  %v9259_v49 = vld [vmem:[#allocation4 + $0x514] ss:$12 sps:$4 sm:$0xff]  }
 0x185   : > { %v10148_v1 = vadd.f32 %v1393_v59, %v1181_v54  ;;  %v1183_v3 = vpop.f32.mrf.mxu1  ;;  %v723_v5 = vrot.slane %v575_v2, 6  ;;  %v9257_v59 = vld [vmem:[#allocation4 + $0x510] ss:$12 sps:$4 sm:$0xff]  }
 0x186   : > { %v1358_v10 = vrot.slane %v1183_v3, 6  ;;  %v10154_v45 = vadd.f32 %v10096_v43, %v764_v62  ;;  %v577_v12 = vpop.f32.mrf.mxu0  ;;  %8729 = vmatpush3.bf16.msra.mxu1 %v9264_v53 }
 0x187   : > { %v1185_v6 = vpop.f32.mrf.mxu1  ;;  %v724_v15 = vsel %vm703_vm0, %v722_v63, %v723_v5  ;;  %8730 = vmatprep.subr.bf16.mxu1 %v9272_v20 }
 0x188   : > { %v1359_v16 = vsel %vm703_vm0, %v1357_v51, %v1358_v10  ;;  %v765_v21 = vadd.f32 %v724_v15, %v577_v12  ;;  %v581_v26 = vpop.f32.mrf.mxu0  ;;  %3164 = vmatmul.mubr.bf16.gmra.mxu0 %v10044_v50  ;;  %v9288_v50 = vld [vmem:[#allocation4 + $0x5ec] ss:$12 sps:$4 sm:$0xff]  }
 0x189   : > { %v10161_v13 = vadd.f32 %v1359_v16, %v1185_v6  ;;  %v1189_v43 = vpop.f32.mrf.mxu1  ;;  %3770 = vmatmul.mubr.bf16.gmra.mxu1 %v10151_v4  ;;  %v725_v29 = vrot.slane %v581_v26, 6  ;;  %8702 = vmatprep.mubr.bf16.mxu0 %v10072_v19  ;;  %v10198_v16 = vld [vmem:[%s9864_s29 + $0x88] sm:$0xff]  }
 0x18a   : > { %v1360_v30 = vrot.slane %v1189_v43, 6  ;;  %3779 = vmatprep.mubr.bf16.mxu1 %v9706_v0  ;;  %v10167_v27 = vadd.f32 %v831_v61, %v765_v21  ;;  %v583_v33 = vpop.f32.mrf.mxu0  ;;  %8731 = vmatpush3.bf16.msra.mxu1 %v9272_v20  ;;  %v10192_v61 = vld [vmem:[#allocation7] ss:$0 sm:$0xff] }
 0x18b   : > { %v1191_v36 = vpop.f32.mrf.mxu1  ;;  %v751_v38 = vsel %vm703_vm0, 0.0, %v725_v29  ;;  %8732 = vmatprep.subr.bf16.mxu1 %v9280_v14 }
 0x18c   : > { %v1394_v39 = vsel %vm703_vm0, 0.0, %v1360_v30  ;;  %v766_v40 = vadd.f32 %v751_v38, %v583_v33  ;;  %v585_v53 = vpop.f32.mrf.mxu0  ;;  %v868_v33 = vadd.f32 %v10192_v61, %v10037_v41 }
 0x18d   : > { %v10174_v42 = vadd.f32 %v1394_v39, %v1191_v36  ;;  %v1193_v44 = vpop.f32.mrf.mxu1  ;;  %v726_v18 = vrot.slane %v585_v53, 6 }
 0x18e   : > { %v1361_v19 = vrot.slane %v1193_v44, 6  ;;  %v10177_v47 = vadd.f32 %v10085_v34, %v766_v40  ;;  %v587_v63 = vpop.f32.mrf.mxu0  ;;  %8733 = vmatpush3.bf16.msra.mxu1 %v9280_v14  ;;  %v832_v34 = vsel %vm784_vm1, %v807_v24, 0.0  ;;  %v9263_v14 = vld [vmem:[#allocation4 + $0x4fc] ss:$12 sps:$4 sm:$0xff]  }
 0x18f   : > { %v1195_v51 = vpop.f32.mrf.mxu1  ;;  %v727_v54 = vsel %vm703_vm0, %v725_v29, %v726_v18  ;;  %4996 = vmatprep.subr.bf16.mxu1 %v9288_v50  ;;  %v9261_v29 = vld [vmem:[#allocation4 + $0x4f8] ss:$12 sps:$4 sm:$0xff]  }
 0x190   : > { %v1362_v58 = vsel %vm703_vm0, %v1360_v30, %v1361_v19  ;;  %v767_v20 = vadd.f32 %v727_v54, %v587_v63  ;;  %v8576_v3 = vpop.f32.mrf.mxu0  ;;  %8703 = vmatmul.mubr.bf16.vlgmr.msra.gmra.mxu0 %v10106_v56  ;;  %v865_v30 = vadd.f32 %v10192_v61, %v10009_v8  ;;  %v9267_v50 = vld [vmem:[#allocation4 + $0x4e4] ss:$12 sps:$4 sm:$0xff]   ;;  %v866_v63 = vadd.f32 %v10192_v61, %v10011_v9 }
 0x191   : > { %v10181_v62 = vadd.f32 %v1362_v58, %v1195_v51  ;;  %v1199_v2 = vpop.f32.mrf.mxu1  ;;  %3780 = vmatmul.mubr.bf16.gmra.mxu1 %v10170_v31  ;;  %4354 = vmatpush1.bf16.msra.mxu0 %v9253_v46  ;;  %v1434_v21 = vrot.slane %v8576_v3, 2 }
 0x192   : > { %v1363_v5 = vrot.slane %v1199_v2, 6  ;;  %3789 = vmatprep.mubr.bf16.mxu1 %v9706_v0  ;;  %v10189_v10 = vadd.f32 %v832_v34, %v767_v20  ;;  %v1272_v6 = vpop.f32.mrf.mxu0  ;;  %4355 = vmatprep.subr.bf16.mxu0 %v9259_v49  ;;  %v9271_v2 = vld [vmem:[#allocation4 + $0x4cc] ss:$12 sps:$4 sm:$0xff]  }
 0x193   : > { %v1201_v12 = vpop.f32.mrf.mxu1  ;;  %8706 = vmatprep.mubr.bf16.mxu0 %v10128_v32  ;;  %v867_v32 = vadd.f32 %v10192_v61, %v10024_v23  ;;  %v1431_v36 = vrot.slane %v1272_v6, 2 }
 0x194   : > { %v1395_v56 = vsel %vm703_vm0, 0.0, %v1363_v5  ;;  %v8577_v24 = vpop.f32.mrf.mxu0 }
 0x195   : > { %v10195_v17 = vadd.f32 %v1395_v56, %v1201_v12  ;;  %v1203_v15 = vpop.f32.mrf.mxu1  ;;  %v1435_v43 = vrot.slane %v8577_v24, 2  ;;  %4356 = vmatpush1.bf16.msra.mxu0 %v9257_v59  ;;  %v9268_v56 = vld [vmem:[%s9864_s29 + $0x90] sm:$0xff]  }
 0x196   : > { %v1364_v26 = vrot.slane %v1203_v15, 6  ;;  %v1275_v39 = vpop.f32.mrf.mxu0  ;;  %4357 = vmatprep.subr.bf16.mxu0 %v9263_v14  ;;  %v9269_v24 = vld [vmem:[#allocation4 + $0x4c8] ss:$12 sps:$4 sm:$0xff]  }
 0x197   : > { %v1205_v38 = vpop.f32.mrf.mxu1  ;;  %v1436_v40 = vsel %vm784_vm1, %v1434_v21, %v1435_v43  ;;  %v1472_v53 = vsel %vm784_vm1, %v1435_v43, 0.0  ;;  %v1432_v18 = vrot.slane %v1275_v39, 2  ;;  %v869_v21 = vadd.f32 %v10192_v61, %v10047_v55 }
 0x198   : > { %v1365_v44 = vsel %vm703_vm0, %v1363_v5, %v1364_v26  ;;  %v1481_v8 = vadd.f32 %v1436_v40, %v10125_v28  ;;  %v1482_v19 = vadd.f32 %v1472_v53, %v10138_v22  ;;  %v8580_v41 = vpop.f32.mrf.mxu0  ;;  %8707 = vmatmul.mubr.bf16.gmra.mxu0 %v10151_v4  ;;  %v9265_v28 = vld [vmem:[#allocation4 + $0x4e0] ss:$12 sps:$4 sm:$0xff]   ;;  %v872_v26 = vadd.f32 %v10192_v61, %v10098_v35 }
 0x199   : > { %v10211_v23 = vadd.f32 %v1365_v44, %v1205_v38  ;;  %v1209_v46 = vpop.f32.mrf.mxu1  ;;  %3790 = vmatmul.mubr.bf16.gmra.mxu1 %v10198_v16  ;;  %v1433_v51 = vsel %vm784_vm1, %v1431_v36, %v1432_v18  ;;  %v1471_v49 = vsel %vm784_vm1, %v1432_v18, 0.0  ;;  %4358 = vmatpush1.bf16.msra.mxu0 %v9261_v29  ;;  %v870_v35 = vadd.f32 %v10192_v61, %v10065_v7 }
 0x19a   : > { %v1366_v54 = vrot.slane %v1209_v46, 6  ;;  %3799 = vmatprep.mubr.bf16.mxu1 %v9706_v0  ;;  %v10220_v22 = vadd.f32 %v1481_v8, %v867_v32  ;;  %v10222_v58 = vadd.f32 %v1482_v19, %v868_v33  ;;  %v1479_v59 = vadd.f32 %v1433_v51, %v10103_v48  ;;  %v1288_v9 = vpop.f32.mrf.mxu0  ;;  %4359 = vmatprep.subr.bf16.mxu0 %v9267_v50  ;;  %v9275_v32 = vld [vmem:[#allocation4 + $0x4b4] ss:$12 sps:$4 sm:$0xff]   ;;  %v9273_v19 = vld [vmem:[#allocation4 + $0x4b0] ss:$12 sps:$4 sm:$0xff]  }
 0x19b   : > { %v1480_v4 = vadd.f32 %v1471_v49, %v10115_v11  ;;  %v1211_v20 = vpop.f32.mrf.mxu1  ;;  %8710 = vmatprep.mubr.bf16.mxu0 %v10170_v31  ;;  %v1440_v48 = vrot.slane %v8580_v41, 2  ;;  %v871_v31 = vadd.f32 %v10192_v61, %v10076_v25  ;;  %v1437_v43 = vrot.slane %v1288_v9, 2 }
 0x19c   : > { %v1396_v3 = vsel %vm703_vm0, 0.0, %v1366_v54  ;;  %v10228_v34 = vadd.f32 %v1479_v59, %v865_v30  ;;  %v8581_v14 = vpop.f32.mrf.mxu0 }
 0x19d   : > { %v10230_v5 = vadd.f32 %v1480_v4, %v866_v63  ;;  %v10232_v12 = vadd.f32 %v1396_v3, %v1211_v20  ;;  %v1213_v6 = vpop.f32.mrf.mxu1  ;;  %v1441_v11 = vrot.slane %v8581_v14, 2  ;;  %4360 = vmatpush1.bf16.msra.mxu0 %v9265_v28  ;;  %v9279_v63 = vld [vmem:[#allocation4 + $0x49c] ss:$12 sps:$4 sm:$0xff]   ;;  %v873_v3 = vadd.f32 %v10192_v61, %v10108_v60 }
 0x19e   : > { %v1367_v15 = vrot.slane %v1213_v6, 6  ;;  %v1291_v30 = vpop.f32.mrf.mxu0  ;;  %4361 = vmatprep.subr.bf16.mxu0 %v9271_v2  ;;  %v9276_v20 = vld [vmem:[%s9864_s29 + $0x98] sm:$0xff]   ;;  %v875_v6 = vadd.f32 %v10192_v61, %v10131_v37  ;;  %v876_v14 = vadd.f32 %v10192_v61, %v10144_v52 }
 0x19f   : > { %v1215_v29 = vpop.f32.mrf.mxu1  ;;  %v1442_v33 = vsel %vm784_vm1, %v1440_v48, %v1441_v11  ;;  %v1474_v36 = vsel %vm784_vm1, %v1441_v11, 0.0  ;;  %v1438_v39 = vrot.slane %v1291_v30, 2  ;;  %v9277_v2 = vld [vmem:[#allocation4 + $0x498] ss:$12 sps:$4 sm:$0xff]  }
 0x1a0   : > { %v1368_v38 = vsel %vm703_vm0, %v1366_v54, %v1367_v15  ;;  %v1485_v55 = vadd.f32 %v1442_v33, %v10174_v42  ;;  %v1486_v50 = vadd.f32 %v1474_v36, %v10181_v62  ;;  %v8584_v53 = vpop.f32.mrf.mxu0  ;;  %8711 = vmatmul.mubr.bf16.gmra.mxu0 %v10198_v16  ;;  %v9283_v11 = vld [vmem:[#allocation4 + $0x484] ss:$12 sps:$4 sm:$0xff]  }
 0x1a1   : > { %v1410_v25 = vadd.f32 %v1368_v38, %v1215_v29  ;;  %v1219_v40 = vpop.f32.mrf.mxu1  ;;  %3800 = vmatmul.mubr.bf16.gmra.mxu1 %v9268_v56  ;;  %v1439_v44 = vsel %vm784_vm1, %v1437_v43, %v1438_v39  ;;  %v1473_v18 = vsel %vm784_vm1, %v1438_v39, 0.0  ;;  %4362 = vmatpush1.bf16.msra.mxu0 %v9269_v24  ;;  %v1446_v9 = vrot.slane %v8584_v53, 2  ;;  %v9284_v43 = vld [vmem:[%s9864_s29 + $0x10] sm:$0xff]   ;;  %v9281_v39 = vld [vmem:[#allocation4 + $0x480] ss:$12 sps:$4 sm:$0xff]  }
 0x1a2   : > { %v1369_v8 = vrot.slane %v1219_v40, 6  ;;  %3809 = vmatprep.mubr.bf16.mxu1 %v9706_v0  ;;  %v10252_v42 = vadd.f32 %v1485_v55, %v871_v31  ;;  %v10254_v62 = vadd.f32 %v1486_v50, %v872_v26  ;;  %v1483_v46 = vadd.f32 %v1439_v44, %v10148_v1  ;;  %v1304_v7 = vpop.f32.mrf.mxu0  ;;  %4363 = vmatprep.subr.bf16.mxu0 %v9275_v32  ;;  %v9289_v53 = vld [vmem:[#allocation4 + $0x5f0] ss:$12 sps:$4 sm:$0xff]  }
 0x1a3   : > { %v1484_v16 = vadd.f32 %v1473_v18, %v10161_v13  ;;  %v1221_v41 = vpop.f32.mrf.mxu1  ;;  %8714 = vmatprep.mubr.bf16.mxu0 %v9268_v56  ;;  %v1443_v56 = vrot.slane %v1304_v7, 2  ;;  %v874_v32 = vadd.f32 %v10192_v61, %v10121_v57  ;;  %v9286_v7 = vld [vmem:[#allocation4 + $0x5e8] ss:$12 sps:$4 sm:$0xff]  }
 0x1a4   : > { %v1397_v51 = vsel %vm703_vm0, 0.0, %v1369_v8  ;;  %v10259_v49 = vadd.f32 %v1483_v46, %v869_v21  ;;  %v8585_v4 = vpop.f32.mrf.mxu0 }
 0x1a5   : > { %v10261_v54 = vadd.f32 %v1484_v16, %v870_v35  ;;  %v10263_v28 = vadd.f32 %v1397_v51, %v1221_v41  ;;  %v1223_v59 = vpop.f32.mrf.mxu1  ;;  %v1447_v13 = vrot.slane %v8585_v4, 2  ;;  %4364 = vmatpush1.bf16.msra.mxu0 %v9273_v19  ;;  %v10296_v16 = vld [vmem:[%s9864_s29 + $0x18] sm:$0xff]   ;;  %v878_v51 = vadd.f32 %v10192_v61, %v10167_v27 }
 0x1a6   : > { %v1370_v1 = vrot.slane %v1223_v59, 6  ;;  %v1307_v15 = vpop.f32.mrf.mxu0  ;;  %4365 = vmatprep.subr.bf16.mxu0 %v9279_v63  ;;  %v877_v63 = vadd.f32 %v10192_v61, %v10154_v45  ;;  %v879_v59 = vadd.f32 %v10192_v61, %v10177_v47  ;;  %v880_v45 = vadd.f32 %v10192_v61, %v10189_v10  ;;  %v9298_v47 = vld [vmem:[#allocation4 + $0x5d8] ss:$12 sps:$4 sm:$0xff]  }
 0x1a7   : > { %v1225_v48 = vpop.f32.mrf.mxu1  ;;  %v1448_v24 = vsel %vm784_vm1, %v1446_v9, %v1447_v13  ;;  %v1476_v21 = vsel %vm784_vm1, %v1447_v13, 0.0  ;;  %v1444_v26 = vrot.slane %v1307_v15, 2  ;;  %v9292_v9 = vld [vmem:[#allocation4 + $0x5d4] ss:$12 sps:$4 sm:$0xff]  }
 0x1a8   : > { %v1371_v31 = vsel %vm703_vm0, %v1369_v8, %v1370_v1  ;;  %v1489_v60 = vadd.f32 %v1448_v24, %v10232_v12  ;;  %v1490_v29 = vadd.f32 %v1476_v21, %v1410_v25  ;;  %v8588_v52 = vpop.f32.mrf.mxu0  ;;  %8715 = vmatmul.mubr.bf16.gmra.mxu0 %v9276_v20 }
 0x1a9   : > { %v10277_v37 = vadd.f32 %v1371_v31, %v1225_v48  ;;  %v1229_v30 = vpop.f32.mrf.mxu1  ;;  %3810 = vmatmul.mubr.bf16.gmra.mxu1 %v9276_v20  ;;  %v1445_v33 = vsel %vm784_vm1, %v1443_v56, %v1444_v26  ;;  %v1475_v36 = vsel %vm784_vm1, %v1444_v26, 0.0  ;;  %4366 = vmatpush1.bf16.msra.mxu0 %v9277_v2  ;;  %v1452_v41 = vrot.slane %v8588_v52, 2  ;;  %v9290_v31 = vld [vmem:[#allocation4 + $0x5d0] ss:$12 sps:$4 sm:$0xff]   ;;  %v9307_v52 = vld [vmem:[#allocation4 + $0x5c0] ss:$12 sps:$4 sm:$0xff]  }
 0x1aa   : > { %v1372_v38 = vrot.slane %v1229_v30, 6  ;;  %4385 = vmatprep.mubr.bf16.mxu0 %v9706_v0  ;;  %v10284_v12 = vadd.f32 %v1489_v60, %v875_v6  ;;  %v10286_v55 = vadd.f32 %v1490_v29, %v876_v14  ;;  %v1487_v50 = vadd.f32 %v1445_v33, %v10195_v17  ;;  %v1320_v57 = vpop.f32.mrf.mxu0  ;;  %4367 = vmatprep.subr.bf16.mxu0 %v9283_v11  ;;  %v10307_v6 = vld [vmem:[%s9864_s29 + $0x20] sm:$0xff]   ;;  %v9297_v30 = vld [vmem:[#allocation4 + $0x5bc] ss:$12 sps:$4 sm:$0xff]  }
 0x1ab   : > { %v1488_v25 = vadd.f32 %v1475_v36, %v10211_v23  ;;  %v1231_v40 = vpop.f32.mrf.mxu1  ;;  %8734 = vmatprep.mubr.bf16.mxu1 %v9284_v43  ;;  %v1449_v1 = vrot.slane %v1320_v57, 2 }
 0x1ac   : > { %v1398_v35 = vsel %vm703_vm0, 0.0, %v1372_v38  ;;  %v10291_v44 = vadd.f32 %v1487_v50, %v873_v3  ;;  %v8589_v46 = vpop.f32.mrf.mxu0  ;;  %v10331_v50 = vld [vmem:[%s9864_s29 + $0x28] sm:$0xff]  }
 0x1ad   : > { %v10293_v18 = vadd.f32 %v1488_v25, %v874_v32  ;;  %v1413_v8 = vadd.f32 %v1398_v35, %v1231_v40  ;;  %v1233_v19 = vpop.f32.mrf.mxu1  ;;  %v1453_v23 = vrot.slane %v8589_v46, 2  ;;  %4368 = vmatpush1.bf16.msra.mxu0 %v9281_v39  ;;  %v10335_v46 = vld [vmem:[%s9864_s29 + $0x30] sm:$0xff]  }
 0x1ae   : > { %v1373_v17 = vrot.slane %v1233_v19, 6  ;;  %v1323_v20 = vpop.f32.mrf.mxu0  ;;  %8750 = vmatprep.subr.bf16.mxu0 %v9289_v53  ;;  %v9301_v19 = vld [vmem:[#allocation4 + $0x5a4] ss:$12 sps:$4 sm:$0xff]  }
 0x1af   : > { %v1235_v4 = vpop.f32.mrf.mxu1  ;;  %v1454_v13 = vsel %vm784_vm1, %v1452_v41, %v1453_v23  ;;  %v1450_v3 = vrot.slane %v1323_v20, 2  ;;  %v1478_v15 = vsel %vm784_vm1, %v1453_v23, 0.0 }
 0x1b0   : > { %v1374_v2 = vsel %vm703_vm0, %v1372_v38, %v1373_v17  ;;  %v1493_v14 = vadd.f32 %v1454_v13, %v1413_v8  ;;  %v1805_v56 = vpop.f32.mrf.mxu0  ;;  %4386 = vmatmul.mubr.bf16.vlgmr.msra.gmra.mxu0 %v9284_v43  ;;  %v9299_v13 = vld [vmem:[#allocation4 + $0x5a0] ss:$12 sps:$4 sm:$0xff]  }
 0x1b1   : > { %v1414_v27 = vadd.f32 %v1374_v2, %v1235_v4  ;;  %v8608_v48 = vpop.f32.mrf.mxu1  ;;  %8735 = vmatmul.mubr.bf16.vlgmr.msra.gmra.mxu1 %v10296_v16  ;;  %v1451_v11 = vsel %vm784_vm1, %v1449_v1, %v1450_v3  ;;  %v1477_v24 = vsel %vm784_vm1, %v1450_v3, 0.0  ;;  %v1997_v21 = vrot.slane %v1805_v56, 6  ;;  %8751 = vmatpush3.bf16.msra.mxu0 %v9289_v53  ;;  %v9295_v53 = vld [vmem:[#allocation4 + $0x5b8] ss:$12 sps:$4 sm:$0xff]   ;;  %v9316_v4 = vld [vmem:[#allocation4 + $0x5a8] ss:$12 sps:$4 sm:$0xff]  }
 0x1b2   : > { %4997 = vmatpush1.bf16.msra.mxu1 %v9286_v7  ;;  %v10315_v26 = vadd.f32 %v1493_v14, %v879_v59  ;;  %v1491_v61 = vadd.f32 %v1451_v11, %v10263_v28  ;;  %v1492_v43 = vadd.f32 %v1477_v24, %v10277_v37  ;;  %v1807_v60 = vpop.f32.mrf.mxu0  ;;  %4395 = vmatprep.mubr.bf16.mxu0 %v9706_v0  ;;  %v2080_v25 = vrot.slane %v8608_v48, 2  ;;  %v10357_v24 = vld [vmem:[%s9864_s29 + $0x38] sm:$0xff]  }
 0x1b3   : > { %v1494_v10 = vadd.f32 %v1478_v15, %v1414_v27  ;;  %v1918_v29 = vpop.f32.mrf.mxu1  ;;  %4998 = vmatprep.subr.bf16.mxu1 %v9292_v9  ;;  %v2037_v32 = vsel %vm703_vm0, 0.0, %v1997_v21  ;;  %8738 = vmatprep.mubr.bf16.mxu1 %v10307_v6 }
 0x1b4   : > { %v10324_v36 = vadd.f32 %v1491_v61, %v877_v63  ;;  %v10326_v38 = vadd.f32 %v1492_v43, %v878_v51  ;;  %v2045_v28 = vadd.f32 %v2037_v32, %v1807_v60  ;;  %v1809_v37 = vpop.f32.mrf.mxu0  ;;  %8752 = vmatprep.subr.bf16.mxu0 %v9298_v47  ;;  %v2077_v41 = vrot.slane %v1918_v29, 2  ;;  %v9304_v61 = vld [vmem:[#allocation4 + $0x588] ss:$12 sps:$4 sm:$0xff]   ;;  %v10361_v29 = vld [vmem:[%s9864_s29 + $0x40] sm:$0xff]  }
 0x1b5   : > { %v10322_v33 = vadd.f32 %v1494_v10, %v880_v45  ;;  %v10328_v39 = vpop.f32.mrf.mxu1  ;;  %v1998_v40 = vrot.slane %v1809_v37, 6  ;;  %8753 = vmatpush3.bf16.msra.mxu0 %v9298_v47  ;;  %v9321_v37 = vld [vmem:[#allocation4 + $0x590] ss:$12 sps:$4 sm:$0xff]  }
 0x1b6   : > { %v2081_v57 = vrot.slane %v10328_v39, 2  ;;  %4999 = vmatpush1.bf16.msra.mxu1 %v9290_v31  ;;  %v1811_v35 = vpop.f32.mrf.mxu0  ;;  %8754 = vmatprep.subr.bf16.mxu0 %v9307_v52 }
 0x1b7   : > { %v1921_v8 = vpop.f32.mrf.mxu1  ;;  %5000 = vmatprep.subr.bf16.mxu1 %v9297_v30  ;;  %v1999_v17 = vsel %vm703_vm0, %v1997_v21, %v1998_v40 }
 0x1b8   : > { %v2078_v23 = vrot.slane %v1921_v8, 2  ;;  %v2082_v7 = vsel %vm784_vm1, %v2080_v25, %v2081_v57  ;;  %v2046_v63 = vadd.f32 %v1999_v17, %v1811_v35  ;;  %v1815_v51 = vpop.f32.mrf.mxu0  ;;  %4396 = vmatmul.mubr.bf16.gmra.mxu0 %v10296_v16  ;;  %v9306_v16 = vld [vmem:[#allocation4 + $0x58c] ss:$12 sps:$4 sm:$0xff]   ;;  %v2118_v8 = vsel %vm784_vm1, %v2081_v57, 0.0  ;;  %v9308_v17 = vld [vmem:[#allocation4 + $0x570] ss:$12 sps:$4 sm:$0xff]  }
 0x1b9   : > { %v8612_v59 = vpop.f32.mrf.mxu1  ;;  %8739 = vmatmul.mubr.bf16.gmra.mxu1 %v10331_v50  ;;  %v2000_v1 = vrot.slane %v1815_v51, 6  ;;  %4405 = vmatprep.mubr.bf16.mxu0 %v9706_v0 }
 0x1ba   : > { %v2079_v20 = vsel %vm784_vm1, %v2077_v41, %v2078_v23  ;;  %v2117_v9 = vsel %vm784_vm1, %v2078_v23, 0.0  ;;  %5001 = vmatpush1.bf16.msra.mxu1 %v9295_v53  ;;  %v1817_v45 = vpop.f32.mrf.mxu0  ;;  %8742 = vmatprep.mubr.bf16.mxu1 %v10335_v46  ;;  %v2086_v21 = vrot.slane %v8612_v59, 2 }
 0x1bb   : > { %v2125_v2 = vadd.f32 %v2079_v20, %v2045_v28  ;;  %v2126_v3 = vadd.f32 %v2117_v9, %v2046_v63  ;;  %v1934_v14 = vpop.f32.mrf.mxu1  ;;  %5002 = vmatprep.subr.bf16.mxu1 %v9301_v19  ;;  %v2038_v27 = vsel %vm703_vm0, 0.0, %v2000_v1  ;;  %8755 = vmatpush3.bf16.msra.mxu0 %v9307_v52  ;;  %v10387_v20 = vld [vmem:[%s9864_s29 + $0x48] sm:$0xff]  }
 0x1bc   : > { %v2047_v47 = vadd.f32 %v2038_v27, %v1817_v45  ;;  %v1819_v15 = vpop.f32.mrf.mxu0  ;;  %8756 = vmatprep.subr.bf16.mxu0 %v9316_v4  ;;  %v2083_v30 = vrot.slane %v1934_v14, 2 }
 0x1bd   : > { %v10349_v56 = vadd.f32 %v2125_v2, %v10228_v34  ;;  %v10352_v48 = vadd.f32 %v2126_v3, %v10230_v5  ;;  %v10354_v11 = vpop.f32.mrf.mxu1  ;;  %v2001_v31 = vrot.slane %v1819_v15, 6  ;;  %v9310_v5 = vld [vmem:[#allocation4 + $0x574] ss:$12 sps:$4 sm:$0xff]   ;;  %v9313_v2 = vld [vmem:[#allocation4 + $0x558] ss:$12 sps:$4 sm:$0xff]  }
 0x1be   : > { %v2087_v10 = vrot.slane %v10354_v11, 2  ;;  %5003 = vmatpush1.bf16.msra.mxu1 %v9299_v13  ;;  %v2127_v43 = vadd.f32 %v2082_v7, %v2047_v47  ;;  %v1821_v34 = vpop.f32.mrf.mxu0  ;;  %v9328_v11 = vld [vmem:[#allocation4 + $0x680] ss:$12 sps:$4 sm:$0xff]  }
 0x1bf   : > { %v1937_v60 = vpop.f32.mrf.mxu1  ;;  %5004 = vmatprep.subr.bf16.mxu1 %v9306_v16  ;;  %v2002_v52 = vsel %vm703_vm0, %v2000_v1, %v2001_v31  ;;  %8757 = vmatpush3.bf16.msra.mxu0 %v9316_v4 }
 0x1c0   : > { %v2084_v32 = vrot.slane %v1937_v60, 2  ;;  %v10367_v28 = vsel %vm784_vm1, %v2086_v21, %v2087_v10  ;;  %v10370_v25 = vadd.f32 %v2127_v43, %v10220_v22  ;;  %v2048_v40 = vadd.f32 %v2002_v52, %v1821_v34  ;;  %v1825_v53 = vpop.f32.mrf.mxu0  ;;  %4406 = vmatmul.mubr.bf16.gmra.mxu0 %v10307_v6  ;;  %v9324_v22 = vld [vmem:[#allocation4 + $0x578] ss:$12 sps:$4 sm:$0xff]   ;;  %v9315_v6 = vld [vmem:[#allocation4 + $0x55c] ss:$12 sps:$4 sm:$0xff]   ;;  %8758 = vmatprep.subr.bf16.mxu0 %v9321_v37 }
 0x1c1   : > { %v8616_v35 = vpop.f32.mrf.mxu1  ;;  %8743 = vmatmul.mubr.bf16.gmra.mxu1 %v10357_v24  ;;  %v2003_v19 = vrot.slane %v1825_v53, 6  ;;  %4415 = vmatprep.mubr.bf16.mxu0 %v9706_v0  ;;  %v9327_v34 = vld [vmem:[#allocation4 + $0x560] ss:$12 sps:$4 sm:$0xff]  }
 0x1c2   : > { %5005 = vmatpush1.bf16.msra.mxu1 %v9304_v61  ;;  %v2085_v41 = vsel %vm784_vm1, %v2083_v30, %v2084_v32  ;;  %v2128_v23 = vadd.f32 %v2118_v8, %v2048_v40  ;;  %v1827_v7 = vpop.f32.mrf.mxu0  ;;  %8746 = vmatprep.mubr.bf16.mxu1 %v10361_v29  ;;  %v2092_v9 = vrot.slane %v8616_v35, 2  ;;  %v2119_v60 = vsel %vm784_vm1, %v2084_v32, 0.0  ;;  %v9317_v30 = vld [vmem:[#allocation4 + $0x540] ss:$12 sps:$4 sm:$0xff]  }
 0x1c3   : > { %v1950_v63 = vpop.f32.mrf.mxu1  ;;  %5006 = vmatprep.subr.bf16.mxu1 %v9310_v5  ;;  %v2039_v39 = vsel %vm703_vm0, 0.0, %v2003_v19  ;;  %8759 = vmatpush3.bf16.msra.mxu0 %v9321_v37 }
 0x1c4   : > { %v10382_v57 = vadd.f32 %v2128_v23, %v10222_v58  ;;  %v2049_v51 = vadd.f32 %v2039_v39, %v1827_v7  ;;  %v1829_v59 = vpop.f32.mrf.mxu0  ;;  %8760 = vmatprep.subr.bf16.mxu0 %v9324_v22  ;;  %v9319_v58 = vld [vmem:[#allocation4 + $0x544] ss:$12 sps:$4 sm:$0xff]   ;;  %v2089_v16 = vrot.slane %v1950_v63, 2 }
 0x1c5   : > { %v10384_v4 = vpop.f32.mrf.mxu1  ;;  %v2004_v1 = vrot.slane %v1829_v59, 6 }
 0x1c6   : > { %v2093_v13 = vrot.slane %v10384_v4, 2  ;;  %5007 = vmatpush1.bf16.msra.mxu1 %v9308_v17  ;;  %v2129_v3 = vadd.f32 %v2085_v41, %v2049_v51  ;;  %v1831_v45 = vpop.f32.mrf.mxu0  ;;  %v10419_v41 = vld [vmem:[%s9864_s29 + $0x40] sm:$0xff]  }
 0x1c7   : > { %v10390_v14 = vpop.f32.mrf.mxu1  ;;  %5008 = vmatprep.subr.bf16.mxu1 %v9315_v6  ;;  %v2005_v27 = vsel %vm703_vm0, %v2003_v19, %v2004_v1  ;;  %8761 = vmatpush3.bf16.msra.mxu0 %v9324_v22 }
 0x1c8   : > { %v2090_v47 = vrot.slane %v10390_v14, 2  ;;  %v10397_v15 = vsel %vm784_vm1, %v2092_v9, %v2093_v13  ;;  %v10400_v21 = vadd.f32 %v2129_v3, %v10259_v49  ;;  %v2050_v31 = vadd.f32 %v2005_v27, %v1831_v45  ;;  %v1835_v61 = vpop.f32.mrf.mxu0  ;;  %4416 = vmatmul.mubr.bf16.gmra.mxu0 %v10331_v50  ;;  %v9322_v50 = vld [vmem:[#allocation4 + $0x6b0] ss:$12 sps:$4 sm:$0xff]   ;;  %8762 = vmatprep.subr.bf16.mxu0 %v9327_v34  ;;  %v9330_v9 = vld [vmem:[#allocation4 + $0x548] ss:$12 sps:$4 sm:$0xff]  }
 0x1c9   : > { %v8620_v43 = vpop.f32.mrf.mxu1  ;;  %8747 = vmatmul.mubr.bf16.gmra.mxu1 %v10387_v20  ;;  %v2006_v5 = vrot.slane %v1835_v61, 6  ;;  %4425 = vmatprep.mubr.bf16.mxu0 %v9706_v0 }
 0x1ca   : > { %5009 = vmatpush1.bf16.msra.mxu1 %v9313_v2  ;;  %v10409_v49 = vsel %vm784_vm1, %v2089_v16, %v2090_v47  ;;  %v2130_v52 = vadd.f32 %v2119_v60, %v2050_v31  ;;  %v1837_v37 = vpop.f32.mrf.mxu0  ;;  %5028 = vmatprep.mubr.bf16.mxu1 %v9706_v0  ;;  %v2098_v17 = vrot.slane %v8620_v43, 2  ;;  %v9335_v31 = vld [vmem:[#allocation4 + $0x6ac] ss:$12 sps:$4 sm:$0xff]  }
 0x1cb   : > { %v1966_v40 = vpop.f32.mrf.mxu1  ;;  %5010 = vmatprep.subr.bf16.mxu1 %v9319_v58  ;;  %v2040_v32 = vsel %vm703_vm0, 0.0, %v2006_v5  ;;  %8763 = vmatpush3.bf16.msra.mxu0 %v9327_v34  ;;  %v2120_v58 = vsel %vm784_vm1, %v2087_v10, 0.0 }
 0x1cc   : > { %v10414_v53 = vadd.f32 %v2130_v52, %v10261_v54  ;;  %v2051_v35 = vadd.f32 %v2040_v32, %v1837_v37  ;;  %v1839_v8 = vpop.f32.mrf.mxu0  ;;  %v9325_v54 = vld [vmem:[#allocation4 + $0x698] ss:$12 sps:$4 sm:$0xff]   ;;  %v2095_v22 = vrot.slane %v1966_v40, 2  ;;  %8764 = vmatprep.subr.bf16.mxu0 %v9330_v9  ;;  %v10455_v40 = vld [vmem:[%s9864_s29 + $0x48] sm:$0xff]  }
 0x1cd   : > { %v10416_v19 = vpop.f32.mrf.mxu1  ;;  %v2007_v23 = vrot.slane %v1839_v8, 6 }
 0x1ce   : > { %v2099_v7 = vrot.slane %v10416_v19, 2  ;;  %5011 = vmatpush1.bf16.msra.mxu1 %v9317_v30  ;;  %v2131_v63 = vadd.f32 %v10367_v28, %v2051_v35  ;;  %v1841_v6 = vpop.f32.mrf.mxu0 }
 0x1cf   : > { %v10423_v39 = vpop.f32.mrf.mxu1  ;;  %8782 = vmatprep.subr.bf16.mxu1 %v9322_v50  ;;  %v2008_v51 = vsel %vm703_vm0, %v2006_v5, %v2007_v23  ;;  %8765 = vmatpush3.bf16.msra.mxu0 %v9330_v9 }
 0x1d0   : > { %v2096_v59 = vrot.slane %v10423_v39, 2  ;;  %v10430_v1 = vsel %vm784_vm1, %v2098_v17, %v2099_v7  ;;  %v10433_v2 = vadd.f32 %v2131_v63, %v10252_v42  ;;  %v2052_v28 = vadd.f32 %v2008_v51, %v1841_v6  ;;  %v1845_v3 = vpop.f32.mrf.mxu0  ;;  %4426 = vmatmul.mubr.bf16.gmra.mxu0 %v10335_v46  ;;  %5642 = vmatprep.subr.bf16.mxu0 %v9335_v31  ;;  %v9331_v63 = vld [vmem:[#allocation4 + $0x668] ss:$12 sps:$4 sm:$0xff]  }
 0x1d1   : > { %v2451_v45 = vpop.f32.mrf.mxu1  ;;  %5029 = vmatmul.mubr.bf16.vlgmr.msra.gmra.mxu1 %v10419_v41  ;;  %v2009_v16 = vrot.slane %v1845_v3, 6  ;;  %4435 = vmatprep.mubr.bf16.mxu0 %v9706_v0 }
 0x1d2   : > { %v2644_v27 = vrot.slane %v2451_v45, 4  ;;  %8783 = vmatpush3.bf16.msra.mxu1 %v9322_v50  ;;  %v10444_v42 = vsel %vm784_vm1, %v2095_v22, %v2096_v59  ;;  %v2132_v46 = vadd.f32 %v2120_v58, %v2052_v28  ;;  %v1847_v61 = vpop.f32.mrf.mxu0  ;;  %5038 = vmatprep.mubr.bf16.mxu1 %v9706_v0 }
 0x1d3   : > { %v2453_v43 = vpop.f32.mrf.mxu1  ;;  %8784 = vmatprep.subr.bf16.mxu1 %v9325_v54  ;;  %v2041_v10 = vsel %vm703_vm0, 0.0, %v2009_v16 }
 0x1d4   : > { %v2684_v34 = vsel %vm2643_vm2, 0.0, %v2644_v27  ;;  %v10450_v60 = vadd.f32 %v2132_v46, %v10254_v62  ;;  %v2053_v5 = vadd.f32 %v2041_v10, %v1847_v61  ;;  %v1849_v52 = vpop.f32.mrf.mxu0 }
 0x1d5   : > { %v10452_v30 = vadd.f32 %v2684_v34, %v2453_v43  ;;  %v2455_v37 = vpop.f32.mrf.mxu1  ;;  %v2010_v50 = vrot.slane %v1849_v52, 6  ;;  %v10480_v43 = vld [vmem:[%s9864_s29 + $0x50] sm:$0xff]  }
 0x1d6   : > { %v2645_v32 = vrot.slane %v2455_v37, 4  ;;  %8785 = vmatpush3.bf16.msra.mxu1 %v9325_v54  ;;  %v2133_v35 = vadd.f32 %v10409_v49, %v2053_v5  ;;  %v1851_v8 = vpop.f32.mrf.mxu0  ;;  %v2121_v49 = vsel %vm784_vm1, %v2090_v47, 0.0 }
 0x1d7   : > { %v2457_v17 = vpop.f32.mrf.mxu1  ;;  %8786 = vmatprep.subr.bf16.mxu1 %v9328_v11  ;;  %v2011_v62 = vsel %vm703_vm0, %v2009_v16, %v2010_v50 }
 0x1d8   : > { %v2646_v23 = vsel %vm2643_vm2, %v2644_v27, %v2645_v32  ;;  %v10461_v6 = vadd.f32 %v2133_v35, %v10291_v44  ;;  %v2054_v22 = vadd.f32 %v2011_v62, %v1851_v8  ;;  %v1855_v9 = vpop.f32.mrf.mxu0  ;;  %4436 = vmatmul.mubr.bf16.gmra.mxu0 %v10357_v24  ;;  %v9336_v27 = vld [vmem:[#allocation4 + $0x650] ss:$12 sps:$4 sm:$0xff]  }
 0x1d9   : > { %v10463_v51 = vadd.f32 %v2646_v23, %v2457_v17  ;;  %v2461_v28 = vpop.f32.mrf.mxu1  ;;  %5039 = vmatmul.mubr.bf16.gmra.mxu1 %v10455_v40  ;;  %v2012_v54 = vrot.slane %v1855_v9, 6  ;;  %4445 = vmatprep.mubr.bf16.mxu0 %v9706_v0 }
 0x1da   : > { %v2647_v3 = vrot.slane %v2461_v28, 4  ;;  %5048 = vmatprep.mubr.bf16.mxu1 %v9706_v0  ;;  %v2134_v44 = vadd.f32 %v2121_v49, %v2054_v22  ;;  %v1857_v45 = vpop.f32.mrf.mxu0  ;;  %8787 = vmatpush3.bf16.msra.mxu1 %v9328_v11  ;;  %v9352_v49 = vld [vmem:[#allocation4 + $0x620] ss:$12 sps:$4 sm:$0xff]  }
 0x1db   : > { %v2463_v58 = vpop.f32.mrf.mxu1  ;;  %v2042_v16 = vsel %vm703_vm0, 0.0, %v2012_v54  ;;  %8788 = vmatprep.subr.bf16.mxu1 %v9331_v63 }
 0x1dc   : > { %v2685_v24 = vsel %vm2643_vm2, 0.0, %v2647_v3  ;;  %v10475_v14 = vadd.f32 %v2134_v44, %v10293_v18  ;;  %v2055_v47 = vadd.f32 %v2042_v16, %v1857_v45  ;;  %v1859_v46 = vpop.f32.mrf.mxu0  ;;  %v9344_v18 = vld [vmem:[#allocation4 + $0x638] ss:$12 sps:$4 sm:$0xff]  }
 0x1dd   : > { %v10477_v31 = vadd.f32 %v2685_v24, %v2463_v58  ;;  %v2465_v61 = vpop.f32.mrf.mxu1  ;;  %v2013_v10 = vrot.slane %v1859_v46, 6  ;;  %v10505_v45 = vld [vmem:[%s9864_s29 + $0x58] sm:$0xff]  }
 0x1de   : > { %v2648_v34 = vrot.slane %v2465_v61, 4  ;;  %v2135_v11 = vadd.f32 %v10397_v15, %v2055_v47  ;;  %v1861_v5 = vpop.f32.mrf.mxu0  ;;  %8789 = vmatpush3.bf16.msra.mxu1 %v9331_v63  ;;  %v2122_v15 = vsel %vm784_vm1, %v2093_v13, 0.0 }
 0x1df   : > { %v2467_v52 = vpop.f32.mrf.mxu1  ;;  %v2014_v37 = vsel %vm703_vm0, %v2012_v54, %v2013_v10  ;;  %8790 = vmatprep.subr.bf16.mxu1 %v9336_v27 }
 0x1e0   : > { %v2649_v50 = vsel %vm2643_vm2, %v2647_v3, %v2648_v34  ;;  %v10486_v32 = vadd.f32 %v2135_v11, %v10284_v12  ;;  %v2056_v35 = vadd.f32 %v2014_v37, %v1861_v5  ;;  %v1865_v17 = vpop.f32.mrf.mxu0  ;;  %4446 = vmatmul.mubr.bf16.gmra.mxu0 %v10361_v29 }
 0x1e1   : > { %v10488_v8 = vadd.f32 %v2649_v50, %v2467_v52  ;;  %v2471_v62 = vpop.f32.mrf.mxu1  ;;  %5049 = vmatmul.mubr.bf16.gmra.mxu1 %v10480_v43  ;;  %v2015_v23 = vrot.slane %v1865_v17, 6  ;;  %4455 = vmatprep.mubr.bf16.mxu0 %v9706_v0 }
 0x1e2   : > { %v2650_v63 = vrot.slane %v2471_v62, 4  ;;  %5058 = vmatprep.mubr.bf16.mxu1 %v9706_v0  ;;  %v2136_v12 = vadd.f32 %v2122_v15, %v2056_v35  ;;  %v1867_v22 = vpop.f32.mrf.mxu0  ;;  %8791 = vmatpush3.bf16.msra.mxu1 %v9336_v27  ;;  %v9368_v62 = vld [vmem:[#allocation4 + $0x76c] ss:$12 sps:$4 sm:$0xff]  }
 0x1e3   : > { %v2473_v9 = vpop.f32.mrf.mxu1  ;;  %v2043_v28 = vsel %vm703_vm0, 0.0, %v2015_v23  ;;  %8792 = vmatprep.subr.bf16.mxu1 %v9344_v18 }
 0x1e4   : > { %v2686_v29 = vsel %vm2643_vm2, 0.0, %v2650_v63  ;;  %v10500_v4 = vadd.f32 %v2136_v12, %v10286_v55  ;;  %v2057_v13 = vadd.f32 %v2043_v28, %v1867_v22  ;;  %v1869_v3 = vpop.f32.mrf.mxu0  ;;  %v9360_v55 = vld [vmem:[#allocation4 + $0x608] ss:$12 sps:$4 sm:$0xff]   ;;  %v10530_v12 = vld [vmem:[%s9864_s29 + $0x60] sm:$0xff]  }
 0x1e5   : > { %v10502_v54 = vadd.f32 %v2686_v29, %v2473_v9  ;;  %v2475_v44 = vpop.f32.mrf.mxu1  ;;  %v2016_v58 = vrot.slane %v1869_v3, 6  ;;  %v9333_v9 = vld [vmem:[#allocation4 + $0x6a8] ss:$12 sps:$4 sm:$0xff]  }
 0x1e6   : > { %v2651_v16 = vrot.slane %v2475_v44, 4  ;;  %v2137_v24 = vadd.f32 %v10444_v42, %v2057_v13  ;;  %v1871_v27 = vpop.f32.mrf.mxu0  ;;  %8793 = vmatpush3.bf16.msra.mxu1 %v9344_v18  ;;  %v2123_v42 = vsel %vm784_vm1, %v2096_v59, 0.0  ;;  %v9339_v13 = vld [vmem:[#allocation4 + $0x694] ss:$12 sps:$4 sm:$0xff]  }
 0x1e7   : > { %v2477_v47 = vpop.f32.mrf.mxu1  ;;  %v2017_v46 = vsel %vm703_vm0, %v2015_v23, %v2016_v58  ;;  %8794 = vmatprep.subr.bf16.mxu1 %v9352_v49 }
 0x1e8   : > { %v2652_v61 = vsel %vm2643_vm2, %v2650_v63, %v2651_v16  ;;  %v10511_v10 = vadd.f32 %v2137_v24, %v10324_v36  ;;  %v2058_v34 = vadd.f32 %v2017_v46, %v1871_v27  ;;  %v1875_v5 = vpop.f32.mrf.mxu0  ;;  %4456 = vmatmul.mubr.bf16.gmra.mxu0 %v10387_v20  ;;  %v9337_v46 = vld [vmem:[#allocation4 + $0x690] ss:$12 sps:$4 sm:$0xff]  }
 0x1e9   : > { %v10513_v11 = vadd.f32 %v2652_v61, %v2477_v47  ;;  %v2481_v52 = vpop.f32.mrf.mxu1  ;;  %5059 = vmatmul.mubr.bf16.gmra.mxu1 %v10505_v45  ;;  %v2018_v37 = vrot.slane %v1875_v5, 6  ;;  %8766 = vmatprep.mubr.bf16.mxu0 %v10419_v41 }
 0x1ea   : > { %v2653_v50 = vrot.slane %v2481_v52, 4  ;;  %5068 = vmatprep.mubr.bf16.mxu1 %v9706_v0  ;;  %v2138_v36 = vadd.f32 %v2123_v42, %v2058_v34  ;;  %v1877_v18 = vpop.f32.mrf.mxu0  ;;  %8795 = vmatpush3.bf16.msra.mxu1 %v9352_v49  ;;  %v9343_v34 = vld [vmem:[#allocation4 + $0x67c] ss:$12 sps:$4 sm:$0xff]  }
 0x1eb   : > { %v2483_v35 = vpop.f32.mrf.mxu1  ;;  %v2044_v17 = vsel %vm703_vm0, 0.0, %v2018_v37  ;;  %8796 = vmatprep.subr.bf16.mxu1 %v9360_v55  ;;  %v10554_v42 = vld [vmem:[%s9864_s29 + $0x68] sm:$0xff]  }
 0x1ec   : > { %v2687_v20 = vsel %vm2643_vm2, 0.0, %v2653_v50  ;;  %v10525_v39 = vadd.f32 %v2138_v36, %v10326_v38  ;;  %v2059_v59 = vadd.f32 %v2044_v17, %v1877_v18  ;;  %v1879_v23 = vpop.f32.mrf.mxu0  ;;  %v9341_v18 = vld [vmem:[#allocation4 + $0x678] ss:$12 sps:$4 sm:$0xff]  }
 0x1ed   : > { %v10527_v15 = vadd.f32 %v2687_v20, %v2483_v35  ;;  %v2485_v63 = vpop.f32.mrf.mxu1  ;;  %v2019_v41 = vrot.slane %v1879_v23, 6  ;;  %v9347_v20 = vld [vmem:[#allocation4 + $0x664] ss:$12 sps:$4 sm:$0xff]  }
 0x1ee   : > { %v2654_v22 = vrot.slane %v2485_v63, 4  ;;  %v2139_v28 = vadd.f32 %v10430_v1, %v2059_v59  ;;  %v1881_v29 = vpop.f32.mrf.mxu0  ;;  %8797 = vmatpush3.bf16.msra.mxu1 %v9360_v55  ;;  %v2124_v1 = vsel %vm784_vm1, %v2099_v7, 0.0 }
 0x1ef   : > { %v2487_v49 = vpop.f32.mrf.mxu1  ;;  %v2020_v3 = vsel %vm703_vm0, %v2018_v37, %v2019_v41  ;;  %6287 = vmatprep.subr.bf16.mxu1 %v9368_v62 }
 0x1f0   : > { %v2655_v38 = vsel %vm2643_vm2, %v2653_v50, %v2654_v22  ;;  %v10536_v44 = vadd.f32 %v2139_v28, %v10315_v26  ;;  %v2060_v58 = vadd.f32 %v2020_v3, %v1881_v29  ;;  %v8640_v27 = vpop.f32.mrf.mxu0  ;;  %8767 = vmatmul.mubr.bf16.vlgmr.msra.gmra.mxu0 %v10455_v40  ;;  %v9345_v3 = vld [vmem:[#allocation4 + $0x660] ss:$12 sps:$4 sm:$0xff]  }
 0x1f1   : > { %v10538_v16 = vadd.f32 %v2655_v38, %v2487_v49  ;;  %v2491_v24 = vpop.f32.mrf.mxu1  ;;  %5069 = vmatmul.mubr.bf16.gmra.mxu1 %v10530_v12  ;;  %5643 = vmatpush1.bf16.msra.mxu0 %v9333_v9  ;;  %v2727_v37 = vrot.slane %v8640_v27, 4  ;;  %v9351_v27 = vld [vmem:[#allocation4 + $0x64c] ss:$12 sps:$4 sm:$0xff]  }
 0x1f2   : > { %v2656_v47 = vrot.slane %v2491_v24, 4  ;;  %5078 = vmatprep.mubr.bf16.mxu1 %v9706_v0  ;;  %v2140_v26 = vadd.f32 %v2124_v1, %v2060_v58  ;;  %v2564_v55 = vpop.f32.mrf.mxu0  ;;  %5644 = vmatprep.subr.bf16.mxu0 %v9339_v13 }
 0x1f3   : > { %v2493_v61 = vpop.f32.mrf.mxu1  ;;  %8770 = vmatprep.mubr.bf16.mxu0 %v10480_v43  ;;  %v2724_v35 = vrot.slane %v2564_v55, 4 }
 0x1f4   : > { %v2688_v5 = vsel %vm2643_vm2, 0.0, %v2656_v47  ;;  %v10549_v40 = vadd.f32 %v2140_v26, %v10322_v33  ;;  %v8641_v52 = vpop.f32.mrf.mxu0 }
 0x1f5   : > { %v10551_v19 = vadd.f32 %v2688_v5, %v2493_v61  ;;  %v2495_v7 = vpop.f32.mrf.mxu1  ;;  %v2728_v36 = vrot.slane %v8641_v52, 4  ;;  %5645 = vmatpush1.bf16.msra.mxu0 %v9337_v46 }
 0x1f6   : > { %v2657_v50 = vrot.slane %v2495_v7, 4  ;;  %v2567_v43 = vpop.f32.mrf.mxu0  ;;  %5646 = vmatprep.subr.bf16.mxu0 %v9343_v34  ;;  %v9349_v34 = vld [vmem:[#allocation4 + $0x648] ss:$12 sps:$4 sm:$0xff]  }
 0x1f7   : > { %v2497_v17 = vpop.f32.mrf.mxu1  ;;  %v2729_v62 = vsel %vm2643_vm2, %v2727_v37, %v2728_v36  ;;  %v2765_v33 = vsel %vm2643_vm2, %v2728_v36, 0.0  ;;  %v2725_v23 = vrot.slane %v2567_v43, 4 }
 0x1f8   : > { %v2658_v59 = vsel %vm2643_vm2, %v2656_v47, %v2657_v50  ;;  %v2774_v63 = vadd.f32 %v2729_v62, %v10477_v31  ;;  %v2775_v41 = vadd.f32 %v2765_v33, %v10488_v8  ;;  %v8644_v28 = vpop.f32.mrf.mxu0  ;;  %8771 = vmatmul.mubr.bf16.gmra.mxu0 %v10505_v45 }
 0x1f9   : > { %v10561_v22 = vadd.f32 %v2658_v59, %v2497_v17  ;;  %v2501_v9 = vpop.f32.mrf.mxu1  ;;  %5079 = vmatmul.mubr.bf16.gmra.mxu1 %v10554_v42  ;;  %v2726_v29 = vsel %vm2643_vm2, %v2724_v35, %v2725_v23  ;;  %v2764_v49 = vsel %vm2643_vm2, %v2725_v23, 0.0  ;;  %5647 = vmatpush1.bf16.msra.mxu0 %v9341_v18  ;;  %v2733_v61 = vrot.slane %v8644_v28, 4  ;;  %v9353_v59 = vld [vmem:[#allocation4 + $0x630] ss:$12 sps:$4 sm:$0xff]  }
 0x1fa   : > { %v2659_v13 = vrot.slane %v2501_v9, 4  ;;  %5088 = vmatprep.mubr.bf16.mxu1 %v9706_v0  ;;  %v10569_v31 = vadd.f32 %v2774_v63, %v10370_v25  ;;  %v10572_v8 = vadd.f32 %v2775_v41, %v10382_v57  ;;  %v2772_v38 = vadd.f32 %v2726_v29, %v10452_v30  ;;  %v2580_v24 = vpop.f32.mrf.mxu0  ;;  %5648 = vmatprep.subr.bf16.mxu0 %v9347_v20  ;;  %v9348_v30 = vld [vmem:[%s9864_s29 + $0x70] sm:$0xff]   ;;  %v9359_v9 = vld [vmem:[#allocation4 + $0x61c] ss:$12 sps:$4 sm:$0xff]  }
 0x1fb   : > { %v2773_v45 = vadd.f32 %v2764_v49, %v10463_v51  ;;  %v2503_v58 = vpop.f32.mrf.mxu1  ;;  %8774 = vmatprep.mubr.bf16.mxu0 %v10530_v12  ;;  %v2730_v5 = vrot.slane %v2580_v24, 4  ;;  %v9355_v12 = vld [vmem:[#allocation4 + $0x634] ss:$12 sps:$4 sm:$0xff]  }
 0x1fc   : > { %v2689_v1 = vsel %vm2643_vm2, 0.0, %v2659_v13  ;;  %v10579_v47 = vadd.f32 %v2772_v38, %v10349_v56  ;;  %v8645_v26 = vpop.f32.mrf.mxu0 }
 0x1fd   : > { %v10582_v25 = vadd.f32 %v2773_v45, %v10352_v48  ;;  %v2702_v57 = vadd.f32 %v2689_v1, %v2503_v58  ;;  %v2505_v46 = vpop.f32.mrf.mxu1  ;;  %v2734_v55 = vrot.slane %v8645_v26, 4  ;;  %5649 = vmatpush1.bf16.msra.mxu0 %v9345_v3  ;;  %v9357_v45 = vld [vmem:[#allocation4 + $0x618] ss:$12 sps:$4 sm:$0xff]  }
 0x1fe   : > { %v2660_v51 = vrot.slane %v2505_v46, 4  ;;  %v2583_v52 = vpop.f32.mrf.mxu0  ;;  %5650 = vmatprep.subr.bf16.mxu0 %v9351_v27 }
 0x1ff   : > { %v2507_v7 = vpop.f32.mrf.mxu1  ;;  %v2735_v56 = vsel %vm2643_vm2, %v2733_v61, %v2734_v55  ;;  %v2767_v37 = vsel %vm2643_vm2, %v2734_v55, 0.0  ;;  %v2731_v50 = vrot.slane %v2583_v52, 4 }
 0x200   : > { %v2661_v48 = vsel %vm2643_vm2, %v2659_v13, %v2660_v51  ;;  %v2778_v36 = vadd.f32 %v2735_v56, %v10527_v15  ;;  %v2779_v18 = vadd.f32 %v2767_v37, %v10538_v16  ;;  %v8648_v43 = vpop.f32.mrf.mxu0  ;;  %8775 = vmatmul.mubr.bf16.gmra.mxu0 %v10554_v42  ;;  %v9361_v56 = vld [vmem:[#allocation4 + $0x600] ss:$12 sps:$4 sm:$0xff]  }
 0x201   : > { %v2703_v35 = vadd.f32 %v2661_v48, %v2507_v7  ;;  %v2511_v17 = vpop.f32.mrf.mxu1  ;;  %5089 = vmatmul.mubr.bf16.gmra.mxu1 %v9348_v30  ;;  %v2732_v20 = vsel %vm2643_vm2, %v2730_v5, %v2731_v50  ;;  %v2766_v62 = vsel %vm2643_vm2, %v2731_v50, 0.0  ;;  %5651 = vmatpush1.bf16.msra.mxu0 %v9349_v34 }
 0x202   : > { %v2662_v33 = vrot.slane %v2511_v17, 4  ;;  %5098 = vmatprep.mubr.bf16.mxu1 %v9706_v0  ;;  %v10595_v15 = vadd.f32 %v2778_v36, %v10433_v2  ;;  %v10598_v16 = vadd.f32 %v2779_v18, %v10450_v60  ;;  %v2776_v23 = vadd.f32 %v2732_v20, %v10502_v54  ;;  %v2596_v41 = vpop.f32.mrf.mxu0  ;;  %5652 = vmatprep.subr.bf16.mxu0 %v9355_v12  ;;  %v9356_v54 = vld [vmem:[%s9864_s29 + $0x78] sm:$0xff]  }
 0x203   : > { %v2777_v42 = vadd.f32 %v2766_v62, %v10513_v11  ;;  %v2513_v63 = vpop.f32.mrf.mxu1  ;;  %8778 = vmatprep.mubr.bf16.mxu0 %v9348_v30  ;;  %v2739_v11 = vrot.slane %v8648_v43, 4  ;;  %v2736_v58 = vrot.slane %v2596_v41, 4  ;;  %v9364_v30 = vld [vmem:[%s9864_s29 + $0x70] sm:$0xff]  }
 0x204   : > { %v2690_v28 = vsel %vm2643_vm2, 0.0, %v2662_v33  ;;  %v10604_v29 = vadd.f32 %v2776_v23, %v10400_v21  ;;  %v8649_v13 = vpop.f32.mrf.mxu0  ;;  %v9363_v21 = vld [vmem:[#allocation4 + $0x604] ss:$12 sps:$4 sm:$0xff]   ;;  %v9366_v23 = vld [vmem:[#allocation4 + $0x768] ss:$12 sps:$4 sm:$0xff]  }
 0x205   : > { %v10607_v2 = vadd.f32 %v2777_v42, %v10414_v53  ;;  %v10609_v49 = vadd.f32 %v2690_v28, %v2513_v63  ;;  %v2515_v60 = vpop.f32.mrf.mxu1  ;;  %v2740_v38 = vrot.slane %v8649_v13, 4  ;;  %5653 = vmatpush1.bf16.msra.mxu0 %v9353_v59  ;;  %v9372_v41 = vld [vmem:[#allocation4 + $0x754] ss:$12 sps:$4 sm:$0xff]  }
 0x206   : > { %v2663_v3 = vrot.slane %v2515_v60, 4  ;;  %v2599_v27 = vpop.f32.mrf.mxu0  ;;  %5654 = vmatprep.subr.bf16.mxu0 %v9359_v9  ;;  %v10640_v60 = vld [vmem:[%s9864_s29 + $0x80] sm:$0xff]  }
 0x207   : > { %v2517_v24 = vpop.f32.mrf.mxu1  ;;  %v2741_v1 = vsel %vm2643_vm2, %v2739_v11, %v2740_v38  ;;  %v2769_v53 = vsel %vm2643_vm2, %v2740_v38, 0.0  ;;  %v2737_v26 = vrot.slane %v2599_v27, 4  ;;  %v9378_v38 = vld [vmem:[#allocation4 + $0x758] ss:$12 sps:$4 sm:$0xff]  }
 0x208   : > { %v2664_v46 = vsel %vm2643_vm2, %v2662_v33, %v2663_v3  ;;  %v2782_v61 = vadd.f32 %v2741_v1, %v2702_v57  ;;  %v2783_v51 = vadd.f32 %v2769_v53, %v2703_v35  ;;  %v8652_v5 = vpop.f32.mrf.mxu0  ;;  %8779 = vmatmul.mubr.bf16.gmra.mxu0 %v9356_v54  ;;  %v9369_v35 = vld [vmem:[#allocation4 + $0x770] ss:$12 sps:$4 sm:$0xff]  }
 0x209   : > { %v2705_v55 = vadd.f32 %v2664_v46, %v2517_v24  ;;  %v2521_v34 = vpop.f32.mrf.mxu1  ;;  %5099 = vmatmul.mubr.bf16.gmra.mxu1 %v9356_v54  ;;  %v2738_v7 = vsel %vm2643_vm2, %v2736_v58, %v2737_v26  ;;  %v2768_v52 = vsel %vm2643_vm2, %v2737_v26, 0.0  ;;  %5655 = vmatpush1.bf16.msra.mxu0 %v9357_v45 }
 0x20a   : > { %v2665_v12 = vrot.slane %v2521_v34, 4  ;;  %5674 = vmatprep.mubr.bf16.mxu0 %v9706_v0  ;;  %v10620_v37 = vadd.f32 %v2782_v61, %v10486_v32  ;;  %v10623_v57 = vadd.f32 %v2783_v51, %v10500_v4  ;;  %v2780_v48 = vadd.f32 %v2738_v7, %v10551_v19  ;;  %v2612_v18 = vpop.f32.mrf.mxu0  ;;  %5656 = vmatprep.subr.bf16.mxu0 %v9363_v21  ;;  %v10635_v19 = vld [vmem:[%s9864_s29 + $0x78] sm:$0xff]   ;;  %v9387_v34 = vld [vmem:[#allocation4 + $0x740] ss:$12 sps:$4 sm:$0xff]  }
 0x20b   : > { %v2781_v50 = vadd.f32 %v2768_v52, %v10561_v22  ;;  %v2523_v36 = vpop.f32.mrf.mxu1  ;;  %8798 = vmatprep.mubr.bf16.mxu1 %v9364_v30  ;;  %v2745_v22 = vrot.slane %v8652_v5, 4  ;;  %v9370_v21 = vld [vmem:[#allocation4 + $0x750] ss:$12 sps:$4 sm:$0xff]  }
 0x20c   : > { %v2691_v17 = vsel %vm2643_vm2, 0.0, %v2665_v12  ;;  %v10629_v43 = vadd.f32 %v2780_v48, %v10461_v6  ;;  %v8653_v62 = vpop.f32.mrf.mxu0  ;;  %v2742_v6 = vrot.slane %v2612_v18, 4  ;;  %v9377_v51 = vld [vmem:[#allocation4 + $0x73c] ss:$12 sps:$4 sm:$0xff]  }
 0x20d   : > { %v10632_v32 = vadd.f32 %v2781_v50, %v10475_v14  ;;  %v2706_v20 = vadd.f32 %v2691_v17, %v2523_v36  ;;  %v2525_v4 = vpop.f32.mrf.mxu1  ;;  %v2746_v59 = vrot.slane %v8653_v62, 4  ;;  %5657 = vmatpush1.bf16.msra.mxu0 %v9361_v56  ;;  %v10665_v56 = vld [vmem:[%s9864_s29 + $0x88] sm:$0xff]  }
 0x20e   : > { %v2666_v33 = vrot.slane %v2525_v4, 4  ;;  %v2615_v63 = vpop.f32.mrf.mxu0  ;;  %8814 = vmatprep.subr.bf16.mxu0 %v9369_v35 }
 0x20f   : > { %v2527_v42 = vpop.f32.mrf.mxu1  ;;  %v2747_v9 = vsel %vm2643_vm2, %v2745_v22, %v2746_v59  ;;  %v2743_v28 = vrot.slane %v2615_v63, 4  ;;  %v2771_v45 = vsel %vm2643_vm2, %v2746_v59, 0.0 }
 0x210   : > { %v2667_v14 = vsel %vm2643_vm2, %v2665_v12, %v2666_v33  ;;  %v2786_v13 = vadd.f32 %v2747_v9, %v2706_v20  ;;  %v3095_v11 = vpop.f32.mrf.mxu0  ;;  %5675 = vmatmul.mubr.bf16.vlgmr.msra.gmra.mxu0 %v9364_v30 }
 0x211   : > { %v2707_v54 = vadd.f32 %v2667_v14, %v2527_v42  ;;  %v8672_v3 = vpop.f32.mrf.mxu1  ;;  %8799 = vmatmul.mubr.bf16.vlgmr.msra.gmra.mxu1 %v10635_v19  ;;  %v2744_v58 = vsel %vm2643_vm2, %v2742_v6, %v2743_v28  ;;  %v2770_v24 = vsel %vm2643_vm2, %v2743_v28, 0.0  ;;  %v3287_v27 = vrot.slane %v3095_v11, 4  ;;  %8815 = vmatpush3.bf16.msra.mxu0 %v9369_v35  ;;  %v10669_v35 = vld [vmem:[%s9864_s29 + $0x90] sm:$0xff]   ;;  %v9379_v6 = vld [vmem:[#allocation4 + $0x720] ss:$12 sps:$4 sm:$0xff]  }
 0x212   : > { %6288 = vmatpush1.bf16.msra.mxu1 %v9366_v23  ;;  %v10647_v1 = vadd.f32 %v2786_v13, %v10536_v44  ;;  %v2784_v46 = vadd.f32 %v2744_v58, %v10609_v49  ;;  %v2785_v26 = vadd.f32 %v2770_v24, %v2705_v55  ;;  %v3097_v30 = vpop.f32.mrf.mxu0  ;;  %5684 = vmatprep.mubr.bf16.mxu0 %v9706_v0  ;;  %v3370_v48 = vrot.slane %v8672_v3, 4  ;;  %v9396_v23 = vld [vmem:[#allocation4 + $0x728] ss:$12 sps:$4 sm:$0xff]   ;;  %v10691_v24 = vld [vmem:[%s9864_s29 + $0x98] sm:$0xff]  }
 0x213   : > { %v2787_v53 = vadd.f32 %v2771_v45, %v2707_v54  ;;  %v3208_v61 = vpop.f32.mrf.mxu1  ;;  %6289 = vmatprep.subr.bf16.mxu1 %v9372_v41  ;;  %v3327_v5 = vsel %vm2643_vm2, 0.0, %v3287_v27  ;;  %8802 = vmatprep.mubr.bf16.mxu1 %v10640_v60 }
 0x214   : > { %v10657_v44 = vadd.f32 %v2784_v46, %v10511_v10  ;;  %v10660_v49 = vadd.f32 %v2785_v26, %v10525_v39  ;;  %v3335_v55 = vadd.f32 %v3327_v5, %v3097_v30  ;;  %v3099_v52 = vpop.f32.mrf.mxu0  ;;  %8816 = vmatprep.subr.bf16.mxu0 %v9378_v38  ;;  %v9381_v39 = vld [vmem:[#allocation4 + $0x724] ss:$12 sps:$4 sm:$0xff]   ;;  %v3367_v17 = vrot.slane %v3208_v61, 4  ;;  %v9384_v46 = vld [vmem:[#allocation4 + $0x708] ss:$12 sps:$4 sm:$0xff]  }
 0x215   : > { %v10654_v7 = vadd.f32 %v2787_v53, %v10549_v40  ;;  %v10662_v12 = vpop.f32.mrf.mxu1  ;;  %v3288_v50 = vrot.slane %v3099_v52, 4  ;;  %v9375_v40 = vld [vmem:[#allocation4 + $0x738] ss:$12 sps:$4 sm:$0xff]   ;;  %8817 = vmatpush3.bf16.msra.mxu0 %v9378_v38  ;;  %v9401_v52 = vld [vmem:[#allocation4 + $0x710] ss:$12 sps:$4 sm:$0xff]  }
 0x216   : > { %v3371_v36 = vrot.slane %v10662_v12, 4  ;;  %6290 = vmatpush1.bf16.msra.mxu1 %v9370_v21  ;;  %v3101_v10 = vpop.f32.mrf.mxu0  ;;  %8818 = vmatprep.subr.bf16.mxu0 %v9387_v34  ;;  %v10695_v61 = vld [vmem:[%s9864_s29 + $0xa0] sm:$0xff]  }
 0x217   : > { %v3211_v18 = vpop.f32.mrf.mxu1  ;;  %6291 = vmatprep.subr.bf16.mxu1 %v9377_v51  ;;  %v3289_v20 = vsel %vm2643_vm2, %v3287_v27, %v3288_v50 }
 0x218   : > { %v3368_v4 = vrot.slane %v3211_v18, 4  ;;  %v3372_v62 = vsel %vm2643_vm2, %v3370_v48, %v3371_v36  ;;  %v3336_v22 = vadd.f32 %v3289_v20, %v3101_v10  ;;  %v3105_v33 = vpop.f32.mrf.mxu0  ;;  %5685 = vmatmul.mubr.bf16.gmra.mxu0 %v10635_v19  ;;  %v9386_v19 = vld [vmem:[#allocation4 + $0x70c] ss:$12 sps:$4 sm:$0xff]   ;;  %v3408_v18 = vsel %vm2643_vm2, %v3371_v36, 0.0  ;;  %v9388_v20 = vld [vmem:[#allocation4 + $0x6f0] ss:$12 sps:$4 sm:$0xff]  }
 0x219   : > { %v8676_v59 = vpop.f32.mrf.mxu1  ;;  %8803 = vmatmul.mubr.bf16.gmra.mxu1 %v10665_v56  ;;  %v3290_v41 = vrot.slane %v3105_v33, 4  ;;  %5694 = vmatprep.mubr.bf16.mxu0 %v9706_v0 }
 0x21a   : > { %v3369_v42 = vsel %vm2643_vm2, %v3367_v17, %v3368_v4  ;;  %v3407_v63 = vsel %vm2643_vm2, %v3368_v4, 0.0  ;;  %6292 = vmatpush1.bf16.msra.mxu1 %v9375_v40  ;;  %v3107_v28 = vpop.f32.mrf.mxu0  ;;  %8806 = vmatprep.mubr.bf16.mxu1 %v10669_v35  ;;  %v3376_v27 = vrot.slane %v8676_v59, 4 }
 0x21b   : > { %v3415_v9 = vadd.f32 %v3369_v42, %v3335_v55  ;;  %v3416_v14 = vadd.f32 %v3407_v63, %v3336_v22  ;;  %v3224_v13 = vpop.f32.mrf.mxu1  ;;  %6293 = vmatprep.subr.bf16.mxu1 %v9381_v39  ;;  %v3328_v54 = vsel %vm2643_vm2, 0.0, %v3290_v41  ;;  %8819 = vmatpush3.bf16.msra.mxu0 %v9387_v34  ;;  %v10721_v42 = vld [vmem:[%s9864_s29 + $0xa8] sm:$0xff]  }
 0x21c   : > { %v3337_v38 = vadd.f32 %v3328_v54, %v3107_v28  ;;  %v3109_v45 = vpop.f32.mrf.mxu0  ;;  %8820 = vmatprep.subr.bf16.mxu0 %v9396_v23  ;;  %v3373_v51 = vrot.slane %v3224_v13, 4 }
 0x21d   : > { %v10683_v11 = vadd.f32 %v3415_v9, %v10579_v47  ;;  %v10686_v3 = vadd.f32 %v3416_v14, %v10582_v25  ;;  %v10688_v58 = vpop.f32.mrf.mxu1  ;;  %v3291_v21 = vrot.slane %v3109_v45, 4  ;;  %v9390_v25 = vld [vmem:[#allocation4 + $0x6f4] ss:$12 sps:$4 sm:$0xff]   ;;  %v9393_v9 = vld [vmem:[#allocation4 + $0x6d8] ss:$12 sps:$4 sm:$0xff]  }
 0x21e   : > { %v3377_v53 = vrot.slane %v10688_v58, 4  ;;  %6294 = vmatpush1.bf16.msra.mxu1 %v9379_v6  ;;  %v3417_v26 = vadd.f32 %v3372_v62, %v3337_v38  ;;  %v3111_v47 = vpop.f32.mrf.mxu0  ;;  %v9408_v58 = vld [vmem:[#allocation4 + $0x800] ss:$12 sps:$4 sm:$0xff]  }
 0x21f   : > { %v3227_v30 = vpop.f32.mrf.mxu1  ;;  %6295 = vmatprep.subr.bf16.mxu1 %v9386_v19  ;;  %v3292_v34 = vsel %vm2643_vm2, %v3290_v41, %v3291_v21  ;;  %8821 = vmatpush3.bf16.msra.mxu0 %v9396_v23 }
 0x220   : > { %v3374_v5 = vrot.slane %v3227_v30, 4  ;;  %v10701_v55 = vsel %vm2643_vm2, %v3376_v27, %v3377_v53  ;;  %v10704_v48 = vadd.f32 %v3417_v26, %v10569_v31  ;;  %v3338_v50 = vadd.f32 %v3292_v34, %v3111_v47  ;;  %v3115_v40 = vpop.f32.mrf.mxu0  ;;  %5695 = vmatmul.mubr.bf16.gmra.mxu0 %v10640_v60  ;;  %v9404_v31 = vld [vmem:[#allocation4 + $0x6f8] ss:$12 sps:$4 sm:$0xff]   ;;  %v9395_v60 = vld [vmem:[#allocation4 + $0x6dc] ss:$12 sps:$4 sm:$0xff]   ;;  %8822 = vmatprep.subr.bf16.mxu0 %v9401_v52 }
 0x221   : > { %v8680_v10 = vpop.f32.mrf.mxu1  ;;  %8807 = vmatmul.mubr.bf16.gmra.mxu1 %v10691_v24  ;;  %v3293_v39 = vrot.slane %v3115_v40, 4  ;;  %5704 = vmatprep.mubr.bf16.mxu0 %v9706_v0  ;;  %v9407_v47 = vld [vmem:[#allocation4 + $0x6e0] ss:$12 sps:$4 sm:$0xff]  }
 0x222   : > { %6296 = vmatpush1.bf16.msra.mxu1 %v9384_v46  ;;  %v3375_v17 = vsel %vm2643_vm2, %v3373_v51, %v3374_v5  ;;  %v3418_v4 = vadd.f32 %v3408_v18, %v3338_v50  ;;  %v3117_v62 = vpop.f32.mrf.mxu0  ;;  %8810 = vmatprep.mubr.bf16.mxu1 %v10695_v61  ;;  %v3382_v63 = vrot.slane %v8680_v10, 4  ;;  %v3409_v30 = vsel %vm2643_vm2, %v3374_v5, 0.0  ;;  %v9397_v51 = vld [vmem:[#allocation4 + $0x6c0] ss:$12 sps:$4 sm:$0xff]  }
 0x223   : > { %v3240_v22 = vpop.f32.mrf.mxu1  ;;  %6297 = vmatprep.subr.bf16.mxu1 %v9390_v25  ;;  %v3329_v12 = vsel %vm2643_vm2, 0.0, %v3293_v39  ;;  %8823 = vmatpush3.bf16.msra.mxu0 %v9401_v52 }
 0x224   : > { %v10716_v36 = vadd.f32 %v3418_v4, %v10572_v8  ;;  %v3339_v33 = vadd.f32 %v3329_v12, %v3117_v62  ;;  %v3119_v59 = vpop.f32.mrf.mxu0  ;;  %8824 = vmatprep.subr.bf16.mxu0 %v9404_v31  ;;  %v9399_v8 = vld [vmem:[#allocation4 + $0x6c4] ss:$12 sps:$4 sm:$0xff]   ;;  %v3379_v19 = vrot.slane %v3240_v22, 4 }
 0x225   : > { %v10718_v23 = vpop.f32.mrf.mxu1  ;;  %v3294_v41 = vrot.slane %v3119_v59, 4 }
 0x226   : > { %v3383_v6 = vrot.slane %v10718_v23, 4  ;;  %6298 = vmatpush1.bf16.msra.mxu1 %v9388_v20  ;;  %v3419_v14 = vadd.f32 %v3375_v17, %v3339_v33  ;;  %v3121_v28 = vpop.f32.mrf.mxu0  ;;  %v10753_v17 = vld [vmem:[%s9864_s29] sm:$0xff]  }
 0x227   : > { %v10724_v13 = vpop.f32.mrf.mxu1  ;;  %6299 = vmatprep.subr.bf16.mxu1 %v9395_v60  ;;  %v3295_v54 = vsel %vm2643_vm2, %v3293_v39, %v3294_v41  ;;  %8825 = vmatpush3.bf16.msra.mxu0 %v9404_v31 }
 0x228   : > { %v3380_v38 = vrot.slane %v10724_v13, 4  ;;  %v10731_v45 = vsel %vm2643_vm2, %v3382_v63, %v3383_v6  ;;  %v10734_v27 = vadd.f32 %v3419_v14, %v10604_v29  ;;  %v3340_v21 = vadd.f32 %v3295_v54, %v3121_v28  ;;  %v3125_v46 = vpop.f32.mrf.mxu0  ;;  %5705 = vmatmul.mubr.bf16.gmra.mxu0 %v10665_v56  ;;  %v9402_v56 = vld [vmem:[#allocation4 + $0x830] ss:$12 sps:$4 sm:$0xff]   ;;  %8826 = vmatprep.subr.bf16.mxu0 %v9407_v47  ;;  %v9410_v63 = vld [vmem:[#allocation4 + $0x6c8] ss:$12 sps:$4 sm:$0xff]  }
 0x229   : > { %v8684_v26 = vpop.f32.mrf.mxu1  ;;  %8811 = vmatmul.mubr.bf16.gmra.mxu1 %v10721_v42  ;;  %v3296_v25 = vrot.slane %v3125_v46, 4  ;;  %5714 = vmatprep.mubr.bf16.mxu0 %v9706_v0 }
 0x22a   : > { %6300 = vmatpush1.bf16.msra.mxu1 %v9393_v9  ;;  %v10743_v29 = vsel %vm2643_vm2, %v3379_v19, %v3380_v38  ;;  %v3420_v34 = vadd.f32 %v3409_v30, %v3340_v21  ;;  %v3127_v52 = vpop.f32.mrf.mxu0  ;;  %6319 = vmatprep.mubr.bf16.mxu1 %v9706_v0  ;;  %v3388_v20 = vrot.slane %v8684_v26, 4  ;;  %v9415_v21 = vld [vmem:[#allocation4 + $0x82c] ss:$12 sps:$4 sm:$0xff]  }
 0x22b   : > { %v3256_v50 = vpop.f32.mrf.mxu1  ;;  %6301 = vmatprep.subr.bf16.mxu1 %v9399_v8  ;;  %v3330_v5 = vsel %vm2643_vm2, 0.0, %v3296_v25  ;;  %8827 = vmatpush3.bf16.msra.mxu0 %v9407_v47  ;;  %v3410_v8 = vsel %vm2643_vm2, %v3377_v53, 0.0 }
 0x22c   : > { %v10748_v40 = vadd.f32 %v3420_v34, %v10607_v2  ;;  %v3341_v10 = vadd.f32 %v3330_v5, %v3127_v52  ;;  %v3129_v18 = vpop.f32.mrf.mxu0  ;;  %v9405_v2 = vld [vmem:[#allocation4 + $0x818] ss:$12 sps:$4 sm:$0xff]   ;;  %v3385_v31 = vrot.slane %v3256_v50, 4  ;;  %8828 = vmatprep.subr.bf16.mxu0 %v9410_v63  ;;  %v10789_v50 = vld [vmem:[%s9864_s29 + $0x8] sm:$0xff]  }
 0x22d   : > { %v10750_v39 = vpop.f32.mrf.mxu1  ;;  %v3297_v4 = vrot.slane %v3129_v18, 4 }
 0x22e   : > { %v3389_v62 = vrot.slane %v10750_v39, 4  ;;  %6302 = vmatpush1.bf16.msra.mxu1 %v9397_v51  ;;  %v3421_v22 = vadd.f32 %v10701_v55, %v3341_v10  ;;  %v3131_v60 = vpop.f32.mrf.mxu0 }
 0x22f   : > { %v10757_v12 = vpop.f32.mrf.mxu1  ;;  %8846 = vmatprep.subr.bf16.mxu1 %v9402_v56  ;;  %v3298_v33 = vsel %vm2643_vm2, %v3296_v25, %v3297_v4  ;;  %8829 = vmatpush3.bf16.msra.mxu0 %v9410_v63 }
 0x230   : > { %v3386_v59 = vrot.slane %v10757_v12, 4  ;;  %v10764_v41 = vsel %vm2643_vm2, %v3388_v20, %v3389_v62  ;;  %v10767_v9 = vadd.f32 %v3421_v22, %v10595_v15  ;;  %v3342_v55 = vadd.f32 %v3298_v33, %v3131_v60  ;;  %v3135_v14 = vpop.f32.mrf.mxu0  ;;  %5715 = vmatmul.mubr.bf16.gmra.mxu0 %v10669_v35  ;;  %6786 = vmatprep.subr.bf16.mxu0 %v9415_v21  ;;  %v9411_v22 = vld [vmem:[#allocation4 + $0x7e8] ss:$12 sps:$4 sm:$0xff]  }
 0x231   : > { %v3741_v28 = vpop.f32.mrf.mxu1  ;;  %6320 = vmatmul.mubr.bf16.vlgmr.msra.gmra.mxu1 %v10753_v17  ;;  %v3299_v19 = vrot.slane %v3135_v14, 4  ;;  %5724 = vmatprep.mubr.bf16.mxu0 %v9706_v0 }
 0x232   : > { %v3933_v54 = vrot.slane %v3741_v28, 4  ;;  %8847 = vmatpush3.bf16.msra.mxu1 %v9402_v56  ;;  %v10778_v15 = vsel %vm2643_vm2, %v3385_v31, %v3386_v59  ;;  %v3422_v46 = vadd.f32 %v3410_v8, %v3342_v55  ;;  %v3137_v35 = vpop.f32.mrf.mxu0  ;;  %6328 = vmatprep.mubr.bf16.mxu1 %v9706_v0 }
 0x233   : > { %v3743_v26 = vpop.f32.mrf.mxu1  ;;  %8848 = vmatprep.subr.bf16.mxu1 %v9405_v2  ;;  %v3331_v53 = vsel %vm2643_vm2, 0.0, %v3299_v19 }
 0x234   : > { %v3973_v47 = vsel %vm2643_vm2, 0.0, %v3933_v54  ;;  %v10784_v30 = vadd.f32 %v3422_v46, %v10598_v16  ;;  %v3343_v25 = vadd.f32 %v3331_v53, %v3137_v35  ;;  %v3139_v34 = vpop.f32.mrf.mxu0 }
 0x235   : > { %v10786_v51 = vadd.f32 %v3973_v47, %v3743_v26  ;;  %v3745_v52 = vpop.f32.mrf.mxu1  ;;  %v3300_v56 = vrot.slane %v3139_v34, 4  ;;  %v10814_v26 = vld [vmem:[%s9864_s29 + $0x10] sm:$0xff]  }
 0x236   : > { %v3934_v5 = vrot.slane %v3745_v52, 4  ;;  %8849 = vmatpush3.bf16.msra.mxu1 %v9405_v2  ;;  %v3423_v10 = vadd.f32 %v10743_v29, %v3343_v25  ;;  %v3141_v18 = vpop.f32.mrf.mxu0  ;;  %v3411_v29 = vsel %vm2643_vm2, %v3380_v38, 0.0 }
 0x237   : > { %v3747_v20 = vpop.f32.mrf.mxu1  ;;  %8850 = vmatprep.subr.bf16.mxu1 %v9408_v58  ;;  %v3301_v16 = vsel %vm2643_vm2, %v3299_v19, %v3300_v56 }
 0x238   : > { %v3935_v4 = vsel %vm2643_vm2, %v3933_v54, %v3934_v5  ;;  %v10795_v60 = vadd.f32 %v3423_v10, %v10629_v43  ;;  %v3344_v31 = vadd.f32 %v3301_v16, %v3141_v18  ;;  %v3145_v63 = vpop.f32.mrf.mxu0  ;;  %5725 = vmatmul.mubr.bf16.gmra.mxu0 %v10691_v24  ;;  %v9416_v54 = vld [vmem:[#allocation4 + $0x7d0] ss:$12 sps:$4 sm:$0xff]  }
 0x239   : > { %v10797_v33 = vadd.f32 %v3935_v4, %v3747_v20  ;;  %v3751_v55 = vpop.f32.mrf.mxu1  ;;  %6329 = vmatmul.mubr.bf16.gmra.mxu1 %v10789_v50  ;;  %v3302_v2 = vrot.slane %v3145_v63, 4  ;;  %5734 = vmatprep.mubr.bf16.mxu0 %v9706_v0 }
 0x23a   : > { %v3936_v14 = vrot.slane %v3751_v55, 4  ;;  %6337 = vmatprep.mubr.bf16.mxu1 %v9706_v0  ;;  %v3424_v43 = vadd.f32 %v3411_v29, %v3344_v31  ;;  %v3147_v28 = vpop.f32.mrf.mxu0  ;;  %8851 = vmatpush3.bf16.msra.mxu1 %v9408_v58  ;;  %v9432_v29 = vld [vmem:[#allocation4 + $0x7a0] ss:$12 sps:$4 sm:$0xff]  }
 0x23b   : > { %v3753_v8 = vpop.f32.mrf.mxu1  ;;  %v3332_v19 = vsel %vm2643_vm2, 0.0, %v3302_v2  ;;  %8852 = vmatprep.subr.bf16.mxu1 %v9411_v22 }
 0x23c   : > { %v3974_v24 = vsel %vm2643_vm2, 0.0, %v3936_v14  ;;  %v10809_v13 = vadd.f32 %v3424_v43, %v10632_v32  ;;  %v3345_v38 = vadd.f32 %v3332_v19, %v3147_v28  ;;  %v3149_v46 = vpop.f32.mrf.mxu0  ;;  %v9424_v32 = vld [vmem:[#allocation4 + $0x7b8] ss:$12 sps:$4 sm:$0xff]  }
 0x23d   : > { %v10811_v21 = vadd.f32 %v3974_v24, %v3753_v8  ;;  %v3755_v35 = vpop.f32.mrf.mxu1  ;;  %v3303_v53 = vrot.slane %v3149_v46, 4  ;;  %v10839_v28 = vld [vmem:[%s9864_s29 + $0x18] sm:$0xff]  }
 0x23e   : > { %v3937_v47 = vrot.slane %v3755_v35, 4  ;;  %v3425_v58 = vadd.f32 %v10731_v45, %v3345_v38  ;;  %v3151_v25 = vpop.f32.mrf.mxu0  ;;  %8853 = vmatpush3.bf16.msra.mxu1 %v9411_v22  ;;  %v3412_v45 = vsel %vm2643_vm2, %v3383_v6, 0.0 }
 0x23f   : > { %v3757_v34 = vpop.f32.mrf.mxu1  ;;  %v3304_v52 = vsel %vm2643_vm2, %v3302_v2, %v3303_v53  ;;  %8854 = vmatprep.subr.bf16.mxu1 %v9416_v54 }
 0x240   : > { %v3938_v56 = vsel %vm2643_vm2, %v3936_v14, %v3937_v47  ;;  %v10820_v5 = vadd.f32 %v3425_v58, %v10620_v37  ;;  %v3346_v10 = vadd.f32 %v3304_v52, %v3151_v25  ;;  %v3155_v20 = vpop.f32.mrf.mxu0  ;;  %5735 = vmatmul.mubr.bf16.gmra.mxu0 %v10695_v61 }
 0x241   : > { %v10822_v18 = vadd.f32 %v3938_v56, %v3757_v34  ;;  %v3761_v16 = vpop.f32.mrf.mxu1  ;;  %6338 = vmatmul.mubr.bf16.gmra.mxu1 %v10814_v26  ;;  %v3305_v4 = vrot.slane %v3155_v20, 4  ;;  %5744 = vmatprep.mubr.bf16.mxu0 %v9706_v0 }
 0x242   : > { %v3939_v22 = vrot.slane %v3761_v16, 4  ;;  %6346 = vmatprep.mubr.bf16.mxu1 %v9706_v0  ;;  %v3426_v37 = vadd.f32 %v3412_v45, %v3346_v10  ;;  %v3157_v31 = vpop.f32.mrf.mxu0  ;;  %8855 = vmatpush3.bf16.msra.mxu1 %v9416_v54  ;;  %v9448_v16 = vld [vmem:[#allocation4 + $0x8ec] ss:$12 sps:$4 sm:$0xff]  }
 0x243   : > { %v3763_v63 = vpop.f32.mrf.mxu1  ;;  %v3333_v55 = vsel %vm2643_vm2, 0.0, %v3305_v4  ;;  %8856 = vmatprep.subr.bf16.mxu1 %v9424_v32 }
 0x244   : > { %v3975_v61 = vsel %vm2643_vm2, 0.0, %v3939_v22  ;;  %v10834_v23 = vadd.f32 %v3426_v37, %v10623_v57  ;;  %v3347_v6 = vadd.f32 %v3333_v55, %v3157_v31  ;;  %v3159_v14 = vpop.f32.mrf.mxu0  ;;  %v9440_v57 = vld [vmem:[#allocation4 + $0x788] ss:$12 sps:$4 sm:$0xff]   ;;  %v10864_v37 = vld [vmem:[%s9864_s29 + $0x20] sm:$0xff]  }
 0x245   : > { %v10836_v2 = vadd.f32 %v3975_v61, %v3763_v63  ;;  %v3765_v43 = vpop.f32.mrf.mxu1  ;;  %v3306_v8 = vrot.slane %v3159_v14, 4  ;;  %v9413_v63 = vld [vmem:[#allocation4 + $0x828] ss:$12 sps:$4 sm:$0xff]  }
 0x246   : > { %v3940_v19 = vrot.slane %v3765_v43, 4  ;;  %v3427_v24 = vadd.f32 %v10778_v15, %v3347_v6  ;;  %v3161_v54 = vpop.f32.mrf.mxu0  ;;  %8857 = vmatpush3.bf16.msra.mxu1 %v9424_v32  ;;  %v3413_v15 = vsel %vm2643_vm2, %v3386_v59, 0.0  ;;  %v9419_v6 = vld [vmem:[#allocation4 + $0x814] ss:$12 sps:$4 sm:$0xff]  }
 0x247   : > { %v3767_v38 = vpop.f32.mrf.mxu1  ;;  %v3307_v46 = vsel %vm2643_vm2, %v3305_v4, %v3306_v8  ;;  %8858 = vmatprep.subr.bf16.mxu1 %v9432_v29 }
 0x248   : > { %v3941_v35 = vsel %vm2643_vm2, %v3939_v22, %v3940_v19  ;;  %v10845_v53 = vadd.f32 %v3427_v24, %v10657_v44  ;;  %v3348_v47 = vadd.f32 %v3307_v46, %v3161_v54  ;;  %v3165_v25 = vpop.f32.mrf.mxu0  ;;  %5745 = vmatmul.mubr.bf16.gmra.mxu0 %v10721_v42  ;;  %v9417_v46 = vld [vmem:[#allocation4 + $0x810] ss:$12 sps:$4 sm:$0xff]  }
 0x249   : > { %v10847_v58 = vadd.f32 %v3941_v35, %v3767_v38  ;;  %v3771_v34 = vpop.f32.mrf.mxu1  ;;  %6347 = vmatmul.mubr.bf16.gmra.mxu1 %v10839_v28  ;;  %v3308_v52 = vrot.slane %v3165_v25, 4  ;;  %8830 = vmatprep.mubr.bf16.mxu0 %v10753_v17 }
 0x24a   : > { %v3942_v56 = vrot.slane %v3771_v34, 4  ;;  %6355 = vmatprep.mubr.bf16.mxu1 %v9706_v0  ;;  %v3428_v44 = vadd.f32 %v3413_v15, %v3348_v47  ;;  %v3167_v32 = vpop.f32.mrf.mxu0  ;;  %8859 = vmatpush3.bf16.msra.mxu1 %v9432_v29  ;;  %v9423_v47 = vld [vmem:[#allocation4 + $0x7fc] ss:$12 sps:$4 sm:$0xff]  }
 0x24b   : > { %v3773_v10 = vpop.f32.mrf.mxu1  ;;  %v3334_v20 = vsel %vm2643_vm2, 0.0, %v3308_v52  ;;  %8860 = vmatprep.subr.bf16.mxu1 %v9440_v57  ;;  %v10888_v15 = vld [vmem:[%s9864_s29 + $0x28] sm:$0xff]  }
 0x24c   : > { %v3976_v42 = vsel %vm2643_vm2, 0.0, %v3942_v56  ;;  %v10859_v12 = vadd.f32 %v3428_v44, %v10660_v49  ;;  %v3349_v59 = vadd.f32 %v3334_v20, %v3167_v32  ;;  %v3169_v4 = vpop.f32.mrf.mxu0  ;;  %v9421_v32 = vld [vmem:[#allocation4 + $0x7f8] ss:$12 sps:$4 sm:$0xff]  }
 0x24d   : > { %v10861_v45 = vadd.f32 %v3976_v42, %v3773_v10  ;;  %v3775_v22 = vpop.f32.mrf.mxu1  ;;  %v3309_v17 = vrot.slane %v3169_v4, 4  ;;  %v9427_v42 = vld [vmem:[#allocation4 + $0x7e4] ss:$12 sps:$4 sm:$0xff]  }
 0x24e   : > { %v3943_v31 = vrot.slane %v3775_v22, 4  ;;  %v3429_v55 = vadd.f32 %v10764_v41, %v3349_v59  ;;  %v3171_v61 = vpop.f32.mrf.mxu0  ;;  %8861 = vmatpush3.bf16.msra.mxu1 %v9440_v57  ;;  %v3414_v41 = vsel %vm2643_vm2, %v3389_v62, 0.0 }
 0x24f   : > { %v3777_v29 = vpop.f32.mrf.mxu1  ;;  %v3310_v14 = vsel %vm2643_vm2, %v3308_v52, %v3309_v17  ;;  %7288 = vmatprep.subr.bf16.mxu1 %v9448_v16 }
 0x250   : > { %v3944_v49 = vsel %vm2643_vm2, %v3942_v56, %v3943_v31  ;;  %v10870_v43 = vadd.f32 %v3429_v55, %v10647_v1  ;;  %v3350_v8 = vadd.f32 %v3310_v14, %v3171_v61  ;;  %v8704_v54 = vpop.f32.mrf.mxu0  ;;  %8831 = vmatmul.mubr.bf16.vlgmr.msra.gmra.mxu0 %v10789_v50  ;;  %v9425_v14 = vld [vmem:[#allocation4 + $0x7e0] ss:$12 sps:$4 sm:$0xff]  }
 0x251   : > { %v10872_v19 = vadd.f32 %v3944_v49, %v3777_v29  ;;  %v3781_v24 = vpop.f32.mrf.mxu1  ;;  %6356 = vmatmul.mubr.bf16.gmra.mxu1 %v10864_v37  ;;  %6787 = vmatpush1.bf16.msra.mxu0 %v9413_v63  ;;  %v4016_v52 = vrot.slane %v8704_v54, 4  ;;  %v9431_v54 = vld [vmem:[#allocation4 + $0x7cc] ss:$12 sps:$4 sm:$0xff]  }
 0x252   : > { %v3945_v38 = vrot.slane %v3781_v24, 4  ;;  %6364 = vmatprep.mubr.bf16.mxu1 %v9706_v0  ;;  %v3430_v1 = vadd.f32 %v3414_v41, %v3350_v8  ;;  %v3854_v57 = vpop.f32.mrf.mxu0  ;;  %6788 = vmatprep.subr.bf16.mxu0 %v9419_v6 }
 0x253   : > { %v3783_v35 = vpop.f32.mrf.mxu1  ;;  %8834 = vmatprep.mubr.bf16.mxu0 %v10814_v26  ;;  %v4013_v10 = vrot.slane %v3854_v57, 4 }
 0x254   : > { %v3977_v25 = vsel %vm2643_vm2, 0.0, %v3945_v38  ;;  %v10883_v50 = vadd.f32 %v3430_v1, %v10654_v7  ;;  %v8705_v34 = vpop.f32.mrf.mxu0 }
 0x255   : > { %v10885_v39 = vadd.f32 %v3977_v25, %v3783_v35  ;;  %v3785_v62 = vpop.f32.mrf.mxu1  ;;  %v4017_v44 = vrot.slane %v8705_v34, 4  ;;  %6789 = vmatpush1.bf16.msra.mxu0 %v9417_v46 }
 0x256   : > { %v3946_v56 = vrot.slane %v3785_v62, 4  ;;  %v3857_v26 = vpop.f32.mrf.mxu0  ;;  %6790 = vmatprep.subr.bf16.mxu0 %v9423_v47  ;;  %v9429_v47 = vld [vmem:[#allocation4 + $0x7c8] ss:$12 sps:$4 sm:$0xff]  }
 0x257   : > { %v3787_v20 = vpop.f32.mrf.mxu1  ;;  %v4018_v16 = vsel %vm2643_vm2, %v4016_v52, %v4017_v44  ;;  %v4054_v7 = vsel %vm2643_vm2, %v4017_v44, 0.0  ;;  %v4014_v4 = vrot.slane %v3857_v26, 4 }
 0x258   : > { %v3947_v59 = vsel %vm2643_vm2, %v3945_v38, %v3946_v56  ;;  %v4063_v22 = vadd.f32 %v4018_v16, %v10811_v21  ;;  %v4064_v17 = vadd.f32 %v4054_v7, %v10822_v18  ;;  %v8708_v55 = vpop.f32.mrf.mxu0  ;;  %8835 = vmatmul.mubr.bf16.gmra.mxu0 %v10839_v28 }
 0x259   : > { %v10895_v31 = vadd.f32 %v3947_v59, %v3787_v20  ;;  %v3791_v63 = vpop.f32.mrf.mxu1  ;;  %6365 = vmatmul.mubr.bf16.gmra.mxu1 %v10888_v15  ;;  %v4015_v61 = vsel %vm2643_vm2, %v4013_v10, %v4014_v4  ;;  %v4053_v29 = vsel %vm2643_vm2, %v4014_v4, 0.0  ;;  %6791 = vmatpush1.bf16.msra.mxu0 %v9421_v32  ;;  %v4022_v35 = vrot.slane %v8708_v55, 4  ;;  %v9433_v59 = vld [vmem:[#allocation4 + $0x7b0] ss:$12 sps:$4 sm:$0xff]  }
 0x25a   : > { %v3948_v6 = vrot.slane %v3791_v63, 4  ;;  %6373 = vmatprep.mubr.bf16.mxu1 %v9706_v0  ;;  %v10903_v21 = vadd.f32 %v4063_v22, %v10704_v48  ;;  %v10906_v18 = vadd.f32 %v4064_v17, %v10716_v36  ;;  %v4061_v49 = vadd.f32 %v4015_v61, %v10786_v51  ;;  %v3870_v24 = vpop.f32.mrf.mxu0  ;;  %6792 = vmatprep.subr.bf16.mxu0 %v9427_v42  ;;  %v9428_v51 = vld [vmem:[%s9864_s29 + $0x30] sm:$0xff]   ;;  %v9439_v63 = vld [vmem:[#allocation4 + $0x79c] ss:$12 sps:$4 sm:$0xff]  }
 0x25b   : > { %v4062_v28 = vadd.f32 %v4053_v29, %v10797_v33  ;;  %v3793_v8 = vpop.f32.mrf.mxu1  ;;  %8838 = vmatprep.mubr.bf16.mxu0 %v10864_v37  ;;  %v4019_v25 = vrot.slane %v3870_v24, 4  ;;  %v9435_v37 = vld [vmem:[#allocation4 + $0x7b4] ss:$12 sps:$4 sm:$0xff]  }
 0x25c   : > { %v3978_v41 = vsel %vm2643_vm2, 0.0, %v3948_v6  ;;  %v10913_v38 = vadd.f32 %v4061_v49, %v10683_v11  ;;  %v8709_v1 = vpop.f32.mrf.mxu0 }
 0x25d   : > { %v10916_v48 = vadd.f32 %v4062_v28, %v10686_v3  ;;  %v3991_v36 = vadd.f32 %v3978_v41, %v3793_v8  ;;  %v3795_v46 = vpop.f32.mrf.mxu1  ;;  %v4023_v57 = vrot.slane %v8709_v1, 4  ;;  %6793 = vmatpush1.bf16.msra.mxu0 %v9425_v14  ;;  %v9437_v28 = vld [vmem:[#allocation4 + $0x798] ss:$12 sps:$4 sm:$0xff]  }
 0x25e   : > { %v3949_v33 = vrot.slane %v3795_v46, 4  ;;  %v3873_v34 = vpop.f32.mrf.mxu0  ;;  %6794 = vmatprep.subr.bf16.mxu0 %v9431_v54 }
 0x25f   : > { %v3797_v62 = vpop.f32.mrf.mxu1  ;;  %v4024_v11 = vsel %vm2643_vm2, %v4022_v35, %v4023_v57  ;;  %v4056_v52 = vsel %vm2643_vm2, %v4023_v57, 0.0  ;;  %v4020_v56 = vrot.slane %v3873_v34, 4 }
 0x260   : > { %v3950_v3 = vsel %vm2643_vm2, %v3948_v6, %v3949_v33  ;;  %v4067_v44 = vadd.f32 %v4024_v11, %v10861_v45  ;;  %v4068_v32 = vadd.f32 %v4056_v52, %v10872_v19  ;;  %v8712_v26 = vpop.f32.mrf.mxu0  ;;  %8839 = vmatmul.mubr.bf16.gmra.mxu0 %v10888_v15  ;;  %v9441_v11 = vld [vmem:[#allocation4 + $0x780] ss:$12 sps:$4 sm:$0xff]  }
 0x261   : > { %v3992_v10 = vadd.f32 %v3950_v3, %v3797_v62  ;;  %v3801_v20 = vpop.f32.mrf.mxu1  ;;  %6374 = vmatmul.mubr.bf16.gmra.mxu1 %v9428_v51  ;;  %v4021_v42 = vsel %vm2643_vm2, %v4019_v25, %v4020_v56  ;;  %v4055_v16 = vsel %vm2643_vm2, %v4020_v56, 0.0  ;;  %6795 = vmatpush1.bf16.msra.mxu0 %v9429_v47 }
 0x262   : > { %v3951_v7 = vrot.slane %v3801_v20, 4  ;;  %6382 = vmatprep.mubr.bf16.mxu1 %v9706_v0  ;;  %v10929_v45 = vadd.f32 %v4067_v44, %v10767_v9  ;;  %v10932_v19 = vadd.f32 %v4068_v32, %v10784_v30  ;;  %v4065_v4 = vadd.f32 %v4021_v42, %v10836_v2  ;;  %v3886_v17 = vpop.f32.mrf.mxu0  ;;  %6796 = vmatprep.subr.bf16.mxu0 %v9435_v37  ;;  %v9436_v2 = vld [vmem:[%s9864_s29 + $0x38] sm:$0xff]  }
 0x263   : > { %v4066_v15 = vadd.f32 %v4055_v16, %v10847_v58  ;;  %v3803_v22 = vpop.f32.mrf.mxu1  ;;  %8842 = vmatprep.mubr.bf16.mxu0 %v9428_v51  ;;  %v4028_v58 = vrot.slane %v8712_v26, 4  ;;  %v4025_v8 = vrot.slane %v3886_v17, 4  ;;  %v9444_v51 = vld [vmem:[%s9864_s29 + $0x40] sm:$0xff]  }
 0x264   : > { %v3979_v55 = vsel %vm2643_vm2, 0.0, %v3951_v7  ;;  %v10938_v61 = vadd.f32 %v4065_v4, %v10734_v27  ;;  %v8713_v6 = vpop.f32.mrf.mxu0  ;;  %v9443_v27 = vld [vmem:[#allocation4 + $0x784] ss:$12 sps:$4 sm:$0xff]   ;;  %v9446_v4 = vld [vmem:[#allocation4 + $0x8e8] ss:$12 sps:$4 sm:$0xff]  }
 0x265   : > { %v10941_v9 = vadd.f32 %v4066_v15, %v10748_v40  ;;  %v10943_v29 = vadd.f32 %v3979_v55, %v3803_v22  ;;  %v3805_v30 = vpop.f32.mrf.mxu1  ;;  %v4029_v49 = vrot.slane %v8713_v6, 4  ;;  %6797 = vmatpush1.bf16.msra.mxu0 %v9433_v59  ;;  %v9452_v17 = vld [vmem:[#allocation4 + $0x8d4] ss:$12 sps:$4 sm:$0xff]  }
 0x266   : > { %v3952_v14 = vrot.slane %v3805_v30, 4  ;;  %v3889_v54 = vpop.f32.mrf.mxu0  ;;  %6798 = vmatprep.subr.bf16.mxu0 %v9439_v63  ;;  %v10974_v30 = vld [vmem:[%s9864_s29 + $0x50] sm:$0xff]  }
 0x267   : > { %v3807_v24 = vpop.f32.mrf.mxu1  ;;  %v4030_v41 = vsel %vm2643_vm2, %v4028_v58, %v4029_v49  ;;  %v4058_v40 = vsel %vm2643_vm2, %v4029_v49, 0.0  ;;  %v4026_v1 = vrot.slane %v3889_v54, 4  ;;  %v9458_v49 = vld [vmem:[#allocation4 + $0x8d8] ss:$12 sps:$4 sm:$0xff]  }
 0x268   : > { %v3953_v46 = vsel %vm2643_vm2, %v3951_v7, %v3952_v14  ;;  %v4071_v35 = vadd.f32 %v4030_v41, %v3991_v36  ;;  %v4072_v33 = vadd.f32 %v4058_v40, %v3992_v10  ;;  %v8716_v25 = vpop.f32.mrf.mxu0  ;;  %8843 = vmatmul.mubr.bf16.gmra.mxu0 %v9436_v2  ;;  %v9449_v10 = vld [vmem:[#allocation4 + $0x8f0] ss:$12 sps:$4 sm:$0xff]  }
 0x269   : > { %v3994_v57 = vadd.f32 %v3953_v46, %v3807_v24  ;;  %v3811_v47 = vpop.f32.mrf.mxu1  ;;  %6383 = vmatmul.mubr.bf16.gmra.mxu1 %v9436_v2  ;;  %v4027_v62 = vsel %vm2643_vm2, %v4025_v8, %v4026_v1  ;;  %v4057_v34 = vsel %vm2643_vm2, %v4026_v1, 0.0  ;;  %6799 = vmatpush1.bf16.msra.mxu0 %v9437_v28 }
 0x26a   : > { %v3954_v37 = vrot.slane %v3811_v47, 4  ;;  %6818 = vmatprep.mubr.bf16.mxu0 %v9706_v0  ;;  %v10954_v52 = vadd.f32 %v4071_v35, %v10820_v5  ;;  %v10957_v36 = vadd.f32 %v4072_v33, %v10834_v23  ;;  %v4069_v3 = vadd.f32 %v4027_v62, %v10885_v39  ;;  %v3902_v32 = vpop.f32.mrf.mxu0  ;;  %6800 = vmatprep.subr.bf16.mxu0 %v9443_v27  ;;  %v10969_v39 = vld [vmem:[%s9864_s29 + $0x48] sm:$0xff]   ;;  %v9450_v27 = vld [vmem:[#allocation4 + $0x8d0] ss:$12 sps:$4 sm:$0xff]  }
 0x26b   : > { %v4070_v56 = vadd.f32 %v4057_v34, %v10895_v31  ;;  %v3813_v44 = vpop.f32.mrf.mxu1  ;;  %8862 = vmatprep.mubr.bf16.mxu1 %v9444_v51  ;;  %v4034_v31 = vrot.slane %v8716_v25, 4  ;;  %v9457_v33 = vld [vmem:[#allocation4 + $0x8bc] ss:$12 sps:$4 sm:$0xff]   ;;  %v9467_v47 = vld [vmem:[#allocation4 + $0x8c0] ss:$12 sps:$4 sm:$0xff]  }
 0x26c   : > { %v3980_v20 = vsel %vm2643_vm2, 0.0, %v3954_v37  ;;  %v10963_v26 = vadd.f32 %v4069_v3, %v10795_v60  ;;  %v8717_v16 = vpop.f32.mrf.mxu0  ;;  %v4031_v60 = vrot.slane %v3902_v32, 4 }
 0x26d   : > { %v10966_v5 = vadd.f32 %v4070_v56, %v10809_v13  ;;  %v3995_v42 = vadd.f32 %v3980_v20, %v3813_v44  ;;  %v3815_v23 = vpop.f32.mrf.mxu1  ;;  %v4035_v59 = vrot.slane %v8717_v16, 4  ;;  %6801 = vmatpush1.bf16.msra.mxu0 %v9441_v11  ;;  %v10999_v11 = vld [vmem:[%s9864_s29 + $0x58] sm:$0xff]  }
 0x26e   : > { %v3955_v7 = vrot.slane %v3815_v23, 4  ;;  %v3905_v22 = vpop.f32.mrf.mxu0  ;;  %8878 = vmatprep.subr.bf16.mxu0 %v9449_v10 }
 0x26f   : > { %v3817_v15 = vpop.f32.mrf.mxu1  ;;  %v4036_v63 = vsel %vm2643_vm2, %v4034_v31, %v4035_v59  ;;  %v4032_v55 = vrot.slane %v3905_v22, 4  ;;  %v4060_v28 = vsel %vm2643_vm2, %v4035_v59, 0.0 }
 0x270   : > { %v3956_v13 = vsel %vm2643_vm2, %v3954_v37, %v3955_v7  ;;  %v4075_v6 = vadd.f32 %v4036_v63, %v3995_v42  ;;  %v4387_v58 = vpop.f32.mrf.mxu0  ;;  %6819 = vmatmul.mubr.bf16.vlgmr.msra.gmra.mxu0 %v9444_v51 }
 0x271   : > { %v3996_v2 = vadd.f32 %v3956_v13, %v3817_v15  ;;  %v8736_v14 = vpop.f32.mrf.mxu1  ;;  %8863 = vmatmul.mubr.bf16.vlgmr.msra.gmra.mxu1 %v10969_v39  ;;  %v4033_v8 = vsel %vm2643_vm2, %v4031_v60, %v4032_v55  ;;  %v4059_v24 = vsel %vm2643_vm2, %v4032_v55, 0.0  ;;  %v4579_v54 = vrot.slane %v4387_v58, 2  ;;  %8879 = vmatpush3.bf16.msra.mxu0 %v9449_v10  ;;  %v11003_v10 = vld [vmem:[%s9864_s29 + $0x60] sm:$0xff]  }
 0x272   : > { %7289 = vmatpush1.bf16.msra.mxu1 %v9446_v4  ;;  %v10981_v41 = vadd.f32 %v4075_v6, %v10870_v43  ;;  %v4073_v46 = vadd.f32 %v4033_v8, %v10943_v29  ;;  %v4074_v1 = vadd.f32 %v4059_v24, %v3994_v57  ;;  %v4389_v51 = vpop.f32.mrf.mxu0  ;;  %6827 = vmatprep.mubr.bf16.mxu0 %v9706_v0  ;;  %v4662_v3 = vrot.slane %v8736_v14, 6  ;;  %v9476_v4 = vld [vmem:[#allocation4 + $0x8a8] ss:$12 sps:$4 sm:$0xff]   ;;  %v9459_v60 = vld [vmem:[#allocation4 + $0x8a0] ss:$12 sps:$4 sm:$0xff]  }
 0x273   : > { %v4076_v40 = vadd.f32 %v4060_v28, %v3996_v2  ;;  %v4500_v35 = vpop.f32.mrf.mxu1  ;;  %7290 = vmatprep.subr.bf16.mxu1 %v9452_v17  ;;  %v4619_v25 = vsel %vm784_vm1, 0.0, %v4579_v54  ;;  %8866 = vmatprep.mubr.bf16.mxu1 %v10974_v30  ;;  %v11025_v24 = vld [vmem:[%s9864_s29 + $0x68] sm:$0xff]  }
 0x274   : > { %v10991_v43 = vadd.f32 %v4073_v46, %v10845_v53  ;;  %v10994_v29 = vadd.f32 %v4074_v1, %v10859_v12  ;;  %v4627_v57 = vadd.f32 %v4619_v25, %v4389_v51  ;;  %v4391_v34 = vpop.f32.mrf.mxu0  ;;  %8880 = vmatprep.subr.bf16.mxu0 %v9458_v49  ;;  %v9461_v12 = vld [vmem:[#allocation4 + $0x8a4] ss:$12 sps:$4 sm:$0xff]   ;;  %v4659_v20 = vrot.slane %v4500_v35, 6  ;;  %v9464_v46 = vld [vmem:[#allocation4 + $0x888] ss:$12 sps:$4 sm:$0xff]  }
 0x275   : > { %v10988_v62 = vadd.f32 %v4076_v40, %v10883_v50  ;;  %v10996_v37 = vpop.f32.mrf.mxu1  ;;  %v4580_v56 = vrot.slane %v4391_v34, 2  ;;  %v9455_v50 = vld [vmem:[#allocation4 + $0x8b8] ss:$12 sps:$4 sm:$0xff]   ;;  %8881 = vmatpush3.bf16.msra.mxu0 %v9458_v49  ;;  %v11029_v35 = vld [vmem:[%s9864_s29 + $0x70] sm:$0xff]  }
 0x276   : > { %v4663_v44 = vrot.slane %v10996_v37, 6  ;;  %7291 = vmatpush1.bf16.msra.mxu1 %v9450_v27  ;;  %v4393_v53 = vpop.f32.mrf.mxu0  ;;  %8882 = vmatprep.subr.bf16.mxu0 %v9467_v47  ;;  %v9481_v34 = vld [vmem:[#allocation4 + $0x890] ss:$12 sps:$4 sm:$0xff]  }
 0x277   : > { %v4503_v32 = vpop.f32.mrf.mxu1  ;;  %7292 = vmatprep.subr.bf16.mxu1 %v9457_v33  ;;  %v4581_v42 = vsel %vm784_vm1, %v4579_v54, %v4580_v56 }
 0x278   : > { %v4660_v23 = vrot.slane %v4503_v32, 6  ;;  %v4664_v16 = vsel %vm703_vm0, %v4662_v3, %v4663_v44  ;;  %v4628_v31 = vadd.f32 %v4581_v42, %v4393_v53  ;;  %v4397_v7 = vpop.f32.mrf.mxu0  ;;  %6828 = vmatmul.mubr.bf16.gmra.mxu0 %v10969_v39  ;;  %v9466_v39 = vld [vmem:[#allocation4 + $0x88c] ss:$12 sps:$4 sm:$0xff]   ;;  %v4700_v32 = vsel %vm703_vm0, %v4663_v44, 0.0  ;;  %v9468_v42 = vld [vmem:[#allocation4 + $0x870] ss:$12 sps:$4 sm:$0xff]  }
 0x279   : > { %v8740_v59 = vpop.f32.mrf.mxu1  ;;  %8867 = vmatmul.mubr.bf16.gmra.mxu1 %v10999_v11  ;;  %v4582_v17 = vrot.slane %v4397_v7, 2  ;;  %6836 = vmatprep.mubr.bf16.mxu0 %v9706_v0 }
 0x27a   : > { %v4661_v15 = vsel %vm703_vm0, %v4659_v20, %v4660_v23  ;;  %v4699_v22 = vsel %vm703_vm0, %v4660_v23, 0.0  ;;  %7293 = vmatpush1.bf16.msra.mxu1 %v9455_v50  ;;  %v4399_v55 = vpop.f32.mrf.mxu0  ;;  %8870 = vmatprep.mubr.bf16.mxu1 %v11003_v10  ;;  %v4668_v54 = vrot.slane %v8740_v59, 6 }
 0x27b   : > { %v4707_v63 = vadd.f32 %v4661_v15, %v4627_v57  ;;  %v4708_v13 = vadd.f32 %v4699_v22, %v4628_v31  ;;  %v4516_v6 = vpop.f32.mrf.mxu1  ;;  %7294 = vmatprep.subr.bf16.mxu1 %v9461_v12  ;;  %v4620_v2 = vsel %vm784_vm1, 0.0, %v4582_v17  ;;  %8883 = vmatpush3.bf16.msra.mxu0 %v9467_v47  ;;  %v11055_v15 = vld [vmem:[%s9864_s29 + $0x78] sm:$0xff]  }
 0x27c   : > { %v4629_v49 = vadd.f32 %v4620_v2, %v4399_v55  ;;  %v4401_v28 = vpop.f32.mrf.mxu0  ;;  %8884 = vmatprep.subr.bf16.mxu0 %v9476_v4  ;;  %v4665_v33 = vrot.slane %v4516_v6, 6 }
 0x27d   : > { %v11017_v58 = vadd.f32 %v4707_v63, %v10913_v38  ;;  %v11020_v14 = vadd.f32 %v4708_v13, %v10916_v48  ;;  %v11022_v8 = vpop.f32.mrf.mxu1  ;;  %v4583_v27 = vrot.slane %v4401_v28, 2  ;;  %v9470_v48 = vld [vmem:[#allocation4 + $0x874] ss:$12 sps:$4 sm:$0xff]   ;;  %v9473_v63 = vld [vmem:[#allocation4 + $0x858] ss:$12 sps:$4 sm:$0xff]  }
 0x27e   : > { %v4669_v40 = vrot.slane %v11022_v8, 6  ;;  %7295 = vmatpush1.bf16.msra.mxu1 %v9459_v60  ;;  %v4709_v1 = vadd.f32 %v4664_v16, %v4629_v49  ;;  %v4403_v38 = vpop.f32.mrf.mxu0 }
 0x27f   : > { %v4519_v51 = vpop.f32.mrf.mxu1  ;;  %7296 = vmatprep.subr.bf16.mxu1 %v9466_v39  ;;  %v4584_v47 = vsel %vm784_vm1, %v4582_v17, %v4583_v27  ;;  %8885 = vmatpush3.bf16.msra.mxu0 %v9476_v4 }
 0x280   : > { %v4666_v25 = vrot.slane %v4519_v51, 6  ;;  %v11035_v57 = vsel %vm703_vm0, %v4668_v54, %v4669_v40  ;;  %v11038_v3 = vadd.f32 %v4709_v1, %v10903_v21  ;;  %v4630_v56 = vadd.f32 %v4584_v47, %v4403_v38  ;;  %v4407_v50 = vpop.f32.mrf.mxu0  ;;  %6837 = vmatmul.mubr.bf16.gmra.mxu0 %v10974_v30  ;;  %v9483_v21 = vld [vmem:[#allocation4 + $0x878] ss:$12 sps:$4 sm:$0xff]   ;;  %v9475_v30 = vld [vmem:[#allocation4 + $0x85c] ss:$12 sps:$4 sm:$0xff]   ;;  %8886 = vmatprep.subr.bf16.mxu0 %v9481_v34 }
 0x281   : > { %v8744_v53 = vpop.f32.mrf.mxu1  ;;  %8871 = vmatmul.mubr.bf16.gmra.mxu1 %v11025_v24  ;;  %v4585_v12 = vrot.slane %v4407_v50, 2  ;;  %6845 = vmatprep.mubr.bf16.mxu0 %v9706_v0  ;;  %v9485_v38 = vld [vmem:[#allocation4 + $0x860] ss:$12 sps:$4 sm:$0xff]  }
 0x282   : > { %7297 = vmatpush1.bf16.msra.mxu1 %v9464_v46  ;;  %v4667_v20 = vsel %vm703_vm0, %v4665_v33, %v4666_v25  ;;  %v4710_v23 = vadd.f32 %v4700_v32, %v4630_v56  ;;  %v4409_v16 = vpop.f32.mrf.mxu0  ;;  %8874 = vmatprep.mubr.bf16.mxu1 %v11029_v35  ;;  %v4674_v22 = vrot.slane %v8744_v53, 6  ;;  %v4701_v51 = vsel %vm703_vm0, %v4666_v25, 0.0  ;;  %v9477_v33 = vld [vmem:[#allocation4 + $0x840] ss:$12 sps:$4 sm:$0xff]  }
 0x283   : > { %v4532_v31 = vpop.f32.mrf.mxu1  ;;  %7298 = vmatprep.subr.bf16.mxu1 %v9470_v48  ;;  %v4621_v37 = vsel %vm784_vm1, 0.0, %v4585_v12  ;;  %8887 = vmatpush3.bf16.msra.mxu0 %v9481_v34 }
 0x284   : > { %v11050_v44 = vadd.f32 %v4710_v23, %v10906_v18  ;;  %v4631_v7 = vadd.f32 %v4621_v37, %v4409_v16  ;;  %v4411_v59 = vpop.f32.mrf.mxu0  ;;  %8888 = vmatprep.subr.bf16.mxu0 %v9483_v21  ;;  %v9479_v18 = vld [vmem:[#allocation4 + $0x844] ss:$12 sps:$4 sm:$0xff]   ;;  %v4671_v39 = vrot.slane %v4532_v31, 6 }
 0x285   : > { %v11052_v4 = vpop.f32.mrf.mxu1  ;;  %v4586_v17 = vrot.slane %v4411_v59, 2 }
 0x286   : > { %v4675_v60 = vrot.slane %v11052_v4, 6  ;;  %7299 = vmatpush1.bf16.msra.mxu1 %v9468_v42  ;;  %v4711_v13 = vadd.f32 %v4667_v20, %v4631_v7  ;;  %v4413_v55 = vpop.f32.mrf.mxu0 }
 0x287   : > { %v11058_v6 = vpop.f32.mrf.mxu1  ;;  %7300 = vmatprep.subr.bf16.mxu1 %v9475_v30  ;;  %v4587_v2 = vsel %vm784_vm1, %v4585_v12, %v4586_v17  ;;  %8889 = vmatpush3.bf16.msra.mxu0 %v9483_v21  ;;  %v11085_v12 = vld [vmem:[%s9864_s29 + $0x80] sm:$0xff]   ;;  %v9487_v21 = vld [vmem:[#allocation4 + $0x848] ss:$12 sps:$4 sm:$0xff]  }
 0x288   : > { %v4672_v49 = vrot.slane %v11058_v6, 6  ;;  %v11065_v28 = vsel %vm703_vm0, %v4674_v22, %v4675_v60  ;;  %v11068_v54 = vadd.f32 %v4711_v13, %v10938_v61  ;;  %v4632_v27 = vadd.f32 %v4587_v2, %v4413_v55  ;;  %v4417_v46 = vpop.f32.mrf.mxu0  ;;  %6846 = vmatmul.mubr.bf16.gmra.mxu0 %v10999_v11  ;;  %8890 = vmatprep.subr.bf16.mxu0 %v9485_v38 }
 0x289   : > { %v8748_v1 = vpop.f32.mrf.mxu1  ;;  %8875 = vmatmul.mubr.bf16.gmra.mxu1 %v11055_v15  ;;  %v4588_v48 = vrot.slane %v4417_v46, 2  ;;  %6854 = vmatprep.mubr.bf16.mxu0 %v9706_v0  ;;  %v4702_v13 = vsel %vm703_vm0, %v4669_v40, 0.0 }
 0x28a   : > { %7301 = vmatpush1.bf16.msra.mxu1 %v9473_v63  ;;  %v4673_v61 = vsel %vm703_vm0, %v4671_v39, %v4672_v49  ;;  %v4712_v47 = vadd.f32 %v4701_v51, %v4632_v27  ;;  %v4419_v34 = vpop.f32.mrf.mxu0  ;;  %7320 = vmatprep.mubr.bf16.mxu1 %v9706_v0  ;;  %v4680_v20 = vrot.slane %v8748_v1, 6 }
 0x28b   : > { %v4548_v56 = vpop.f32.mrf.mxu1  ;;  %7302 = vmatprep.subr.bf16.mxu1 %v9479_v18  ;;  %v4622_v11 = vsel %vm784_vm1, 0.0, %v4588_v48  ;;  %8891 = vmatpush3.bf16.msra.mxu0 %v9485_v38 }
 0x28c   : > { %v11080_v25 = vadd.f32 %v4712_v47, %v10941_v9  ;;  %v4633_v50 = vadd.f32 %v4622_v11, %v4419_v34  ;;  %v4421_v53 = vpop.f32.mrf.mxu0  ;;  %v4677_v9 = vrot.slane %v4548_v56, 6  ;;  %8892 = vmatprep.subr.bf16.mxu0 %v9487_v21 }
 0x28d   : > { %v11082_v32 = vpop.f32.mrf.mxu1  ;;  %v4589_v42 = vrot.slane %v4421_v53, 2 }
 0x28e   : > { %v4681_v23 = vrot.slane %v11082_v32, 6  ;;  %7303 = vmatpush1.bf16.msra.mxu1 %v9477_v33  ;;  %v4713_v16 = vadd.f32 %v11035_v57, %v4633_v50  ;;  %v4423_v31 = vpop.f32.mrf.mxu0  ;;  %v9489_v32 = vld [vmem:[%s9864_s29 + $0xa8] sm:$0xff]  }
 0x28f   : > { %v11089_v30 = vpop.f32.mrf.mxu1  ;;  %v4590_v37 = vsel %vm784_vm1, %v4588_v48, %v4589_v42  ;;  %8893 = vmatpush3.bf16.msra.mxu0 %v9487_v21  ;;  %v11121_v48 = vld [vmem:[%s9864_s29 + $0x88] sm:$0xff]  }
 0x290   : > { %v4678_v7 = vrot.slane %v11089_v30, 6  ;;  %v11096_v59 = vsel %vm703_vm0, %v4680_v20, %v4681_v23  ;;  %v11099_v22 = vadd.f32 %v4713_v16, %v10929_v45  ;;  %v4634_v17 = vadd.f32 %v4590_v37, %v4423_v31  ;;  %v4427_v57 = vpop.f32.mrf.mxu0  ;;  %6855 = vmatmul.mubr.bf16.gmra.mxu0 %v11003_v10 }
 0x291   : > { %v5030_v63 = vpop.f32.mrf.mxu1  ;;  %7321 = vmatmul.mubr.bf16.vlgmr.msra.gmra.mxu1 %v11085_v12  ;;  %v4591_v55 = vrot.slane %v4427_v57, 2  ;;  %6863 = vmatprep.mubr.bf16.mxu0 %v9706_v0 }
 0x292   : > { %v5222_v18 = vrot.slane %v5030_v63, 2  ;;  %7329 = vmatprep.mubr.bf16.mxu1 %v9706_v0  ;;  %v11111_v45 = vsel %vm703_vm0, %v4677_v9, %v4678_v7  ;;  %v4714_v39 = vadd.f32 %v4702_v13, %v4634_v17  ;;  %v4429_v10 = vpop.f32.mrf.mxu0 }
 0x293   : > { %v5032_v2 = vpop.f32.mrf.mxu1  ;;  %v4623_v8 = vsel %vm784_vm1, 0.0, %v4591_v55 }
 0x294   : > { %v5262_v40 = vsel %vm784_vm1, 0.0, %v5222_v18  ;;  %v11116_v27 = vadd.f32 %v4714_v39, %v10932_v19  ;;  %v4635_v46 = vadd.f32 %v4623_v8, %v4429_v10  ;;  %v4431_v38 = vpop.f32.mrf.mxu0 }
 0x295   : > { %v11118_v1 = vadd.f32 %v5262_v40, %v5032_v2  ;;  %v5034_v51 = vpop.f32.mrf.mxu1  ;;  %v4592_v33 = vrot.slane %v4431_v38, 2 }
 0x296   : > { %v5223_v47 = vrot.slane %v5034_v51, 2  ;;  %v4715_v34 = vadd.f32 %v4673_v61, %v4635_v46  ;;  %v4433_v56 = vpop.f32.mrf.mxu0  ;;  %v4703_v61 = vsel %vm703_vm0, %v4672_v49, 0.0 }
 0x297   : > { %v5036_v11 = vpop.f32.mrf.mxu1  ;;  %v4593_v50 = vsel %vm784_vm1, %v4591_v55, %v4592_v33 }
 0x298   : > { %v5224_v53 = vsel %vm784_vm1, %v5222_v18, %v5223_v47  ;;  %v11126_v20 = vadd.f32 %v4715_v34, %v10963_v26  ;;  %v4636_v19 = vadd.f32 %v4593_v50, %v4433_v56  ;;  %v4437_v16 = vpop.f32.mrf.mxu0  ;;  %6864 = vmatmul.mubr.bf16.gmra.mxu0 %v11025_v24  ;;  %v11145_v18 = vld [vmem:[%s9864_s29 + $0x90] sm:$0xff]  }
 0x299   : > { %v11128_v42 = vadd.f32 %v5224_v53, %v5036_v11  ;;  %v5040_v31 = vpop.f32.mrf.mxu1  ;;  %7330 = vmatmul.mubr.bf16.gmra.mxu1 %v11121_v48  ;;  %v4594_v21 = vrot.slane %v4437_v16, 2  ;;  %6872 = vmatprep.mubr.bf16.mxu0 %v9706_v0 }
 0x29a   : > { %v5225_v9 = vrot.slane %v5040_v31, 2  ;;  %7338 = vmatprep.mubr.bf16.mxu1 %v9706_v0  ;;  %v4716_v26 = vadd.f32 %v4703_v61, %v4636_v19  ;;  %v4439_v37 = vpop.f32.mrf.mxu0 }
 0x29b   : > { %v5042_v17 = vpop.f32.mrf.mxu1  ;;  %v4624_v57 = vsel %vm784_vm1, 0.0, %v4594_v21 }
 0x29c   : > { %v5263_v24 = vsel %vm784_vm1, 0.0, %v5225_v9  ;;  %v11140_v63 = vadd.f32 %v4716_v26, %v10966_v5  ;;  %v4637_v6 = vadd.f32 %v4624_v57, %v4439_v37  ;;  %v4441_v49 = vpop.f32.mrf.mxu0 }
 0x29d   : > { %v11142_v13 = vadd.f32 %v5263_v24, %v5042_v17  ;;  %v5044_v55 = vpop.f32.mrf.mxu1  ;;  %v4595_v39 = vrot.slane %v4441_v49, 2 }
 0x29e   : > { %v5226_v10 = vrot.slane %v5044_v55, 2  ;;  %v4717_v2 = vadd.f32 %v11065_v28, %v4637_v6  ;;  %v4443_v8 = vpop.f32.mrf.mxu0  ;;  %v4704_v28 = vsel %vm703_vm0, %v4675_v60, 0.0 }
 0x29f   : > { %v5046_v40 = vpop.f32.mrf.mxu1  ;;  %v4596_v46 = vsel %vm784_vm1, %v4594_v21, %v4595_v39  ;;  %v11170_v21 = vld [vmem:[%s9864_s29 + $0x98] sm:$0xff]  }
 0x2a0   : > { %v5227_v38 = vsel %vm784_vm1, %v5225_v9, %v5226_v10  ;;  %v11151_v5 = vadd.f32 %v4717_v2, %v10954_v52  ;;  %v4638_v51 = vadd.f32 %v4596_v46, %v4443_v8  ;;  %v4447_v47 = vpop.f32.mrf.mxu0  ;;  %6873 = vmatmul.mubr.bf16.gmra.mxu0 %v11029_v35 }
 0x2a1   : > { %v11153_v33 = vadd.f32 %v5227_v38, %v5046_v40  ;;  %v5050_v34 = vpop.f32.mrf.mxu1  ;;  %7339 = vmatmul.mubr.bf16.gmra.mxu1 %v11145_v18  ;;  %v4597_v56 = vrot.slane %v4447_v47, 2  ;;  %6881 = vmatprep.mubr.bf16.mxu0 %v9706_v0 }
 0x2a2   : > { %v5228_v11 = vrot.slane %v5050_v34, 2  ;;  %7347 = vmatprep.mubr.bf16.mxu1 %v9706_v0  ;;  %v4718_v52 = vadd.f32 %v4704_v28, %v4638_v51  ;;  %v4449_v50 = vpop.f32.mrf.mxu0  ;;  %v9488_v28 = vld [vmem:[%s9864_s29 + $0xa0] sm:$0xff]  }
 0x2a3   : > { %v5052_v53 = vpop.f32.mrf.mxu1  ;;  %v4625_v19 = vsel %vm784_vm1, 0.0, %v4597_v56 }
 0x2a4   : > { %v5264_v35 = vsel %vm784_vm1, 0.0, %v5228_v11  ;;  %v11165_v16 = vadd.f32 %v4718_v52, %v10957_v36  ;;  %v4639_v4 = vadd.f32 %v4625_v19, %v4449_v50  ;;  %v4451_v60 = vpop.f32.mrf.mxu0 }
 0x2a5   : > { %v11167_v31 = vadd.f32 %v5264_v35, %v5052_v53  ;;  %v5054_v61 = vpop.f32.mrf.mxu1  ;;  %v4598_v9 = vrot.slane %v4451_v60, 2 }
 0x2a6   : > { %v5229_v26 = vrot.slane %v5054_v61, 2  ;;  %v4719_v37 = vadd.f32 %v11111_v45, %v4639_v4  ;;  %v4453_v17 = vpop.f32.mrf.mxu0  ;;  %v4705_v45 = vsel %vm703_vm0, %v4678_v7, 0.0 }
 0x2a7   : > { %v5056_v57 = vpop.f32.mrf.mxu1  ;;  %v4599_v24 = vsel %vm784_vm1, %v4597_v56, %v4598_v9 }
 0x2a8   : > { %v5230_v6 = vsel %vm784_vm1, %v5228_v11, %v5229_v26  ;;  %v11176_v36 = vadd.f32 %v4719_v37, %v10991_v43  ;;  %v4640_v49 = vadd.f32 %v4599_v24, %v4453_v17  ;;  %v4457_v39 = vpop.f32.mrf.mxu0  ;;  %6882 = vmatmul.mubr.bf16.gmra.mxu0 %v11055_v15 }
 0x2a9   : > { %v11178_v55 = vadd.f32 %v5230_v6, %v5056_v57  ;;  %v5060_v10 = vpop.f32.mrf.mxu1  ;;  %7348 = vmatmul.mubr.bf16.gmra.mxu1 %v11170_v21  ;;  %v4600_v2 = vrot.slane %v4457_v39, 2  ;;  %8894 = vmatprep.mubr.bf16.mxu0 %v11085_v12 }
 0x2aa   : > { %v5231_v8 = vrot.slane %v5060_v10, 2  ;;  %7356 = vmatprep.mubr.bf16.mxu1 %v9706_v0  ;;  %v4720_v43 = vadd.f32 %v4705_v45, %v4640_v49  ;;  %v4459_v40 = vpop.f32.mrf.mxu0 }
 0x2ab   : > { %v5062_v46 = vpop.f32.mrf.mxu1  ;;  %v4626_v38 = vsel %vm784_vm1, 0.0, %v4600_v2 }
 0x2ac   : > { %v5265_v15 = vsel %vm784_vm1, 0.0, %v5231_v8  ;;  %v11190_v51 = vadd.f32 %v4720_v43, %v10994_v29  ;;  %v4641_v30 = vadd.f32 %v4626_v38, %v4459_v40  ;;  %v4461_v7 = vpop.f32.mrf.mxu0 }
 0x2ad   : > { %v11192_v47 = vadd.f32 %v5265_v15, %v5062_v46  ;;  %v5064_v34 = vpop.f32.mrf.mxu1  ;;  %v4601_v56 = vrot.slane %v4461_v7, 2 }
 0x2ae   : > { %v5232_v11 = vrot.slane %v5064_v34, 2  ;;  %v4721_v12 = vadd.f32 %v11096_v59, %v4641_v30  ;;  %v4463_v52 = vpop.f32.mrf.mxu0  ;;  %v4706_v59 = vsel %vm703_vm0, %v4681_v23, 0.0 }
 0x2af   : > { %v5066_v50 = vpop.f32.mrf.mxu1  ;;  %v4602_v53 = vsel %vm784_vm1, %v4600_v2, %v4601_v56 }
 0x2b0   : > { %v5233_v19 = vsel %vm784_vm1, %v5231_v8, %v5232_v11  ;;  %v11199_v35 = vadd.f32 %v4721_v12, %v10981_v41  ;;  %v4642_v29 = vadd.f32 %v4602_v53, %v4463_v52  ;;  %v8768_v61 = vpop.f32.mrf.mxu0  ;;  %8895 = vmatmul.mubr.bf16.vlgmr.msra.gmra.mxu0 %v11121_v48 }
 0x2b1   : > { %v11201_v4 = vadd.f32 %v5233_v19, %v5066_v50  ;;  %v5070_v60 = vpop.f32.mrf.mxu1  ;;  %7357 = vmatmul.mubr.bf16.gmra.mxu1 %v9488_v28  ;;  %8898 = vmatprep.mubr.bf16.mxu0 %v11145_v18  ;;  %v5305_v49 = vrot.slane %v8768_v61, 6 }
 0x2b2   : > { %v5234_v9 = vrot.slane %v5070_v60, 2  ;;  %7365 = vmatprep.mubr.bf16.mxu1 %v9706_v0  ;;  %v4722_v41 = vadd.f32 %v4706_v59, %v4642_v29  ;;  %v5143_v37 = vpop.f32.mrf.mxu0  ;;  %v9490_v60 = vld [vmem:[%s9864_s29 + $0xb0] sm:$0xff]  }
 0x2b3   : > { %v5072_v26 = vpop.f32.mrf.mxu1  ;;  %v5302_v10 = vrot.slane %v5143_v37, 6 }
 0x2b4   : > { %v5266_v17 = vsel %vm784_vm1, 0.0, %v5234_v9  ;;  %v11211_v57 = vadd.f32 %v4722_v41, %v10988_v62  ;;  %v8769_v6 = vpop.f32.mrf.mxu0 }
 0x2b5   : > { %v11213_v24 = vadd.f32 %v5266_v17, %v5072_v26  ;;  %v5074_v48 = vpop.f32.mrf.mxu1  ;;  %v5306_v39 = vrot.slane %v8769_v6, 6 }
 0x2b6   : > { %v5235_v23 = vrot.slane %v5074_v48, 2  ;;  %v5146_v2 = vpop.f32.mrf.mxu0 }
 0x2b7   : > { %v5076_v45 = vpop.f32.mrf.mxu1  ;;  %v5307_v18 = vsel %vm703_vm0, %v5305_v49, %v5306_v39  ;;  %v5343_v8 = vsel %vm703_vm0, %v5306_v39, 0.0  ;;  %v5303_v40 = vrot.slane %v5146_v2, 6 }
 0x2b8   : > { %v5236_v43 = vsel %vm784_vm1, %v5234_v9, %v5235_v23  ;;  %v5352_v62 = vadd.f32 %v5307_v18, %v11142_v13  ;;  %v5353_v46 = vadd.f32 %v5343_v8, %v11153_v33  ;;  %v8772_v30 = vpop.f32.mrf.mxu0  ;;  %8899 = vmatmul.mubr.bf16.gmra.mxu0 %v11170_v21 }
 0x2b9   : > { %v11221_v38 = vadd.f32 %v5236_v43, %v5076_v45  ;;  %v5080_v15 = vpop.f32.mrf.mxu1  ;;  %7366 = vmatmul.mubr.bf16.gmra.mxu1 %v9489_v32  ;;  %v5304_v7 = vsel %vm703_vm0, %v5302_v10, %v5303_v40  ;;  %v5342_v34 = vsel %vm703_vm0, %v5303_v40, 0.0  ;;  %8902 = vmatprep.mubr.bf16.mxu0 %v9488_v28 }
 0x2ba   : > { %v5237_v56 = vrot.slane %v5080_v15, 2  ;;  %7374 = vmatprep.mubr.bf16.mxu1 %v9706_v0  ;;  %v11228_v13 = vadd.f32 %v5352_v62, %v11038_v3  ;;  %v11231_v33 = vadd.f32 %v5353_v46, %v11050_v44  ;;  %v5350_v11 = vadd.f32 %v5304_v7, %v11118_v1  ;;  %v5159_v52 = vpop.f32.mrf.mxu0  ;;  %v9491_v46 = vld [vmem:[%s9864_s29 + $0xb8] sm:$0xff]   ;;  %s7576_s29 = sadd.s32 %s11640_s23, %s8323_s2 }
 0x2bb   : > { %v5351_v12 = vadd.f32 %v5342_v34, %v11128_v42  ;;  %v5082_v21 = vpop.f32.mrf.mxu1  ;;  %v5311_v44 = vrot.slane %v8772_v30, 6  ;;  %v5308_v1 = vrot.slane %v5159_v52, 6  ;;  %s8324_s16 = sshll.u32 %s7576_s29, 7 }
 0x2bc   : > { %v5267_v50 = vsel %vm784_vm1, 0.0, %v5237_v56  ;;  %v11237_v53 = vadd.f32 %v5350_v11, %v11017_v58  ;;  %v8773_v29 = vpop.f32.mrf.mxu0  ;;  %s11558_s21 = scalar_lea.hbm %s11621_s3, %s8324_s16 }
 0x2bd   : > { %v11240_v19 = vadd.f32 %v5351_v12, %v11020_v14  ;;  %v5280_v28 = vadd.f32 %v5267_v50, %v5082_v21  ;;  %v5084_v3 = vpop.f32.mrf.mxu1  ;;  %v5312_v59 = vrot.slane %v8773_v29, 6 }
 0x2be   : > { %v5238_v61 = vrot.slane %v5084_v3, 2  ;;  %v5162_v42 = vpop.f32.mrf.mxu0 }
 0x2bf   : > { %v5086_v9 = vpop.f32.mrf.mxu1  ;;  %v5313_v41 = vsel %vm703_vm0, %v5311_v44, %v5312_v59  ;;  %v5345_v26 = vsel %vm703_vm0, %v5312_v59, 0.0  ;;  %v5309_v37 = vrot.slane %v5162_v42, 6 }
 0x2c0   : > { %v5239_v58 = vsel %vm784_vm1, %v5237_v56, %v5238_v61  ;;  %v5356_v14 = vadd.f32 %v5313_v41, %v11192_v47  ;;  %v5357_v17 = vadd.f32 %v5345_v26, %v11201_v4  ;;  %v8776_v49 = vpop.f32.mrf.mxu0  ;;  %8903 = vmatmul.mubr.bf16.gmra.mxu0 %v9489_v32 }
 0x2c1   : > { %v5281_v48 = vadd.f32 %v5239_v58, %v5086_v9  ;;  %v5090_v6 = vpop.f32.mrf.mxu1  ;;  %7375 = vmatmul.mubr.bf16.gmra.mxu1 %v9490_v60  ;;  %v5310_v23 = vsel %vm703_vm0, %v5308_v1, %v5309_v37  ;;  %v5344_v39 = vsel %vm703_vm0, %v5309_v37, 0.0  ;;  %8906 = vmatprep.mubr.bf16.mxu0 %v9490_v60 }
 0x2c2   : > { %v5240_v10 = vrot.slane %v5090_v6, 2  ;;  %7383 = vmatprep.mubr.bf16.mxu1 %v9706_v0  ;;  %v11252_v45 = vadd.f32 %v5356_v14, %v11099_v22  ;;  %v11255_v47 = vadd.f32 %v5357_v17, %v11116_v27  ;;  %v5354_v4 = vadd.f32 %v5310_v23, %v11167_v31  ;;  %v5175_v18 = vpop.f32.mrf.mxu0 }
 0x2c3   : > { %v5355_v2 = vadd.f32 %v5344_v39, %v11178_v55  ;;  %v5092_v32 = vpop.f32.mrf.mxu1  ;;  %v5317_v27 = vrot.slane %v8776_v49, 6  ;;  %v5314_v31 = vrot.slane %v5175_v18, 6 }
 0x2c4   : > { %v5268_v8 = vsel %vm784_vm1, 0.0, %v5240_v10  ;;  %v11261_v43 = vadd.f32 %v5354_v4, %v11068_v54  ;;  %v8777_v62 = vpop.f32.mrf.mxu0 }
 0x2c5   : > { %v11264_v0 = vadd.f32 %v5355_v2, %v11080_v25  ;;  %v5282_v40 = vadd.f32 %v5268_v8, %v5092_v32  ;;  %v5094_v22 = vpop.f32.mrf.mxu1  ;;  %v5318_v30 = vrot.slane %v8777_v62, 6 }
 0x2c6   : > { %v5241_v15 = vrot.slane %v5094_v22, 2  ;;  %v5178_v55 = vpop.f32.mrf.mxu0 }
 0x2c7   : > { %v5096_v7 = vpop.f32.mrf.mxu1  ;;  %v5319_v34 = vsel %vm703_vm0, %v5317_v27, %v5318_v30  ;;  %v5347_v56 = vsel %vm703_vm0, %v5318_v30, 0.0  ;;  %v5315_v11 = vrot.slane %v5178_v55, 6 }
 0x2c8   : > { %v5242_v54 = vsel %vm784_vm1, %v5240_v10, %v5241_v15  ;;  %v5360_v12 = vadd.f32 %v5319_v34, %v5280_v28  ;;  %v5361_v25 = vadd.f32 %v5347_v56, %v5281_v48  ;;  %v8780_v50 = vpop.f32.mrf.mxu0  ;;  %8907 = vmatmul.mubr.bf16.gmra.mxu0 %v9491_v46 }
 0x2c9   : > { %v5283_v21 = vadd.f32 %v5242_v54, %v5096_v7  ;;  %v5100_v52 = vpop.f32.mrf.mxu1  ;;  %7384 = vmatmul.mubr.bf16.gmra.mxu1 %v9491_v46  ;;  %v5316_v3 = vsel %vm703_vm0, %v5314_v31, %v5315_v11  ;;  %v5346_v29 = vsel %vm703_vm0, %v5315_v11, 0.0  ;;  %v5323_v14 = vrot.slane %v8780_v50, 6 }
 0x2ca   : > { %v5243_v60 = vrot.slane %v5100_v52, 2  ;;  %v11273_v44 = vadd.f32 %v5360_v12, %v11151_v5  ;;  %v11276_v61 = vadd.f32 %v5361_v25, %v11165_v16  ;;  %v5358_v59 = vadd.f32 %v5316_v3, %v11213_v24  ;;  %v5191_v9 = vpop.f32.mrf.mxu0 }
 0x2cb   : > { %v5359_v28 = vadd.f32 %v5346_v29, %v11221_v38  ;;  %v5102_v1 = vpop.f32.mrf.mxu1  ;;  %v5320_v6 = vrot.slane %v5191_v9, 6 }
 0x2cc   : > { %v5269_v42 = vsel %vm784_vm1, 0.0, %v5243_v60  ;;  %v11282_v41 = vadd.f32 %v5358_v59, %v11126_v20  ;;  %v8781_v37 = vpop.f32.mrf.mxu0 }
 0x2cd   : > { %v11285_v26 = vadd.f32 %v5359_v28, %v11140_v63  ;;  %v5284_v58 = vadd.f32 %v5269_v42, %v5102_v1  ;;  %v5104_v5 = vpop.f32.mrf.mxu1  ;;  %v5324_v17 = vrot.slane %v8781_v37, 6 }
 0x2ce   : > { %v5244_v16 = vrot.slane %v5104_v5, 2  ;;  %v5194_v24 = vpop.f32.mrf.mxu0 }
 0x2cf   : > { %v5106_v48 = vpop.f32.mrf.mxu1  ;;  %v5325_v38 = vsel %vm703_vm0, %v5323_v14, %v5324_v17  ;;  %v5321_v23 = vrot.slane %v5194_v24, 6  ;;  %v5349_v63 = vsel %vm703_vm0, %v5324_v17, 0.0 }
 0x2d0   : > { %v5245_v49 = vsel %vm784_vm1, %v5243_v60, %v5244_v16  ;;  %v5364_v39 = vadd.f32 %v5325_v38, %v5284_v58  ;;  %v5676_v10 = vpop.f32.mrf.mxu0 }
 0x2d1   : > { %v5285_v20 = vadd.f32 %v5245_v49, %v5106_v48  ;;  %v8800_v4 = vpop.f32.mrf.mxu1  ;;  %v5322_v2 = vsel %vm703_vm0, %v5320_v6, %v5321_v23  ;;  %v5348_v32 = vsel %vm703_vm0, %v5321_v23, 0.0  ;;  %v5868_v18 = vrot.slane %v5676_v10, 2 }
 0x2d2   : > { %v11293_v8 = vadd.f32 %v5364_v39, %v11199_v35  ;;  %v5362_v62 = vadd.f32 %v5322_v2, %v5282_v40  ;;  %v5363_v46 = vadd.f32 %v5348_v32, %v5283_v21  ;;  %v5678_v27 = vpop.f32.mrf.mxu0  ;;  %v5951_v54 = vrot.slane %v8800_v4, 6 }
 0x2d3   : > { %v5365_v22 = vadd.f32 %v5349_v63, %v5285_v20  ;;  %v5789_v15 = vpop.f32.mrf.mxu1  ;;  %v5908_v30 = vsel %vm784_vm1, 0.0, %v5868_v18 }
 0x2d4   : > { %v11300_v7 = vadd.f32 %v5362_v62, %v11176_v36  ;;  %v11303_v55 = vadd.f32 %v5363_v46, %v11190_v51  ;;  %v5916_v34 = vadd.f32 %v5908_v30, %v5678_v27  ;;  %v5680_v56 = vpop.f32.mrf.mxu0  ;;  %v5948_v21 = vrot.slane %v5789_v15, 6 }
 0x2d5   : > { %v11297_v31 = vadd.f32 %v5365_v22, %v11211_v57  ;;  %v8801_v35 = vpop.f32.mrf.mxu1  ;;  %v5869_v11 = vrot.slane %v5680_v56, 2 }
 0x2d6   : > { %v5952_v40 = vrot.slane %v8801_v35, 6  ;;  %v5682_v12 = vpop.f32.mrf.mxu0 }
 0x2d7   : > { %v5792_v25 = vpop.f32.mrf.mxu1  ;;  %v5870_v52 = vsel %vm784_vm1, %v5868_v18, %v5869_v11 }
 0x2d8   : > { %v5949_v50 = vrot.slane %v5792_v25, 6  ;;  %v5953_v57 = vsel %vm703_vm0, %v5951_v54, %v5952_v40  ;;  %v5917_v3 = vadd.f32 %v5870_v52, %v5682_v12  ;;  %v5686_v36 = vpop.f32.mrf.mxu0  ;;  %v5989_v32 = vsel %vm703_vm0, %v5952_v40, 0.0 }
 0x2d9   : > { %v8804_v29 = vpop.f32.mrf.mxu1  ;;  %v5871_v59 = vrot.slane %v5686_v36, 2 }
 0x2da   : > { %v5950_v51 = vsel %vm703_vm0, %v5948_v21, %v5949_v50  ;;  %v5988_v60 = vsel %vm703_vm0, %v5949_v50, 0.0  ;;  %v5688_v9 = vpop.f32.mrf.mxu0  ;;  %v5957_v48 = vrot.slane %v8804_v29, 6 }
 0x2db   : > { %v5996_v28 = vadd.f32 %v5950_v51, %v5916_v34  ;;  %v5997_v1 = vadd.f32 %v5988_v60, %v5917_v3  ;;  %v5805_v42 = vpop.f32.mrf.mxu1  ;;  %v5909_v58 = vsel %vm784_vm1, 0.0, %v5871_v59 }
 0x2dc   : > { %v5918_v14 = vadd.f32 %v5909_v58, %v5688_v9  ;;  %v5690_v16 = vpop.f32.mrf.mxu0  ;;  %v5954_v39 = vrot.slane %v5805_v42, 6 }
 0x2dd   : > { %v11311_v5 = vadd.f32 %v5996_v28, %v11237_v53  ;;  %v11314_v37 = vadd.f32 %v5997_v1, %v11240_v19  ;;  %v11316_v17 = vpop.f32.mrf.mxu1  ;;  %v5872_v24 = vrot.slane %v5690_v16, 2 }
 0x2de   : > { %v5958_v6 = vrot.slane %v11316_v17, 6  ;;  %v5998_v38 = vadd.f32 %v5953_v57, %v5918_v14  ;;  %v5692_v49 = vpop.f32.mrf.mxu0 }
 0x2df   : > { %v5808_v23 = vpop.f32.mrf.mxu1  ;;  %v5873_v20 = vsel %vm784_vm1, %v5871_v59, %v5872_v24 }
 0x2e0   : > { %v5955_v10 = vrot.slane %v5808_v23, 6  ;;  %v5959_v53 = vsel %vm703_vm0, %v5957_v48, %v5958_v6  ;;  %v11322_v19 = vadd.f32 %v5998_v38, %v11228_v13  ;;  %v5919_v4 = vadd.f32 %v5873_v20, %v5692_v49  ;;  %v5696_v63 = vpop.f32.mrf.mxu0 }
 0x2e1   : > { %v8808_v2 = vpop.f32.mrf.mxu1  ;;  %v5874_v18 = vrot.slane %v5696_v63, 2 }
 0x2e2   : > { %v5956_v22 = vsel %vm703_vm0, %v5954_v39, %v5955_v10  ;;  %v5999_v62 = vadd.f32 %v5989_v32, %v5919_v4  ;;  %v5698_v46 = vpop.f32.mrf.mxu0  ;;  %v5963_v35 = vrot.slane %v8808_v2, 6  ;;  %v5990_v51 = vsel %vm703_vm0, %v5955_v10, 0.0 }
 0x2e3   : > { %v5821_v27 = vpop.f32.mrf.mxu1  ;;  %v5910_v15 = vsel %vm784_vm1, 0.0, %v5874_v18 }
 0x2e4   : > { %v11328_v30 = vadd.f32 %v5999_v62, %v11231_v33  ;;  %v5920_v34 = vadd.f32 %v5910_v15, %v5698_v46  ;;  %v5700_v56 = vpop.f32.mrf.mxu0  ;;  %v5960_v21 = vrot.slane %v5821_v27, 6 }
 0x2e5   : > { %v11330_v13 = vpop.f32.mrf.mxu1  ;;  %v5875_v54 = vrot.slane %v5700_v56, 2 }
 0x2e6   : > { %v5964_v11 = vrot.slane %v11330_v13, 6  ;;  %v6000_v40 = vadd.f32 %v5956_v22, %v5920_v34  ;;  %v5702_v12 = vpop.f32.mrf.mxu0 }
 0x2e7   : > { %v5824_v25 = vpop.f32.mrf.mxu1  ;;  %v5876_v52 = vsel %vm784_vm1, %v5874_v18, %v5875_v54 }
 0x2e8   : > { %v5961_v50 = vrot.slane %v5824_v25, 6  ;;  %v11337_v33 = vsel %vm703_vm0, %v5963_v35, %v5964_v11  ;;  %v11340_v57 = vadd.f32 %v6000_v40, %v11261_v43  ;;  %v5921_v3 = vadd.f32 %v5876_v52, %v5702_v12  ;;  %v5706_v36 = vpop.f32.mrf.mxu0 }
 0x2e9   : > { %v8812_v29 = vpop.f32.mrf.mxu1  ;;  %v5877_v60 = vrot.slane %v5706_v36, 2 }
 0x2ea   : > { %v5962_v59 = vsel %vm703_vm0, %v5960_v21, %v5961_v50  ;;  %v6001_v28 = vadd.f32 %v5990_v51, %v5921_v3  ;;  %v5708_v1 = vpop.f32.mrf.mxu0  ;;  %v5969_v17 = vrot.slane %v8812_v29, 6  ;;  %v5992_v51 = vsel %vm703_vm0, %v5961_v50, 0.0 }
 0x2eb   : > { %v5837_v9 = vpop.f32.mrf.mxu1  ;;  %v5911_v42 = vsel %vm784_vm1, 0.0, %v5877_v60 }
 0x2ec   : > { %v11346_v58 = vadd.f32 %v6001_v28, %v11264_v0  ;;  %v5922_v14 = vadd.f32 %v5911_v42, %v5708_v1  ;;  %v5710_v16 = vpop.f32.mrf.mxu0  ;;  %v5966_v39 = vrot.slane %v5837_v9, 6 }
 0x2ed   : > { %v11348_v43 = vpop.f32.mrf.mxu1  ;;  %v5878_v48 = vrot.slane %v5710_v16, 2 }
 0x2ee   : > { %v5970_v24 = vrot.slane %v11348_v43, 6  ;;  %v6002_v38 = vadd.f32 %v5959_v53, %v5922_v14  ;;  %v5712_v49 = vpop.f32.mrf.mxu0  ;;  %v5991_v53 = vsel %vm703_vm0, %v5958_v6, 0.0 }
 0x2ef   : > { %v11351_v23 = vpop.f32.mrf.mxu1  ;;  %v5879_v20 = vsel %vm784_vm1, %v5877_v60, %v5878_v48 }
 0x2f0   : > { %v5967_v10 = vrot.slane %v11351_v23, 6  ;;  %v11358_v0 = vsel %vm703_vm0, %v5969_v17, %v5970_v24  ;;  %v11361_v4 = vadd.f32 %v6002_v38, %v11252_v45  ;;  %v5923_v63 = vadd.f32 %v5879_v20, %v5712_v49  ;;  %v5716_v2 = vpop.f32.mrf.mxu0 }
 0x2f1   : > { %v6321_v32 = vpop.f32.mrf.mxu1  ;;  %v5880_v18 = vrot.slane %v5716_v2, 2 }
 0x2f2   : > { %v5968_v22 = vsel %vm703_vm0, %v5966_v39, %v5967_v10  ;;  %v6003_v62 = vadd.f32 %v5991_v53, %v5923_v63  ;;  %v5718_v46 = vpop.f32.mrf.mxu0 }
 0x2f3   : > { %v11367_v27 = vpop.f32.mrf.mxu1  ;;  %v5912_v15 = vsel %vm784_vm1, 0.0, %v5880_v18 }
 0x2f4   : > { %v11371_v34 = vadd.f32 %v6003_v62, %v11255_v47  ;;  %v5924_v45 = vadd.f32 %v5912_v15, %v5718_v46  ;;  %v5720_v56 = vpop.f32.mrf.mxu0 }
 0x2f5   : > { %v6325_v35 = vpop.f32.mrf.mxu1  ;;  %v5881_v54 = vrot.slane %v5720_v56, 2 }
 0x2f6   : > { %v6004_v40 = vadd.f32 %v5962_v59, %v5924_v45  ;;  %v5722_v6 = vpop.f32.mrf.mxu0 }
 0x2f7   : > { %v6326_v12 = vpop.f32.mrf.mxu1  ;;  %v5882_v25 = vsel %vm784_vm1, %v5880_v18, %v5881_v54 }
 0x2f8   : > { %v6482_v21 = vadd.f32 %v6326_v12, %v6321_v32  ;;  %v11375_v52 = vadd.f32 %v6004_v40, %v11282_v41  ;;  %v5925_v3 = vadd.f32 %v5882_v25, %v5722_v6  ;;  %v5726_v36 = vpop.f32.mrf.mxu0 }
 0x2f9   : > { %v6330_v29 = vpop.f32.mrf.mxu1  ;;  %v5883_v60 = vrot.slane %v5726_v36, 2 }
 0x2fa   : > { %v11379_v47 = vadd.f32 %v6482_v21, %v11314_v37  ;;  %v6005_v28 = vadd.f32 %v5992_v51, %v5925_v3  ;;  %v5728_v1 = vpop.f32.mrf.mxu0 }
 0x2fb   : > { %v11381_v59 = vpop.f32.mrf.mxu1  ;;  %v5913_v9 = vsel %vm784_vm1, 0.0, %v5883_v60 }
 0x2fc   : > { %v11385_v42 = vadd.f32 %v6005_v28, %v11285_v26  ;;  %v5926_v41 = vadd.f32 %v5913_v9, %v5728_v1  ;;  %v5730_v14 = vpop.f32.mrf.mxu0  ;;  %v5993_v26 = vsel %vm703_vm0, %v5964_v11, 0.0 }
 0x2fd   : > { %v6334_v16 = vpop.f32.mrf.mxu1  ;;  %v5884_v17 = vrot.slane %v5730_v14, 2 }
 0x2fe   : > { %v6006_v48 = vadd.f32 %v11337_v33, %v5926_v41  ;;  %v5732_v50 = vpop.f32.mrf.mxu0 }
 0x2ff   : > { %v6335_v38 = vpop.f32.mrf.mxu1  ;;  %v5885_v37 = vsel %vm784_vm1, %v5883_v60, %v5884_v17 }
 0x300   : > { %v6484_v49 = vadd.f32 %v6335_v38, %v6330_v29  ;;  %v11390_v39 = vadd.f32 %v6006_v48, %v11273_v44  ;;  %v5927_v20 = vadd.f32 %v5885_v37, %v5732_v50  ;;  %v5736_v63 = vpop.f32.mrf.mxu0 }
 0x301   : > { %v6339_v2 = vpop.f32.mrf.mxu1  ;;  %v5886_v53 = vrot.slane %v5736_v63, 2 }
 0x302   : > { %v11396_v32 = vadd.f32 %v6484_v49, %v11328_v30  ;;  %v6007_v33 = vadd.f32 %v5993_v26, %v5927_v20  ;;  %v5738_v18 = vpop.f32.mrf.mxu0 }
 0x303   : > { %v11398_v62 = vpop.f32.mrf.mxu1  ;;  %v5914_v46 = vsel %vm784_vm1, 0.0, %v5886_v53 }
 0x304   : > { %v11402_v44 = vadd.f32 %v6007_v33, %v11276_v61  ;;  %v5928_v15 = vadd.f32 %v5914_v46, %v5738_v18  ;;  %v5740_v45 = vpop.f32.mrf.mxu0  ;;  %v5994_v61 = vsel %vm703_vm0, %v5967_v10, 0.0 }
 0x305   : > { %v6343_v56 = vpop.f32.mrf.mxu1  ;;  %v5887_v35 = vrot.slane %v5740_v45, 2 }
 0x306   : > { %v6008_v13 = vadd.f32 %v5968_v22, %v5928_v15  ;;  %v5742_v54 = vpop.f32.mrf.mxu0 }
 0x307   : > { %v6344_v11 = vpop.f32.mrf.mxu1  ;;  %v5888_v30 = vsel %vm784_vm1, %v5886_v53, %v5887_v35 }
 0x308   : > { %v6486_v40 = vadd.f32 %v6344_v11, %v6339_v2  ;;  %v11406_v6 = vadd.f32 %v6008_v13, %v11300_v7  ;;  %v5929_v12 = vadd.f32 %v5888_v30, %v5742_v54  ;;  %v5746_v25 = vpop.f32.mrf.mxu0 }
 0x309   : > { %v6348_v21 = vpop.f32.mrf.mxu1  ;;  %v5889_v36 = vrot.slane %v5746_v25, 2 }
 0x30a   : > { %v11412_v3 = vadd.f32 %v6486_v40, %v11346_v58  ;;  %v6009_v22 = vadd.f32 %v5994_v61, %v5929_v12  ;;  %v5748_v29 = vpop.f32.mrf.mxu0 }
 0x30b   : > { %v6350_v51 = vpop.f32.mrf.mxu1  ;;  %v5915_v60 = vsel %vm784_vm1, 0.0, %v5889_v36 }
 0x30c   : > { %v6041_v28 = vadd.f32 %v6009_v22, %v11303_v55  ;;  %v5930_v7 = vadd.f32 %v5915_v60, %v5748_v29  ;;  %v5750_v1 = vpop.f32.mrf.mxu0  ;;  %v5995_v55 = vsel %vm703_vm0, %v5970_v24, 0.0 }
 0x30d   : > { %v6352_v9 = vpop.f32.mrf.mxu1  ;;  %v5890_v41 = vrot.slane %v5750_v1, 2 }
 0x30e   : > { %v6010_v14 = vadd.f32 %v11358_v0, %v5930_v7  ;;  %v5752_v23 = vpop.f32.mrf.mxu0 }
 0x30f   : > { %v6353_v16 = vpop.f32.mrf.mxu1  ;;  %v5891_v10 = vsel %vm784_vm1, %v5889_v36, %v5890_v41 }
 0x310   : > { %v6488_v58 = vadd.f32 %v6353_v16, %v6348_v21  ;;  %v6042_v17 = vadd.f32 %v6010_v14, %v11293_v8  ;;  %v5931_v48 = vadd.f32 %v5891_v10, %v5752_v23  ;;  %v8832_v38 = vpop.f32.mrf.mxu0 }
 0x311   : > { %v6357_v50 = vpop.f32.mrf.mxu1 }
 0x312   : > { %v11423_v37 = vadd.f32 %v6488_v58, %v11371_v34  ;;  %v6011_v49 = vadd.f32 %v5995_v55, %v5931_v48  ;;  %v6426_v0 = vpop.f32.mrf.mxu0 }
 0x313   : > { %v6359_v20 = vpop.f32.mrf.mxu1 }
 0x314   : > { %v6043_v63 = vadd.f32 %v6011_v49, %v11297_v31  ;;  %v8833_v26 = vpop.f32.mrf.mxu0 }
 0x315   : > { %v6361_v2 = vpop.f32.mrf.mxu1  ;;  %v6499_v53 = vadd.f32 %v8833_v26, %v11381_v59 }
 0x316   : > { %v6428_v33 = vpop.f32.mrf.mxu0 }
 0x317   : > { %v6362_v8 = vpop.f32.mrf.mxu1  ;;  %v11428_v18 = vadd.f32 %v6499_v53, %v11322_v19  ;;  %v6497_v24 = vadd.f32 %v6428_v33, %v11367_v27 }
 0x318   : > { %v6490_v43 = vadd.f32 %v6362_v8, %v6357_v50  ;;  %v8836_v34 = vpop.f32.mrf.mxu0 }
 0x319   : > { %v6366_v46 = vpop.f32.mrf.mxu1  ;;  %v6529_v45 = vadd.f32 %v6497_v24, %v11311_v5 }
 0x31a   : > { %v11432_v15 = vadd.f32 %v6490_v43, %v11385_v42  ;;  %v6440_v56 = vpop.f32.mrf.mxu0 }
 0x31b   : > { %v6368_v31 = vpop.f32.mrf.mxu1 }
 0x31c   : > { %v8837_v13 = vpop.f32.mrf.mxu0 }
 0x31d   : > { %v6370_v35 = vpop.f32.mrf.mxu1  ;;  %v6503_v59 = vadd.f32 %v8837_v13, %v6350_v51 }
 0x31e   : > { %v6442_v11 = vpop.f32.mrf.mxu0 }
 0x31f   : > { %v6371_v54 = vpop.f32.mrf.mxu1  ;;  %v11436_v19 = vadd.f32 %v6503_v59, %v11361_v4  ;;  %v6501_v27 = vadd.f32 %v6442_v11, %v11398_v62 }
 0x320   : > { %v6492_v30 = vadd.f32 %v6371_v54, %v6366_v46  ;;  %v8840_v12 = vpop.f32.mrf.mxu0 }
 0x321   : > { %v6375_v40 = vpop.f32.mrf.mxu1  ;;  %v11443_v5 = vadd.f32 %v6501_v27, %v11340_v57 }
 0x322   : > { %v11440_v42 = vadd.f32 %v6492_v30, %v11402_v44  ;;  %v6454_v21 = vpop.f32.mrf.mxu0 }
 0x323   : > { %v6377_v25 = vpop.f32.mrf.mxu1 }
 0x324   : > { %v8841_v36 = vpop.f32.mrf.mxu0 }
 0x325   : > { %v6379_v61 = vpop.f32.mrf.mxu1  ;;  %v6507_v22 = vadd.f32 %v8841_v36, %v6368_v31 }
 0x326   : > { %v6456_v51 = vpop.f32.mrf.mxu0 }
 0x327   : > { %v6380_v29 = vpop.f32.mrf.mxu1  ;;  %v11446_v4 = vadd.f32 %v6507_v22, %v11390_v39  ;;  %v6505_v62 = vadd.f32 %v6456_v51, %v6359_v20 }
 0x328   : > { %v6494_v60 = vadd.f32 %v6380_v29, %v6375_v40  ;;  %v8844_v1 = vpop.f32.mrf.mxu0 }
 0x329   : > { %v6384_v7 = vpop.f32.mrf.mxu1  ;;  %v11451_v44 = vadd.f32 %v6505_v62, %v11375_v52 }
 0x32a   : > { %v11448_v9 = vadd.f32 %v6494_v60, %v6041_v28  ;;  %v6468_v41 = vpop.f32.mrf.mxu0 }
 0x32b   : > { %v6386_v57 = vpop.f32.mrf.mxu1 }
 0x32c   : > { %v8845_v23 = vpop.f32.mrf.mxu0 }
 0x32d   : > { %v6388_v14 = vpop.f32.mrf.mxu1  ;;  %v6511_v16 = vadd.f32 %v8845_v23, %v6386_v57 }
 0x32e   : > { %v6470_v58 = vpop.f32.mrf.mxu0 }
 0x32f   : > { %v6389_v10 = vpop.f32.mrf.mxu1  ;;  %v11453_v48 = vadd.f32 %v6511_v16, %v6042_v17  ;;  %v6509_v50 = vadd.f32 %v6470_v58, %v6377_v25 }
 0x330   : > { %v6496_v39 = vadd.f32 %v6389_v10, %v6384_v7  ;;  %v6820_v38 = vpop.f32.mrf.mxu0 }
 0x331   : > { %v8864_v55 = vpop.f32.mrf.mxu1  ;;  %v11458_v28 = vadd.f32 %v6509_v50, %v11406_v6 }
 0x332   : > { %v11455_v49 = vadd.f32 %v6496_v39, %v6043_v63  ;;  %v6822_v52 = vpop.f32.mrf.mxu0 }
 0x333   : > { %v6925_v20 = vpop.f32.mrf.mxu1 }
 0x334   : > { %v6824_v0 = vpop.f32.mrf.mxu0 }
 0x335   : > { %v11460_v2 = vpop.f32.mrf.mxu1 }
 0x336   : > { %v6825_v26 = vpop.f32.mrf.mxu0 }
 0x337   : > { %v6927_v53 = vpop.f32.mrf.mxu1  ;;  %v6981_v7 = vadd.f32 %v6825_v26, %v6820_v38 }
 0x338   : > { %v6996_v8 = vadd.f32 %v6927_v53, %v6822_v52  ;;  %v6829_v33 = vpop.f32.mrf.mxu0 }
 0x339   : > { %v8868_v17 = vpop.f32.mrf.mxu1  ;;  %v7029_v23 = vadd.f32 %v6981_v7, %v11379_v47 }
 0x33a   : > { %v11462_v43 = vadd.f32 %v6996_v8, %v6529_v45  ;;  %v11464_v24 = vpop.f32.mrf.mxu0 }
 0x33b   : > { %v6939_v46 = vpop.f32.mrf.mxu1 }
 0x33c   : > { %v6833_v63 = vpop.f32.mrf.mxu0 }
 0x33d   : > { %v11466_v34 = vpop.f32.mrf.mxu1 }
 0x33e   : > { %v6834_v6 = vpop.f32.mrf.mxu0 }
 0x33f   : > { %v11468_v31 = vpop.f32.mrf.mxu1  ;;  %v6983_v52 = vadd.f32 %v6834_v6, %v6829_v33 }
 0x340   : > { %v6838_v56 = vpop.f32.mrf.mxu0 }
 0x341   : > { %v8872_v35 = vpop.f32.mrf.mxu1  ;;  %v7031_v53 = vadd.f32 %v6983_v52, %v11396_v32 }
 0x342   : > { %v11470_v13 = vpop.f32.mrf.mxu0 }
 0x343   : > { %v6953_v59 = vpop.f32.mrf.mxu1 }
 0x344   : > { %v6842_v54 = vpop.f32.mrf.mxu0 }
 0x345   : > { %v11472_v11 = vpop.f32.mrf.mxu1 }
 0x346   : > { %v6843_v30 = vpop.f32.mrf.mxu0 }
 0x347   : > { %v11474_v45 = vpop.f32.mrf.mxu1  ;;  %v6985_v59 = vadd.f32 %v6843_v30, %v6838_v56 }
 0x348   : > { %v6847_v27 = vpop.f32.mrf.mxu0 }
 0x349   : > { %v8876_v40 = vpop.f32.mrf.mxu1 }
 0x34a   : > { %v11476_v12 = vpop.f32.mrf.mxu0 }
 0x34b   : > { %v6967_v25 = vpop.f32.mrf.mxu1 }
 0x34c   : > { %v6851_v21 = vpop.f32.mrf.mxu0  ;;  %v7033_v25 = vadd.f32 %v6985_v59, %v11412_v3 }
 0x34d   : > { %v11478_v61 = vpop.f32.mrf.mxu1 }
 0x34e   : > { %v6852_v36 = vpop.f32.mrf.mxu0 }
 0x34f   : > { %v11480_v22 = vpop.f32.mrf.mxu1 }
 0x350   : > { %v6856_v29 = vpop.f32.mrf.mxu0 }
 0x351   : > { %v7322_v51 = vpop.f32.mrf.mxu1 }
 0x352   : > { %v11482_v60 = vpop.f32.mrf.mxu0 }
 0x353   : > { %v11484_v62 = vpop.f32.mrf.mxu1 }
 0x354   : > { %v6860_v1 = vpop.f32.mrf.mxu0 }
 0x355   : > { %v7326_v57 = vpop.f32.mrf.mxu1 }
 0x356   : > { %v6861_v41 = vpop.f32.mrf.mxu0 }
 0x357   : > { %v7327_v14 = vpop.f32.mrf.mxu1 }
 0x358   : > { %v7483_v16 = vadd.f32 %v7327_v14, %v7322_v51  ;;  %v11487_v10 = vpop.f32.mrf.mxu0  ;;  %v6987_v14 = vadd.f32 %v6852_v36, %v6847_v27 }
 0x359   : > { %v7331_v58 = vpop.f32.mrf.mxu1 }
 0x35a   : > { %v7531_v39 = vadd.f32 %v7483_v16, %v7029_v23  ;;  %v11489_v50 = vpop.f32.mrf.mxu0 }
 0x35b   : > { %v7333_v55 = vpop.f32.mrf.mxu1 }
 0x35c   : > { %7547 = vst [vmem:[%s9895_s30 + $0x8] sm:$0xff] %v7531_v39  ;;  %v6869_v20 = vpop.f32.mrf.mxu0 }
 0x35d   : > { %v7335_v0 = vpop.f32.mrf.mxu1  ;;  %v6998_v20 = vadd.f32 %v11460_v2, %v11464_v24 }
 0x35e   : > { %v6870_v38 = vpop.f32.mrf.mxu0 }
 0x35f   : > { %v7336_v26 = vpop.f32.mrf.mxu1 }
 0x360   : > { %v7485_v8 = vadd.f32 %v7336_v26, %v7331_v58  ;;  %v11493_v17 = vpop.f32.mrf.mxu0  ;;  %v7035_v58 = vadd.f32 %v6987_v14, %v11423_v37 }
 0x361   : > { %v7340_v47 = vpop.f32.mrf.mxu1 }
 0x362   : > { %v7533_v46 = vadd.f32 %v7485_v8, %v7031_v53  ;;  %v11495_v63 = vpop.f32.mrf.mxu0  ;;  %v6989_v8 = vadd.f32 %v6861_v41, %v6856_v29  ;;  %v7002_v29 = vadd.f32 %v11466_v34, %v11476_v12 }
 0x363   : > { %v7342_v35 = vpop.f32.mrf.mxu1 }
 0x364   : > { %7549 = vst [vmem:[%s9895_s30 + $0x18] sm:$0xff] %v7533_v46  ;;  %v6878_v54 = vpop.f32.mrf.mxu0  ;;  %v7034_v14 = vadd.f32 %v7002_v29, %v11436_v19 }
 0x365   : > { %v7344_v33 = vpop.f32.mrf.mxu1  ;;  %v7037_v54 = vadd.f32 %v6989_v8, %v11432_v15  ;;  %v6991_v15 = vadd.f32 %v6870_v38, %v11487_v10 }
 0x366   : > { %v11498_v6 = vpop.f32.mrf.mxu0 }
 0x367   : > { %v7345_v40 = vpop.f32.mrf.mxu1 }
 0x368   : > { %v7487_v21 = vadd.f32 %v7345_v40, %v7340_v47  ;;  %v11501_v32 = vpop.f32.mrf.mxu0  ;;  %v7030_v47 = vadd.f32 %v6998_v20, %v11428_v18 }
 0x369   : > { %v7349_v51 = vpop.f32.mrf.mxu1 }
 0x36a   : > { %v7535_v7 = vadd.f32 %v7487_v21, %v7033_v25  ;;  %v11503_v1 = vpop.f32.mrf.mxu0 }
 0x36b   : > { %v7351_v57 = vpop.f32.mrf.mxu1 }
 0x36c   : > { %7551 = vst [vmem:[%s9895_s30 + $0x28] sm:$0xff] %v7535_v7  ;;  %v6887_v56 = vpop.f32.mrf.mxu0 }
 0x36d   : > { %v7353_v30 = vpop.f32.mrf.mxu1 }
 0x36e   : > { %v11506_v23 = vpop.f32.mrf.mxu0 }
 0x36f   : > { %v7354_v16 = vpop.f32.mrf.mxu1 }
 0x370   : > { %v7489_v39 = vadd.f32 %v7354_v16, %v7349_v51  ;;  %v8896_v52 = vpop.f32.mrf.mxu0 }
 0x371   : > { %v7358_v3 = vpop.f32.mrf.mxu1 }
 0x372   : > { %v7537_v0 = vadd.f32 %v7489_v39, %v7035_v58  ;;  %v7427_v53 = vpop.f32.mrf.mxu0  ;;  %v7006_v58 = vadd.f32 %v11472_v11, %v11489_v50 }
 0x373   : > { %v7360_v26 = vpop.f32.mrf.mxu1 }
 0x374   : > { %7553 = vst [vmem:[%s9895_s30 + $0x38] sm:$0xff] %v7537_v0  ;;  %v8897_v36 = vpop.f32.mrf.mxu0  ;;  %v7038_v20 = vadd.f32 %v7006_v58, %v11446_v4 }
 0x375   : > { %v7362_v27 = vpop.f32.mrf.mxu1  ;;  %v7500_v46 = vadd.f32 %v8897_v36, %v7333_v55  ;;  %v7000_v55 = vadd.f32 %v11468_v31, %v11470_v13  ;;  %v7039_v31 = vadd.f32 %v6991_v15, %v11440_v42  ;;  %v6993_v42 = vadd.f32 %v11498_v6, %v11493_v17 }
 0x376   : > { %v7429_v37 = vpop.f32.mrf.mxu0  ;;  %v7010_v36 = vadd.f32 %v11478_v61, %v11503_v1 }
 0x377   : > { %v7363_v59 = vpop.f32.mrf.mxu1  ;;  %v7532_v33 = vadd.f32 %v7500_v46, %v7030_v47  ;;  %v7498_v2 = vadd.f32 %v7429_v37, %v11484_v62  ;;  %v7032_v34 = vadd.f32 %v7000_v55, %v11443_v5  ;;  %v7004_v5 = vadd.f32 %v11474_v45, %v11482_v60 }
 0x378   : > { %v7491_v40 = vadd.f32 %v7363_v59, %v7358_v3  ;;  %v8900_v25 = vpop.f32.mrf.mxu0  ;;  %v7041_v45 = vadd.f32 %v6993_v42, %v11448_v9  ;;  %v7008_v47 = vadd.f32 %v11480_v22, %v11495_v63  ;;  %v7042_v61 = vadd.f32 %v7010_v36, %v11453_v48 }
 0x379   : > { %v7367_v24 = vpop.f32.mrf.mxu1  ;;  %7548 = vst [vmem:[%s9895_s30 + $0x10] sm:$0xff] %v7532_v33  ;;  %v7530_v18 = vadd.f32 %v7498_v2, %v11462_v43  ;;  %v7036_v50 = vadd.f32 %v7004_v5, %v11451_v44 }
 0x37a   : > { %v7539_v41 = vadd.f32 %v7491_v40, %v7037_v54  ;;  %v7441_v51 = vpop.f32.mrf.mxu0  ;;  %v7040_v22 = vadd.f32 %v7008_v47, %v11458_v28 }
 0x37b   : > { %v7369_v21 = vpop.f32.mrf.mxu1  ;;  %7546 = vst [vmem:[%s9895_s30] sm:$0xff] %v7530_v18 }
 0x37c   : > { %7555 = vst [vmem:[%s9895_s30 + $0x48] sm:$0xff] %v7539_v41  ;;  %v8901_v7 = vpop.f32.mrf.mxu0 }
 0x37d   : > { %v7371_v62 = vpop.f32.mrf.mxu1  ;;  %v7504_v56 = vadd.f32 %v8901_v7, %v7351_v57 }
 0x37e   : > { %v7443_v43 = vpop.f32.mrf.mxu0 }
 0x37f   : > { %v7372_v12 = vpop.f32.mrf.mxu1  ;;  %v7536_v13 = vadd.f32 %v7504_v56, %v7034_v14  ;;  %v7502_v16 = vadd.f32 %v7443_v43, %v7342_v35 }
 0x380   : > { %v7493_v30 = vadd.f32 %v7372_v12, %v7367_v24  ;;  %v8904_v38 = vpop.f32.mrf.mxu0 }
 0x381   : > { %v7376_v10 = vpop.f32.mrf.mxu1  ;;  %7552 = vst [vmem:[%s9895_s30 + $0x30] sm:$0xff] %v7536_v13  ;;  %v7534_v19 = vadd.f32 %v7502_v16, %v7032_v34 }
 0x382   : > { %v7541_v39 = vadd.f32 %v7493_v30, %v7039_v31  ;;  %v7455_v3 = vpop.f32.mrf.mxu0 }
 0x383   : > { %v7378_v57 = vpop.f32.mrf.mxu1  ;;  %7550 = vst [vmem:[%s9895_s30 + $0x20] sm:$0xff] %v7534_v19 }
 0x384   : > { %7557 = vst [vmem:[%s9895_s30 + $0x58] sm:$0xff] %v7541_v39  ;;  %v8905_v52 = vpop.f32.mrf.mxu0 }
 0x385   : > { %v7380_v35 = vpop.f32.mrf.mxu1  ;;  %v7508_v11 = vadd.f32 %v8905_v52, %v7369_v21 }
 0x386   : > { %v7457_v53 = vpop.f32.mrf.mxu0 }
 0x387   : > { %v7381_v0 = vpop.f32.mrf.mxu1  ;;  %v7540_v60 = vadd.f32 %v7508_v11, %v7038_v20  ;;  %v7506_v17 = vadd.f32 %v7457_v53, %v7360_v26  ;;  %v6995_v26 = vadd.f32 %v11506_v23, %v11501_v32 }
 0x388   : > { %v7495_v8 = vadd.f32 %v7381_v0, %v7376_v10  ;;  %v8908_v27 = vpop.f32.mrf.mxu0 }
 0x389   : > { %v7385_v6 = vpop.f32.mrf.mxu1  ;;  %7556 = vst [vmem:[%s9895_s30 + $0x50] sm:$0xff] %v7540_v60  ;;  %v7538_v44 = vadd.f32 %v7506_v17, %v7036_v50  ;;  %v7043_v32 = vadd.f32 %v6995_v26, %v11455_v49 }
 0x38a   : > { %v7543_v4 = vadd.f32 %v7495_v8, %v7041_v45  ;;  %v7469_v9 = vpop.f32.mrf.mxu0 }
 0x38b   : > { %v7387_v46 = vpop.f32.mrf.mxu1  ;;  %7554 = vst [vmem:[%s9895_s30 + $0x40] sm:$0xff] %v7538_v44 }
 0x38c   : > { %7559 = vst [vmem:[%s9895_s30 + $0x68] sm:$0xff] %v7543_v4  ;;  %v8909_v37 = vpop.f32.mrf.mxu0 }
 0x38d   : > { %v7389_v59 = vpop.f32.mrf.mxu1  ;;  %v7512_v1 = vadd.f32 %v8909_v37, %v7387_v46 }
 0x38e   : > { %v7471_v54 = vpop.f32.mrf.mxu0 }
 0x38f   : > { %v7390_v63 = vpop.f32.mrf.mxu1  ;;  %v7544_v23 = vadd.f32 %v7512_v1, %v7042_v61  ;;  %v7510_v40 = vadd.f32 %v7471_v54, %v7378_v57 }
 0x390   : > { %v7497_v33 = vadd.f32 %v7390_v63, %v7385_v6 }
 0x391   : > { %7560 = vst [vmem:[%s9895_s30 + $0x70] sm:$0xff] %v7544_v23  ;;  %v7542_v28 = vadd.f32 %v7510_v40, %v7040_v22 }
 0x392   : > { %v7545_v48 = vadd.f32 %v7497_v33, %v7043_v32 }
 0x393   : > { %7558 = vst [vmem:[%s9895_s30 + $0x60] sm:$0xff] %v7542_v28 }
 0x394   : > { %7561 = vst [vmem:[%s9895_s30 + $0x78] sm:$0xff] %v7545_v48 }
 0x395   : > { %9610 = shalt.err (!%p9607_p7)
}
 0x396   : > { %s9611_s30 = scalar_lea.hbm %s11558_s21, 2048  ;;  %s9615_s1 = scalar_lea.hbm %s11621_s3, 8192 }
 0x397   : > { %p9612_p9 = scmp.ne.s32.totalorder %s11558_s21, %s9611_s30  ;;  %p9616_p1 = scmp.lt.s32.totalorder %s11558_s21, %s11621_s3 }
 0x398   : > { %p9617_p10 = scmp.lt.s32.totalorder %s9615_s1, %s9611_s30 }
 0x399   : > { %p9613_p12 = pnand %p9612_p9, %p9782_p3 }
 0x39a   : > { %p9618_p13 = por %p9617_p10, %p9616_p1 }
 0x39b   : > { %p9614_p0 = pneg %p9613_p12 }
 0x39d   : > { %p9619_p8 = pnand %p9618_p13, %p9614_p0 }
 0x39f   : > { %9622 = shalt.err (!%p9619_p8)
}
 0x3a0   : > { %s9708_s23 = smov 128   ;;  %s9709_s29 = smov 8  }
 0x3a1   : > { %8922 = dma.vmem_to_hbm [thread:$0]  (%p9782_p3), %s11560_s24, 2048, %s11558_s21, %s11567_s20, %s9708_s23, %s9708_s23, %s9709_s29  }
 0x3a2 PF: > { %p8941_p11 = scmp.ge.s32.totalorder %s9699_s19, 2  ;;  %s7594_s16 = sand.u32 1, %s9671_s12  }
 0x3a3   : > { %p11642_p2 = scmp.ne.s32.totalorder %s11631_s27, 0  ;;  %s7595_s15 = scalar_lea.sflag [#allocation6], %s7594_s16 }
 0x3a5   : > { %p8932_p4 = pnand %p8941_p11, %p11642_p2 }
 0x3a7   : > { %p8933_p5 = pneg %p8932_p4 }
 0x3a9   : > { %9666 = dma.done.wait (%p8933_p5), %s7595_s15, 2048  }
 0x3aa   : > { %9668 = vsyncadd (%p8933_p5), %s7595_s15, 4294965248  ;;  %s18_s19 = sadd.s32 1, %s9699_s19   ;;  %s11643_s26 = sld [smem:[#allocation20_spill]] }
 0x3ab   : > { %p15_p6 = scmp.ge.s32.totalorder %s18_s19, 6   ;;  %s11644_s12 = smov %s9675_s13 }
 0x3ac   : > { %s11645_s13 = smov %s9679_s14  ;;  %s11646_s14 = smov %s9809_s5 }
 0x3ad   : > { %s11647_s15 = smov %s9691_s17  ;;  %s11648_s16 = smov %s9695_s18 }
 0x3ae   : > { %s11649_s17 = smov %s11652_s22  ;;  %17 = sbr.rel (!%p15_p6) target bundleno = 10 (0xa), region = 113 }
 0x3b0   : > { %s11650_s18 = smov %s11643_s26 }
 0x3b3   :  { %7600 = vsyncpa [#allocation5], 1 }
 0x3b4   :  { %7602 = vsyncpa [#allocation5 + $0x1], 1 }
 0x3b5   :  { %7603 = vsyncpa [#allocation8], 1 }
 0x3b6   :  { %7604 = vsyncpa [#allocation6], 1 }
 0x3b7   :  { %7606 = vsyncpa [#allocation6 + $0x1], 1 }
 0x3b8   :  { %7607 = vsyncmov [#allocation3] }
 0x3bb   :  { %s7608_s27 = vpop.sfrf %7607 }
 0x3bc   :  { %p8327_p3 = scmp.ne.s32.totalorder %s7608_s27, 0 }
 0x3be   :  { %7612 = shalt.err (%p8327_p3)  }
 0x3bf   :  { %7614 = vsyncmov [#allocation3 + $0x1] }
 0x3c2   :  { %s7615_s5 = vpop.sfrf %7614 }
 0x3c3   :  { %p8328_p7 = scmp.ne.s32.totalorder %s7615_s5, 0 }
 0x3c5   :  { %7619 = shalt.err (%p8328_p7)  }

</bundles_post_ra>
